<compile_context>
chip_gen: v5e
topology: v5e:2x2
jax: 0.10.0
libtpu: 0.0.40
codegen_flags: <defaults>
</compile_context>

<pallas_src>
import jax
import jax.numpy as jnp
from jax.experimental import pallas as pl
from jax.experimental.pallas import tpu as pltpu


def bilinear_kernel(xv_ref, xu_ref, sidx_ref, asym_ref, y_ref):
    # xv_ref / xu_ref : (tn, D)  f32
    # sidx_ref        : (tn, 1)  int32  (relation id per pair)
    # asym_ref        : (R, D, D) f32   (pre-symmetrized, VMEM resident)
    # y_ref           : (1, 1, tn) f32  (lane-dense output row)
    xv = xv_ref[...]
    xu = xu_ref[...]
    sidx = sidx_ref[...]                              # (tn, 1)
    n_rel = asym_ref.shape[0]

    # One real (tn, D) x (D, D) MXU matmul per relation (R is tiny), then
    # select the relation requested for each row. No per-pair A stream.
    acc = jnp.zeros_like(xv)
    for r in range(n_rel):                            # static unroll
        t = jnp.dot(xv, asym_ref[r], preferred_element_type=jnp.float32)
        acc = jnp.where(sidx == r, t, acc)

    # y[n] = sum_e (xv[n] @ A_sym[s_n])[e] * xu[n, e]
    y = jnp.sum(acc * xu, axis=-1)                    # (tn,)
    y_ref[...] = y.reshape(1, 1, -1)                  # lane-dense store


def bilinear_forward(x, A, pairs, scheme_idx, *, tn=512):
    """Pallas implementation of Forward.forward.

    x          : (num_tuples, dim) f32 embedding table
    A          : (num_relations, dim, dim) f32 relation matrices
    pairs      : (N, 2) int32 indices into x
    scheme_idx : (N,) int32 indices into A
    returns    : (N,) f32
    """
    N = pairs.shape[0]
    D = x.shape[1]
    R = A.shape[0]

    # Symmetrize once over the R relation matrices (not once per pair).
    A_sym = (A + jnp.swapaxes(A, 1, 2)) * 0.5

    # Pad the pair dimension to a multiple of the tile size (ragged N ok).
    G = pl.cdiv(N, tn)
    Np = G * tn
    pad = Np - N
    pairs_p = jnp.pad(pairs, ((0, pad), (0, 0)))
    sidx_p = jnp.pad(scheme_idx.astype(jnp.int32), (0, pad))

    # Glue: small row gathers stay in plain JAX.
    xv = jnp.take(x, pairs_p[:, 0], axis=0)           # (Np, D)
    xu = jnp.take(x, pairs_p[:, 1], axis=0)           # (Np, D)
    sidx2d = sidx_p.reshape(Np, 1)                    # (Np, 1)

    y3d = pl.pallas_call(
        bilinear_kernel,
        out_shape=jax.ShapeDtypeStruct((G, 1, tn), jnp.float32),
        grid=(G,),
        in_specs=[
            pl.BlockSpec((tn, D), lambda i: (i, 0)),
            pl.BlockSpec((tn, D), lambda i: (i, 0)),
            pl.BlockSpec((tn, 1), lambda i: (i, 0)),
            # All relation matrices resident in VMEM; no per-pair gather.
            pl.BlockSpec((R, D, D), lambda i: (0, 0, 0)),
        ],
        out_specs=pl.BlockSpec((1, 1, tn), lambda i: (i, 0, 0)),
        compiler_params=pltpu.CompilerParams(
            dimension_semantics=("parallel",)),
    )(xv, xu, sidx2d, A_sym)

    return y3d.reshape(Np)[:N]


if __name__ == "__main__":
    # Small, deterministic problem consistent with the module's __init__.
    dim = 32           # self.dim
    num_schemes = 3    # self.num_relations
    num_tuples = 10    # len(row_idx)
    n_pairs = 1000     # batch of (v, u) pairs fed to forward()  (ragged vs tn)

    key = jax.random.PRNGKey(0)
    k_x, k_a, k_p, k_s = jax.random.split(key, 4)

    # Parameter init mirrors torch.nn.init.normal_:
    #   x ~ N(0, 1/dim),  A ~ N(0, 1)
    x = jax.random.normal(k_x, (num_tuples, dim), jnp.float32) * jnp.sqrt(1.0 / dim)
    A = jax.random.normal(k_a, (num_schemes, dim, dim), jnp.float32)

    pairs = jax.random.randint(k_p, (n_pairs, 2), 0, num_tuples, jnp.int32)
    scheme_idx = jax.random.randint(k_s, (n_pairs,), 0, num_schemes, jnp.int32)

    y = bilinear_forward(x, A, pairs, scheme_idx)
    jax.block_until_ready(y)

    # Pure-JAX reference of the PyTorch forward().
    A_sym = (A + jnp.swapaxes(A, 1, 2)) / 2.0
    y_ref = jnp.einsum("nd,nde,ne->n",
                       x[pairs[:, 0]], A_sym[scheme_idx], x[pairs[:, 1]])
    assert y.shape == (n_pairs,)
    assert jnp.allclose(y, y_ref, atol=1e-4, rtol=1e-4)

    print("KERNEL_OK")
</pallas_src>

<mosaic_0001>
module attributes {stable_mosaic.version = 11 : i64} {
  func.func @bilinear_kernel(%arg0: i32, %arg1: memref<512x32xf32, #tpu.memory_space<vmem>>, %arg2: memref<512x32xf32, #tpu.memory_space<vmem>>, %arg3: memref<512x1xi32, #tpu.memory_space<vmem>>, %arg4: memref<3x32x32xf32, #tpu.memory_space<vmem>>, %arg5: memref<1x1x512xf32, #tpu.memory_space<vmem>>) attributes {dimension_semantics = [#tpu.dimension_semantics<parallel>], iteration_bounds = array<i64: 2>, scalar_prefetch = 0 : i64, scratch_operands = 0 : i64, tpu.core_type = #tpu.core_type<tc>, window_params = [{transform_indices = @transform_0, window_bounds = array<i64: 512, 32>}, {transform_indices = @transform_1, window_bounds = array<i64: 512, 32>}, {transform_indices = @transform_2, window_bounds = array<i64: 512, 1>}, {pipeline_mode = #tpu.pipeline_mode<synchronous>, transform_indices = @transform_3, window_bounds = array<i64: 3, 32, 32>}, {transform_indices = @transform_4, window_bounds = array<i64: 1, 1, 512>}]} {
    %c0 = arith.constant 0 : index
    %c0_0 = arith.constant 0 : index
    %0 = vector.load %arg1[%c0, %c0_0] : memref<512x32xf32, #tpu.memory_space<vmem>>, vector<512x32xf32>
    %c0_1 = arith.constant 0 : index
    %c0_2 = arith.constant 0 : index
    %1 = vector.load %arg2[%c0_1, %c0_2] : memref<512x32xf32, #tpu.memory_space<vmem>>, vector<512x32xf32>
    %c0_3 = arith.constant 0 : index
    %c0_4 = arith.constant 0 : index
    %2 = vector.load %arg3[%c0_3, %c0_4] : memref<512x1xi32, #tpu.memory_space<vmem>>, vector<512x1xi32>
    %cst = arith.constant 0.000000e+00 : f32
    %3 = vector.broadcast %cst : f32 to vector<512x32xf32>
    %c0_5 = arith.constant 0 : index
    %c0_6 = arith.constant 0 : index
    %c0_7 = arith.constant 0 : index
    %4 = vector.load %arg4[%c0_5, %c0_6, %c0_7] : memref<3x32x32xf32, #tpu.memory_space<vmem>>, vector<1x32x32xf32>
    %5 = vector.shape_cast %4 : vector<1x32x32xf32> to vector<32x32xf32>
    %cst_8 = arith.constant dense<0.000000e+00> : vector<512x32xf32>
    %6 = tpu.matmul %0, %5, %cst_8 {dimension_numbers = #tpu.dot_dimension_numbers<[1], [0], [0], [1], [0, 0, 1, 1], [], []>} : vector<512x32xf32>, vector<32x32xf32>, vector<512x32xf32> -> vector<512x32xf32>
    %c0_i32 = arith.constant 0 : i32
    %7 = vector.broadcast %c0_i32 : i32 to vector<512x1xi32>
    %8 = arith.cmpi eq, %2, %7 : vector<512x1xi32>
    %9 = vector.shape_cast %8 : vector<512x1xi1> to vector<512x1xi1>
    %10 = vector.broadcast %9 : vector<512x1xi1> to vector<512x32xi1>
    %11 = arith.select %10, %6, %3 : vector<512x32xi1>, vector<512x32xf32>
    %c1 = arith.constant 1 : index
    %c0_9 = arith.constant 0 : index
    %c0_10 = arith.constant 0 : index
    %12 = vector.load %arg4[%c1, %c0_9, %c0_10] : memref<3x32x32xf32, #tpu.memory_space<vmem>>, vector<1x32x32xf32>
    %13 = vector.shape_cast %12 : vector<1x32x32xf32> to vector<32x32xf32>
    %cst_11 = arith.constant dense<0.000000e+00> : vector<512x32xf32>
    %14 = tpu.matmul %0, %13, %cst_11 {dimension_numbers = #tpu.dot_dimension_numbers<[1], [0], [0], [1], [0, 0, 1, 1], [], []>} : vector<512x32xf32>, vector<32x32xf32>, vector<512x32xf32> -> vector<512x32xf32>
    %c1_i32 = arith.constant 1 : i32
    %15 = vector.broadcast %c1_i32 : i32 to vector<512x1xi32>
    %16 = arith.cmpi eq, %2, %15 : vector<512x1xi32>
    %17 = vector.shape_cast %16 : vector<512x1xi1> to vector<512x1xi1>
    %18 = vector.broadcast %17 : vector<512x1xi1> to vector<512x32xi1>
    %19 = arith.select %18, %14, %11 : vector<512x32xi1>, vector<512x32xf32>
    %c2 = arith.constant 2 : index
    %c0_12 = arith.constant 0 : index
    %c0_13 = arith.constant 0 : index
    %20 = vector.load %arg4[%c2, %c0_12, %c0_13] : memref<3x32x32xf32, #tpu.memory_space<vmem>>, vector<1x32x32xf32>
    %21 = vector.shape_cast %20 : vector<1x32x32xf32> to vector<32x32xf32>
    %cst_14 = arith.constant dense<0.000000e+00> : vector<512x32xf32>
    %22 = tpu.matmul %0, %21, %cst_14 {dimension_numbers = #tpu.dot_dimension_numbers<[1], [0], [0], [1], [0, 0, 1, 1], [], []>} : vector<512x32xf32>, vector<32x32xf32>, vector<512x32xf32> -> vector<512x32xf32>
    %c2_i32 = arith.constant 2 : i32
    %23 = vector.broadcast %c2_i32 : i32 to vector<512x1xi32>
    %24 = arith.cmpi eq, %2, %23 : vector<512x1xi32>
    %25 = vector.shape_cast %24 : vector<512x1xi1> to vector<512x1xi1>
    %26 = vector.broadcast %25 : vector<512x1xi1> to vector<512x32xi1>
    %27 = arith.select %26, %22, %19 : vector<512x32xi1>, vector<512x32xf32>
    %28 = arith.mulf %27, %1 : vector<512x32xf32>
    %cst_15 = arith.constant dense<0.000000e+00> : vector<512xf32>
    %29 = vector.multi_reduction <add>, %28, %cst_15 [1] : vector<512x32xf32> to vector<512xf32>
    %30 = vector.shape_cast %29 : vector<512xf32> to vector<1x1x512xf32>
    %c0_16 = arith.constant 0 : index
    %c0_17 = arith.constant 0 : index
    %c0_18 = arith.constant 0 : index
    %31 = vector.load %arg5[%c0_16, %c0_17, %c0_18] : memref<1x1x512xf32, #tpu.memory_space<vmem>>, vector<1x1x512xf32>
    tpu.vector_store %arg5[%c0_16, %c0_17, %c0_18], %30 {strides = array<i32>} : memref<1x1x512xf32, #tpu.memory_space<vmem>>, vector<1x1x512xf32>,
    return
  }
  func.func @transform_0(%arg0: i32) -> (i32, i32) {
    %c0_i32 = arith.constant 0 : i32
    %c0_i32_0 = arith.constant 0 : i32
    return %arg0, %c0_i32 : i32, i32
  }
  func.func @transform_1(%arg0: i32) -> (i32, i32) {
    %c0_i32 = arith.constant 0 : i32
    %c0_i32_0 = arith.constant 0 : i32
    return %arg0, %c0_i32 : i32, i32
  }
  func.func @transform_2(%arg0: i32) -> (i32, i32) {
    %c0_i32 = arith.constant 0 : i32
    %c0_i32_0 = arith.constant 0 : i32
    return %arg0, %c0_i32 : i32, i32
  }
  func.func @transform_3(%arg0: i32) -> (i32, i32, i32) {
    %c0_i32 = arith.constant 0 : i32
    %c0_i32_0 = arith.constant 0 : i32
    %c0_i32_1 = arith.constant 0 : i32
    %c0_i32_2 = arith.constant 0 : i32
    return %c0_i32, %c0_i32_0, %c0_i32_1 : i32, i32, i32
  }
  func.func @transform_4(%arg0: i32) -> (i32, i32, i32) {
    %c0_i32 = arith.constant 0 : i32
    %c0_i32_0 = arith.constant 0 : i32
    %c0_i32_1 = arith.constant 0 : i32
    return %arg0, %c0_i32, %c0_i32_0 : i32, i32, i32
  }
}

</mosaic_0001>

<bundles_post_ra>
// kernel: tpu_custom_call.1
= control target key start
LH: loop header
LB: loop body
LE: loop exit
PB: predicated region body
PF: predicated region fallthrough
CT: control target
= control target key end

     0   :  { %9 = vsyncpa [#allocation3], 0  ;;  %s7910_s0 = inlined_call_operand.vmem [shape: f32[1024,32], index: 0, kind: input, shape index: {}]   ;;  %s7911_s1 = inlined_call_operand.vmem [shape: f32[1024,32], index: 1, kind: input, shape index: {}]   ;;  %s7912_s2 = inlined_call_operand.vmem [shape: s32[1024,1], index: 2, kind: input, shape index: {}]   ;;  %s7913_s3 = inlined_call_operand.vmem [shape: f32[3,32,32], index: 3, kind: input, shape index: {}]   ;;  %s7914_s4 = inlined_call_operand.hbm [shape: f32[2,1,512], index: 4, kind: output, shape index: {}]  }
   0x1   :  { %11 = vsyncpa [#allocation3 + $0x1], 0  ;;  %s4929_s15 = smov 0   ;;  %s4931_s16 = smov 0  }
   0x2   :  { %s4933_s17 = smov 0   ;;  %s4935_s18 = smov 0  }
   0x3 LB: > { %s4950_s19 = sadd.s32 4294967295, %s4901_s18   ;;  %s4489_s20 = sadd.s32 4294967294, %s4901_s18   ;;  %s4901_s18 = sphi %s4935_s18, %s8410_s18   ;;  %s4897_s17 = sphi %s4933_s17, %s8409_s17   ;;  %s4893_s16 = sphi %s4931_s16, %s8408_s16   ;;  %s4889_s15 = sphi %s4929_s15, %s8407_s15  }
   0x4   : > { %s4954_s21 = sadd.s32 1, %s4901_s18   ;;  %s123_s22 = sadd.s32 1, %s4897_s17 }
   0x5   : > { %s120_s23 = ssub.s32 %s4901_s18, %s4954_s21  ;;  %p133_p0 = scmp.ne.s32.totalorder %s4897_s17, %s4893_s16 }
   0x6   : > { %p121_p1 = scmp.eq.s32.totalorder %s120_s23, 0  ;;  %p134_p2 = scmp.eq.s32.totalorder %s4950_s19, 1 }
   0x7   : > { %p139_p3 = scmp.ne.s32.totalorder %s4893_s16, %s4889_s15  ;;  %p140_p4 = scmp.eq.s32.totalorder %s4489_s20, 1 }
   0x8   : > { %s4965_s24 = scalar_select %p121_p1, %s4897_s17, %s123_s22  }
   0x9   : > { %p4967_p5 = por %p134_p2, %p133_p0  ;;  %p4971_p6 = por %p140_p4, %p139_p3 }
   0xa   : > { %p4492_p7 = scmp.ge.s32.totalorder %s4901_s18, 1  ;;  %p188_p8 = scmp.lt.s32.totalorder %s4901_s18, 3 }
   0xc   : > { %p189_p9 = pnand %p4492_p7, %p188_p8 }
   0xe   : > { %192 = sbr.rel (%p189_p9) target bundleno = 1755 (0x6db), region = 36 }
  0x13   : > { %v437_v0 = vld [vmem:[%s7913_s3 + $0x18] sm:$0xff]  ;;  %v436_v2 = vld [vmem:[%s7913_s3 + $0x10] sm:$0xff]  ;;  %s4494_s7 = sshll.u32 %s4950_s19, 6  ;;  %v435_v4 = vld [vmem:[%s7913_s3 + $0x8] sm:$0xff]  ;;  %v7929_v6 = vmov 0   ;;  %vm438_vm0 = vcmask 261120  }
  0x14   : > { %v4567_v1 = vld [vmem:[%s7913_s3 + $0x38] sm:$0xff]  ;;  %643 = vmatpush.msra.mxu0 %v437_v0  ;;  %v4566_v3 = vld [vmem:[%s7913_s3 + $0x30] sm:$0xff]  ;;  %p225_p10 = scmp.lt.s32.totalorder %s4494_s7, 127  ;;  %v4565_v5 = vld [vmem:[%s7913_s3 + $0x28] sm:$0xff]  ;;  %4758 = vset.pattern.permute.xlu2 %v7929_v6  ;;  %s4859_s20 = scalar_lea.hbm %s7914_s4, 8 }
  0x15   : > { %1305 = vmatpush.msra.mxu1 %v4567_v1  ;;  %4757 = vset.pattern.permute.xlu1 %v7929_v6  ;;  %v434_v7 = vld [vmem:[%s7913_s3] sm:$0xff]  ;;  %v4635_v36 = vld [vmem:[%s7913_s3 + $0x58] sm:$0xff]  ;;  %v4634_v37 = vld [vmem:[%s7913_s3 + $0x50] sm:$0xff] }
  0x16   : > { %644 = vmatpush.msra.mxu0 %v436_v2  ;;  %s8412_s7 = smov (!%p225_p10, %s4494_s7), 127  ;;  %v4564_v8 = vld [vmem:[%s7913_s3 + $0x20] sm:$0xff]  ;;  %4756 = vset.pattern.permute.xlu0 %v7929_v6  ;;  %v4633_v39 = vld [vmem:[%s7913_s3 + $0x48] sm:$0xff] }
  0x17   : > { %1306 = vmatpush.msra.mxu1 %v4566_v3  ;;  %4704 = vmatpush.msra.mxu3 %v437_v0  ;;  %s5005_s27 = sshll.u32 %s8412_s7, 3  ;;  %v4632_v43 = vld [vmem:[%s7913_s3 + $0x40] sm:$0xff] }
  0x18   : > { %645 = vmatpush.msra.mxu0 %v435_v4  ;;  %s5011_s30 = scalar_lea.vmem %s7910_s0, %s5005_s27  ;;  %s5017_s8 = scalar_lea.vmem %s7912_s2, %s5005_s27  ;;  %1967 = vmatpush.msra.mxu2 %v4635_v36 }
  0x19   : > { %1307 = vmatpush.msra.mxu1 %v4565_v5  ;;  %4705 = vmatpush.msra.mxu3 %v436_v2  ;;  %v5020_v9 = vld [vmem:[%s5011_s30] sm:$0xff]  ;;  %v5026_v11 = vld [vmem:[%s5017_s8 + $0x10] sm:$0xff]  ;;  %v5041_v15 = vld [vmem:[%s5017_s8 + $0x28] sm:$0xff]  ;;  %s6862_s28 = scalar_lea.vmem %s7911_s1, %s5005_s27  ;;  %s221_s27 = sand.u32 1, %s4893_s16  }
  0x1a   : > { %646 = vmatpush.msra.mxu0 %v434_v7  ;;  %v5023_v10 = vld [vmem:[%s5017_s8 + $0x20] sm:$0xff]  ;;  %vm842_vm2 = vcmp.eq.s32.totalorder %v5026_v11, 0  ;;  %v5044_v16 = vld [vmem:[%s5017_s8 + $0x18] sm:$0xff]  ;;  %v5048_v18 = vld [vmem:[%s5017_s8 + $0x8] sm:$0xff]  ;;  %vm845_vm4 = vcmp.eq.s32.totalorder %v5041_v15, 0  ;;  %1968 = vmatpush.msra.mxu2 %v4634_v37  ;;  %s4493_s29 = sshll.u32 %s221_s27, 2 }
  0x1b   : > { %1308 = vmatpush.msra.mxu1 %v4564_v8  ;;  %4500 = vmatmul.msk.f32.vlgmr.msra.gmra.mxu0 %vm438_vm0, %v5020_v9  ;;  %vm844_vm1 = vcmp.eq.s32.totalorder %v5023_v10, 0  ;;  %v5035_v12 = vld [vmem:[%s5017_s8] sm:$0xff]  ;;  %v906_v14 = vsel %vm842_vm2, 1, %v7929_v6  ;;  %vm843_vm5 = vcmp.eq.s32.totalorder %v5044_v16, 0  ;;  %v5058_v20 = vld [vmem:[%s5011_s30 + $0x8] sm:$0xff]  ;;  %vm841_vm6 = vcmp.eq.s32.totalorder %v5048_v18, 0 }
  0x1c   : > { %4568 = vmatmul.msk.f32.vlgmr.msra.gmra.mxu1 %vm438_vm0, %v5020_v9  ;;  %v908_v13 = vsel %vm844_vm1, 1, %v7929_v6  ;;  %vm840_vm3 = vcmp.eq.s32.totalorder %v5035_v12, 0  ;;  %4706 = vmatpush.msra.mxu3 %v435_v4  ;;  %v5051_v19 = vld [vmem:[%s5011_s30 + $0x180] sm:$0xff]  ;;  %v909_v21 = vsel %vm845_vm4, 1, %v7929_v6  ;;  %v907_v22 = vsel %vm843_vm5, 1, %v7929_v6  ;;  %v5072_v25 = vld [vmem:[%s5017_s8 + $0x38] sm:$0xff] }
  0x1d   : > { %981 = vperm.xlu2 %4758, %v908_v13   ;;  %975 = vperm.xlu1 %4757, %v906_v14   ;;  %v904_v17 = vsel %vm840_vm3, 1, %v7929_v6  ;;  %v905_v23 = vsel %vm841_vm6, 1, %v7929_v6  ;;  %v5069_v24 = vld [vmem:[%s5017_s8 + $0x40] sm:$0xff]  ;;  %v5075_v26 = vld [vmem:[%s5011_s30 + $0x188] sm:$0xff]  ;;  %v5078_v27 = vld [vmem:[%s5017_s8 + $0x30] sm:$0xff]  ;;  %vm847_vm8 = vcmp.eq.s32.totalorder %v5072_v25, 0 }
  0x1e   : > { %969 = vperm.xlu0 %4756, %v904_v17   ;;  %4707 = vmatpush.msra.mxu3 %v434_v7  ;;  %vm848_vm7 = vcmp.eq.s32.totalorder %v5069_v24, 0  ;;  %v5085_v28 = vld [vmem:[%s5011_s30 + $0x10] sm:$0xff]  ;;  %vm846_vm9 = vcmp.eq.s32.totalorder %v5078_v27, 0  ;;  %v911_v30 = vsel %vm847_vm8, 1, %v7929_v6  ;;  %v5096_v32 = vld [vmem:[%s5017_s8 + $0x58] sm:$0xff]  ;;  %v5105_v35 = vld [vmem:[%s5017_s8 + $0x48] sm:$0xff] }
  0x1f   : > { %4548 = vmatmul.msk.f32.vlgmr.msra.gmra.mxu3 %vm438_vm0, %v5051_v19  ;;  %v912_v29 = vsel %vm848_vm7, 1, %v7929_v6  ;;  %v910_v31 = vsel %vm846_vm9, 1, %v7929_v6  ;;  %v5099_v33 = vld [vmem:[%s5017_s8 + $0x50] sm:$0xff]  ;;  %vm851_vm10 = vcmp.eq.s32.totalorder %v5096_v32, 0  ;;  %v5118_v38 = vld [vmem:[%s5011_s30 + $0x18] sm:$0xff]  ;;  %vm849_vm12 = vcmp.eq.s32.totalorder %v5105_v35, 0  ;;  %1969 = vmatpush.msra.mxu2 %v4633_v39 }
  0x20   : > { %4708 = vmatpush.msrb.mxu3 %v4567_v1  ;;  %v5102_v34 = vld [vmem:[%s5011_s30 + $0x190] sm:$0xff]  ;;  %vm850_vm11 = vcmp.eq.s32.totalorder %v5099_v33, 0  ;;  %v915_v40 = vsel %vm851_vm10, 1, %v7929_v6  ;;  %v913_v42 = vsel %vm849_vm12, 1, %v7929_v6  ;;  %v5138_v45 = vld [vmem:[%s5017_s8 + $0x68] sm:$0xff]  ;;  %v5141_v46 = vld [vmem:[%s5011_s30 + $0x198] sm:$0xff] }
  0x21   : > { %v914_v41 = vsel %vm850_vm11, 1, %v7929_v6  ;;  %v5135_v44 = vld [vmem:[%s5017_s8 + $0x70] sm:$0xff]  ;;  %v5144_v47 = vld [vmem:[%s5017_s8 + $0x60] sm:$0xff]  ;;  %1970 = vmatpush.msra.mxu2 %v4632_v43  ;;  %vm853_vm14 = vcmp.eq.s32.totalorder %v5138_v45, 0  ;;  %v5164_v52 = vld [vmem:[%s5017_s8 + $0x88] sm:$0xff]  ;;  %s4391_s10 = scalar_lea.sflag [#allocation3], %s221_s27 }
  0x22   : > { %4709 = vmatpush.msrb.mxu3 %v4566_v3  ;;  %vm854_vm13 = vcmp.eq.s32.totalorder %v5135_v44, 0  ;;  %4636 = vmatmul.msk.f32.vlgmr.msra.gmra.mxu2 %vm438_vm0, %v5020_v9  ;;  %v5153_v48 = vld [vmem:[%s5011_s30 + $0x20] sm:$0xff]  ;;  %vm852_vm15 = vcmp.eq.s32.totalorder %v5144_v47, 0  ;;  %v917_v50 = vsel %vm853_vm14, 1, %v7929_v6  ;;  %v5173_v55 = vld [vmem:[%s5017_s8 + $0x78] sm:$0xff]  ;;  %vm857_vm1 = vcmp.eq.s32.totalorder %v5164_v52, 0 }
  0x23   : > { %4501 = vmatmul.msk.f32.gmra.mxu0 %vm438_vm0, %v5058_v20  ;;  %v918_v49 = vsel %vm854_vm13, 1, %v7929_v6  ;;  %v916_v51 = vsel %vm852_vm15, 1, %v7929_v6  ;;  %v5167_v53 = vld [vmem:[%s5017_s8 + $0x80] sm:$0xff]  ;;  %v5182_v56 = vld [vmem:[%s5011_s30 + $0x28] sm:$0xff]  ;;  %vm855_vm3 = vcmp.eq.s32.totalorder %v5173_v55, 0  ;;  %v921_v57 = vsel %vm857_vm1, 1, %v7929_v6 }
  0x24   : > { %4569 = vmatmul.msk.f32.gmra.mxu1 %vm438_vm0, %v5058_v20  ;;  %4710 = vmatpush.msrb.mxu3 %v4565_v5  ;;  %v5170_v54 = vld [vmem:[%s5011_s30 + $0x1a0] sm:$0xff]  ;;  %vm856_vm2 = vcmp.eq.s32.totalorder %v5167_v53, 0  ;;  %v919_v59 = vsel %vm855_vm3, 1, %v7929_v6  ;;  %v5196_v61 = vld [vmem:[%s5017_s8 + $0x98] sm:$0xff]  ;;  %v5199_v62 = vld [vmem:[%s5011_s30 + $0x1a8] sm:$0xff] }
  0x25   : > { %984 = vperm.xlu2 %4758, %v909_v21   ;;  %978 = vperm.xlu1 %4757, %v907_v22   ;;  %v920_v58 = vsel %vm856_vm2, 1, %v7929_v6  ;;  %v5193_v60 = vld [vmem:[%s5017_s8 + $0xa0] sm:$0xff]  ;;  %v5202_v63 = vld [vmem:[%s5017_s8 + $0x90] sm:$0xff]  ;;  %vm859_vm5 = vcmp.eq.s32.totalorder %v5196_v61, 0  ;;  %v5222_v4 = vld [vmem:[%s5017_s8 + $0xb8] sm:$0xff] }
  0x26   : > { %972 = vperm.xlu0 %4756, %v905_v23   ;;  %4711 = vmatpush.msrb.mxu3 %v4564_v8  ;;  %vm860_vm4 = vcmp.eq.s32.totalorder %v5193_v60, 0  ;;  %v5211_v0 = vld [vmem:[%s5011_s30 + $0x30] sm:$0xff]  ;;  %vm858_vm6 = vcmp.eq.s32.totalorder %v5202_v63, 0  ;;  %v923_v2 = vsel %vm859_vm5, 1, %v7929_v6  ;;  %v5231_v8 = vld [vmem:[%s5017_s8 + $0xa8] sm:$0xff]  ;;  %vm863_vm7 = vcmp.eq.s32.totalorder %v5222_v4, 0 }
  0x27   : > { %4549 = vmatmul.msk.f32.gmra.mxu3 %vm438_vm0, %v5075_v26  ;;  %v924_v1 = vsel %vm860_vm4, 1, %v7929_v6  ;;  %v922_v3 = vsel %vm858_vm6, 1, %v7929_v6  ;;  %v5225_v5 = vld [vmem:[%s5017_s8 + $0xb0] sm:$0xff]  ;;  %v5240_v9 = vld [vmem:[%s5011_s30 + $0x38] sm:$0xff]  ;;  %vm861_vm9 = vcmp.eq.s32.totalorder %v5231_v8, 0  ;;  %v927_v13 = vsel %vm863_vm7, 1, %v7929_v6 }
  0x28   : > { %4712 = vmatpush.msra.mxu3 %v4635_v36  ;;  %v5228_v7 = vld [vmem:[%s5011_s30 + $0x1b0] sm:$0xff]  ;;  %vm862_vm8 = vcmp.eq.s32.totalorder %v5225_v5, 0  ;;  %v925_v17 = vsel %vm861_vm9, 1, %v7929_v6  ;;  %v5254_v21 = vld [vmem:[%s5017_s8 + $0xc8] sm:$0xff]  ;;  %v5257_v22 = vld [vmem:[%s5011_s30 + $0x1b8] sm:$0xff] }
  0x29   : > { %v926_v14 = vsel %vm862_vm8, 1, %v7929_v6  ;;  %v5260_v23 = vld [vmem:[%s5017_s8 + $0xc0] sm:$0xff]  ;;  %vm865_vm11 = vcmp.eq.s32.totalorder %v5254_v21, 0  ;;  %v5280_v36 = vld [vmem:[%s5017_s8 + $0xe8] sm:$0xff] }
  0x2a   : > { %4713 = vmatpush.msra.mxu3 %v4634_v37  ;;  %4637 = vmatmul.msk.f32.gmra.mxu2 %vm438_vm0, %v5058_v20  ;;  %v5251_v20 = vld [vmem:[%s5017_s8 + $0xd0] sm:$0xff]  ;;  %vm864_vm12 = vcmp.eq.s32.totalorder %v5260_v23, 0  ;;  %v5283_v37 = vld [vmem:[%s5017_s8 + $0xe0] sm:$0xff]  ;;  %vm869_vm13 = vcmp.eq.s32.totalorder %v5280_v36, 0 }
  0x2b   : > { %4502 = vmatmul.msk.f32.gmra.mxu0 %vm438_vm0, %v5085_v28  ;;  %vm866_vm10 = vcmp.eq.s32.totalorder %v5251_v20, 0  ;;  %vm868_vm14 = vcmp.eq.s32.totalorder %v5283_v37, 0 }
  0x2c   : > { %4570 = vmatmul.msk.f32.gmra.mxu1 %vm438_vm0, %v5085_v28  ;;  %4714 = vmatpush.msra.mxu3 %v4633_v39  ;;  %v5289_v39 = vld [vmem:[%s5017_s8 + $0xd8] sm:$0xff] }
  0x2d   : > { %993 = vperm.xlu2 %4758, %v912_v29   ;;  %990 = vperm.xlu1 %4757, %v911_v30   ;;  %v930_v29 = vsel %vm866_vm10, 1, %v7929_v6  ;;  %v929_v30 = vsel %vm865_vm11, 1, %v7929_v6  ;;  %vm867_vm15 = vcmp.eq.s32.totalorder %v5289_v39, 0 }
  0x2e   : > { %987 = vperm.xlu0 %4756, %v910_v31   ;;  %4715 = vmatpush.msra.mxu3 %v4632_v43  ;;  %v928_v31 = vsel %vm864_vm12, 1, %v7929_v6  ;;  %v931_v43 = vsel %vm867_vm15, 1, %v7929_v6 }
  0x2f   : > { %4550 = vmatmul.msk.f32.gmra.mxu3 %vm438_vm0, %v5102_v34 }
  0x32   : > { %4638 = vmatmul.msk.f32.gmra.mxu2 %vm438_vm0, %v5085_v28  ;;  %v5269_v28 = vld [vmem:[%s5011_s30 + $0x40] sm:$0xff] }
  0x33   : > { %4503 = vmatmul.msk.f32.gmra.mxu0 %vm438_vm0, %v5118_v38 }
  0x34   : > { %4571 = vmatmul.msk.f32.gmra.mxu1 %vm438_vm0, %v5118_v38 }
  0x35   : > { %1002 = vperm.xlu2 %4758, %v915_v40   ;;  %999 = vperm.xlu1 %4757, %v914_v41   ;;  %v5298_v40 = vld [vmem:[%s5011_s30 + $0x48] sm:$0xff]  ;;  %v933_v41 = vsel %vm869_vm13, 1, %v7929_v6 }
  0x36   : > { %996 = vperm.xlu0 %4756, %v913_v42   ;;  %v932_v42 = vsel %vm868_vm14, 1, %v7929_v6 }
  0x37   : > { %4551 = vmatmul.msk.f32.gmra.mxu3 %vm438_vm0, %v5141_v46 }
  0x3a   : > { %4639 = vmatmul.msk.f32.gmra.mxu2 %vm438_vm0, %v5118_v38  ;;  %v5286_v38 = vld [vmem:[%s5011_s30 + $0x1c0] sm:$0xff] }
  0x3b   : > { %4504 = vmatmul.msk.f32.gmra.mxu0 %vm438_vm0, %v5153_v48 }
  0x3c   : > { %4572 = vmatmul.msk.f32.gmra.mxu1 %vm438_vm0, %v5153_v48 }
  0x3d   : > { %1011 = vperm.xlu2 %4758, %v918_v49   ;;  %1008 = vperm.xlu1 %4757, %v917_v50   ;;  %v5312_v49 = vld [vmem:[%s5017_s8 + $0xf8] sm:$0xff]  ;;  %v5315_v50 = vld [vmem:[%s5011_s30 + $0x1c8] sm:$0xff] }
  0x3e   : > { %1005 = vperm.xlu0 %4756, %v916_v51   ;;  %v5318_v51 = vld [vmem:[%s5017_s8 + $0xf0] sm:$0xff]  ;;  %vm871_vm2 = vcmp.eq.s32.totalorder %v5312_v49, 0 }
  0x3f   : > { %4552 = vmatmul.msk.f32.gmra.mxu3 %vm438_vm0, %v5170_v54  ;;  %vm870_vm3 = vcmp.eq.s32.totalorder %v5318_v51, 0 }
  0x42   : > { %4640 = vmatmul.msk.f32.gmra.mxu2 %vm438_vm0, %v5153_v48  ;;  %v5309_v48 = vld [vmem:[%s5017_s8 + $0x100] sm:$0xff] }
  0x43   : > { %4505 = vmatmul.msk.f32.gmra.mxu0 %vm438_vm0, %v5182_v56  ;;  %vm872_vm1 = vcmp.eq.s32.totalorder %v5309_v48, 0 }
  0x44   : > { %4573 = vmatmul.msk.f32.gmra.mxu1 %vm438_vm0, %v5182_v56 }
  0x45   : > { %1020 = vperm.xlu2 %4758, %v921_v57   ;;  %1017 = vperm.xlu1 %4757, %v920_v58   ;;  %v936_v57 = vsel %vm872_vm1, 1, %v7929_v6  ;;  %v935_v58 = vsel %vm871_vm2, 1, %v7929_v6 }
  0x46   : > { %1014 = vperm.xlu0 %4756, %v919_v59   ;;  %v934_v59 = vsel %vm870_vm3, 1, %v7929_v6 }
  0x47   : > { %4553 = vmatmul.msk.f32.gmra.mxu3 %vm438_vm0, %v5199_v62 }
  0x4a   : > { %4641 = vmatmul.msk.f32.gmra.mxu2 %vm438_vm0, %v5182_v56  ;;  %v5327_v56 = vld [vmem:[%s5011_s30 + $0x50] sm:$0xff] }
  0x4b   : > { %4506 = vmatmul.msk.f32.gmra.mxu0 %vm438_vm0, %v5211_v0 }
  0x4c   : > { %4574 = vmatmul.msk.f32.gmra.mxu1 %vm438_vm0, %v5211_v0 }
  0x4d   : > { %1029 = vperm.xlu2 %4758, %v924_v1   ;;  %1026 = vperm.xlu1 %4757, %v923_v2   ;;  %v5338_v1 = vld [vmem:[%s5017_s8 + $0x118] sm:$0xff]  ;;  %v5344_v2 = vld [vmem:[%s5011_s30 + $0x1d0] sm:$0xff] }
  0x4e   : > { %1023 = vperm.xlu0 %4756, %v922_v3   ;;  %7945 = vst [vmem:[#allocation5_spill] sm:$0xff] %v5338_v1  ;;  %v5347_v3 = vld [vmem:[%s5017_s8 + $0x108] sm:$0xff]  ;;  %vm875_vm4 = vcmp.eq.s32.totalorder %v5338_v1, 0 }
  0x4f   : > { %4554 = vmatmul.msk.f32.gmra.mxu3 %vm438_vm0, %v5228_v7  ;;  %vm873_vm6 = vcmp.eq.s32.totalorder %v5347_v3, 0 }
  0x52   : > { %4642 = vmatmul.msk.f32.gmra.mxu2 %vm438_vm0, %v5211_v0  ;;  %v5341_v0 = vld [vmem:[%s5017_s8 + $0x110] sm:$0xff] }
  0x53   : > { %4507 = vmatmul.msk.f32.gmra.mxu0 %vm438_vm0, %v5240_v9  ;;  %vm874_vm5 = vcmp.eq.s32.totalorder %v5341_v0, 0 }
  0x54   : > { %4575 = vmatmul.msk.f32.gmra.mxu1 %vm438_vm0, %v5240_v9 }
  0x55   : > { %1038 = vperm.xlu2 %4758, %v927_v13   ;;  %1035 = vperm.xlu1 %4757, %v926_v14   ;;  %v5356_v13 = vld [vmem:[%s5011_s30 + $0x58] sm:$0xff]  ;;  %v939_v14 = vsel %vm875_vm4, 1, %v7929_v6 }
  0x56   : > { %1032 = vperm.xlu0 %4756, %v925_v17   ;;  %v938_v17 = vsel %vm874_vm5, 1, %v7929_v6 }
  0x57   : > { %4555 = vmatmul.msk.f32.gmra.mxu3 %vm438_vm0, %v5257_v22 }
  0x5a   : > { %4643 = vmatmul.msk.f32.gmra.mxu2 %vm438_vm0, %v5240_v9  ;;  %v5370_v9 = vld [vmem:[%s5017_s8 + $0x128] sm:$0xff] }
  0x5b   : > { %4508 = vmatmul.msk.f32.gmra.mxu0 %vm438_vm0, %v5269_v28  ;;  %7947 = vst [vmem:[#allocation7_spill] sm:$0xff] %v5370_v9  ;;  %vm877_vm8 = vcmp.eq.s32.totalorder %v5370_v9, 0 }
  0x5c   : > { %4576 = vmatmul.msk.f32.gmra.mxu1 %vm438_vm0, %v5269_v28 }
  0x5d   : > { %1047 = vperm.xlu2 %4758, %v930_v29   ;;  %1044 = vperm.xlu1 %4757, %v929_v30   ;;  %v937_v29 = vsel %vm873_vm6, 1, %v7929_v6  ;;  %v5367_v30 = vld [vmem:[%s5017_s8 + $0x130] sm:$0xff] }
  0x5e   : > { %1041 = vperm.xlu0 %4756, %v928_v31   ;;  %7946 = vst [vmem:[#allocation6_spill] sm:$0xff] %v5367_v30  ;;  %v5373_v31 = vld [vmem:[%s5011_s30 + $0x1d8] sm:$0xff]  ;;  %vm878_vm7 = vcmp.eq.s32.totalorder %v5367_v30, 0  ;;  %v5435_v30 = vld [vmem:[%s5011_s30 + $0x1e8] sm:$0xff] }
  0x5f   : > { %4556 = vmatmul.msk.f32.gmra.mxu3 %vm438_vm0, %v5286_v38 }
  0x62   : > { %4644 = vmatmul.msk.f32.gmra.mxu2 %vm438_vm0, %v5269_v28  ;;  %v5401_v28 = vld [vmem:[%s5017_s8 + $0x140] sm:$0xff] }
  0x63   : > { %4509 = vmatmul.msk.f32.gmra.mxu0 %vm438_vm0, %v5298_v40  ;;  %7951 = vst [vmem:[#allocation11_spill] sm:$0xff] %v5401_v28  ;;  %vm880_vm11 = vcmp.eq.s32.totalorder %v5401_v28, 0 }
  0x64   : > { %4577 = vmatmul.msk.f32.gmra.mxu1 %vm438_vm0, %v5298_v40 }
  0x65   : > { %1056 = vperm.xlu2 %4758, %v933_v41   ;;  %1053 = vperm.xlu1 %4757, %v932_v42   ;;  %v5376_v41 = vld [vmem:[%s5017_s8 + $0x120] sm:$0xff] }
  0x66   : > { %1050 = vperm.xlu0 %4756, %v931_v43   ;;  %7948 = vst [vmem:[#allocation8_spill] sm:$0xff] %v5376_v41  ;;  %v5387_v43 = vld [vmem:[%s5011_s30 + $0x60] sm:$0xff]  ;;  %vm876_vm9 = vcmp.eq.s32.totalorder %v5376_v41, 0 }
  0x67   : > { %4557 = vmatmul.msk.f32.gmra.mxu3 %vm438_vm0, %v5315_v50 }
  0x6a   : > { %4645 = vmatmul.msk.f32.gmra.mxu2 %vm438_vm0, %v5298_v40  ;;  %v5432_v40 = vld [vmem:[%s5017_s8 + $0x158] sm:$0xff] }
  0x6b   : > { %4510 = vmatmul.msk.f32.gmra.mxu0 %vm438_vm0, %v5327_v56  ;;  %7955 = vst [vmem:[#allocation15_spill] sm:$0xff] %v5432_v40  ;;  %vm883_vm14 = vcmp.eq.s32.totalorder %v5432_v40, 0  ;;  %v5466_v40 = vld [vmem:[%s5011_s30 + $0x1f0] sm:$0xff] }
  0x6c   : > { %4578 = vmatmul.msk.f32.gmra.mxu1 %vm438_vm0, %v5327_v56 }
  0x6d   : > { %1065 = vperm.xlu2 %4758, %v936_v57   ;;  %1062 = vperm.xlu1 %4757, %v935_v58   ;;  %v942_v57 = vsel %vm878_vm7, 1, %v7929_v6  ;;  %v941_v58 = vsel %vm877_vm8, 1, %v7929_v6 }
  0x6e   : > { %1059 = vperm.xlu0 %4756, %v934_v59   ;;  %v940_v59 = vsel %vm876_vm9, 1, %v7929_v6 }
  0x6f   : > { %4558 = vmatmul.msk.f32.gmra.mxu3 %vm438_vm0, %v5344_v2 }
  0x72   : > { %4646 = vmatmul.msk.f32.gmra.mxu2 %vm438_vm0, %v5327_v56  ;;  %v5463_v56 = vld [vmem:[%s5017_s8 + $0x170] sm:$0xff] }
  0x73   : > { %4511 = vmatmul.msk.f32.gmra.mxu0 %vm438_vm0, %v5356_v13  ;;  %7959 = vst [vmem:[#allocation19_spill] sm:$0xff] %v5463_v56  ;;  %vm886_vm2 = vcmp.eq.s32.totalorder %v5463_v56, 0 }
  0x74   : > { %4579 = vmatmul.msk.f32.gmra.mxu1 %vm438_vm0, %v5356_v13 }
  0x75   : > { %1074 = vperm.xlu2 %4758, %v939_v14   ;;  %1071 = vperm.xlu1 %4757, %v938_v17   ;;  %v5398_v14 = vld [vmem:[%s5017_s8 + $0x148] sm:$0xff]  ;;  %v5404_v17 = vld [vmem:[%s5011_s30 + $0x1e0] sm:$0xff] }
  0x76   : > { %1068 = vperm.xlu0 %4756, %v937_v29   ;;  %7950 = vst [vmem:[#allocation10_spill] sm:$0xff] %v5398_v14  ;;  %v5407_v29 = vld [vmem:[%s5017_s8 + $0x138] sm:$0xff]  ;;  %vm881_vm10 = vcmp.eq.s32.totalorder %v5398_v14, 0  ;;  %v5429_v14 = vld [vmem:[%s5017_s8 + $0x160] sm:$0xff] }
  0x77   : > { %v5378_v42 = vpop.permute.xlu2 %981  ;;  %4559 = vmatmul.msk.f32.gmra.mxu3 %vm438_vm0, %v5373_v31  ;;  %7952 = vst [vmem:[#allocation12_spill] sm:$0xff] %v5407_v29  ;;  %vm879_vm12 = vcmp.eq.s32.totalorder %v5407_v29, 0  ;;  %v5438_v29 = vld [vmem:[%s5017_s8 + $0x150] sm:$0xff]  ;;  %vm884_vm13 = vcmp.eq.s32.totalorder %v5429_v14, 0 }
  0x78   : > { %7949 = vst [vmem:[#allocation9_spill] sm:$0xff] %v5378_v42  ;;  %vm882_vm15 = vcmp.eq.s32.totalorder %v5438_v29, 0 }
  0x79   : > { %7954 = vst [vmem:[#allocation14_spill] sm:$0xff] %v5429_v14  ;;  %v5460_v14 = vld [vmem:[%s5017_s8 + $0x178] sm:$0xff] }
  0x7a   : > { %7956 = vst [vmem:[#allocation16_spill] sm:$0xff] %v5438_v29  ;;  %v5469_v29 = vld [vmem:[%s5017_s8 + $0x168] sm:$0xff]  ;;  %vm887_vm1 = vcmp.eq.s32.totalorder %v5460_v14, 0  ;;  %4647 = vmatmul.msk.f32.gmra.mxu2 %vm438_vm0, %v5356_v13  ;;  %v5495_v13 = vld [vmem:[%s5017_s8 + $0x190] sm:$0xff] }
  0x7b   : > { %4512 = vmatmul.msk.f32.gmra.mxu0 %vm438_vm0, %v5387_v43  ;;  %7958 = vst [vmem:[#allocation18_spill] sm:$0xff] %v5460_v14  ;;  %vm885_vm3 = vcmp.eq.s32.totalorder %v5469_v29, 0  ;;  %v5501_v14 = vld [vmem:[%s5017_s8 + $0x180] sm:$0xff]  ;;  %vm890_vm4 = vcmp.eq.s32.totalorder %v5495_v13, 0 }
  0x7c   : > { %4580 = vmatmul.msk.f32.gmra.mxu1 %vm438_vm0, %v5387_v43  ;;  %7960 = vst [vmem:[#allocation20_spill] sm:$0xff] %v5469_v29  ;;  %v5504_v29 = vld [vmem:[%s5011_s30 + $0x1f8] sm:$0xff]  ;;  %vm888_vm6 = vcmp.eq.s32.totalorder %v5501_v14, 0 }
  0x7d   : > { %1083 = vperm.xlu2 %4758, %v942_v57   ;;  %1080 = vperm.xlu1 %4757, %v941_v58   ;;  %v5418_v57 = vld [vmem:[%s5011_s30 + $0x68] sm:$0xff]  ;;  %v945_v58 = vsel %vm881_vm10, 1, %v7929_v6  ;;  %7964 = vst [vmem:[#allocation24_spill] sm:$0xff] %v5495_v13 }
  0x7e   : > { %1077 = vperm.xlu0 %4756, %v940_v59   ;;  %v944_v59 = vsel %vm880_vm11, 1, %v7929_v6  ;;  %7966 = vst [vmem:[#allocation26_spill] sm:$0xff] %v5501_v14 }
  0x7f   : > { %v5409_v42 = vpop.permute.xlu2 %984  ;;  %4560 = vmatmul.msk.f32.gmra.mxu3 %vm438_vm0, %v5404_v17 }
  0x80   : > { %7953 = vst [vmem:[#allocation13_spill] sm:$0xff] %v5409_v42  ;;  %v943_v42 = vsel %vm879_vm12, 1, %v7929_v6 }
  0x82   : > { %4648 = vmatmul.msk.f32.gmra.mxu2 %vm438_vm0, %v5387_v43 }
  0x83   : > { %4513 = vmatmul.msk.f32.gmra.mxu0 %vm438_vm0, %v5418_v57 }
  0x84   : > { %4581 = vmatmul.msk.f32.gmra.mxu1 %vm438_vm0, %v5418_v57 }
  0x85   : > { %1092 = vperm.xlu2 %4758, %v945_v58   ;;  %1089 = vperm.xlu1 %4757, %v944_v59   ;;  %v5449_v58 = vld [vmem:[%s5011_s30 + $0x70] sm:$0xff]  ;;  %v948_v59 = vsel %vm884_vm13, 1, %v7929_v6 }
  0x86   : > { %1086 = vperm.xlu0 %4756, %v943_v42   ;;  %v947_v42 = vsel %vm883_vm14, 1, %v7929_v6 }
  0x87   : > { %v5440_v28 = vpop.permute.xlu2 %993  ;;  %4561 = vmatmul.msk.f32.gmra.mxu3 %vm438_vm0, %v5435_v30 }
  0x88   : > { %7957 = vst [vmem:[#allocation17_spill] sm:$0xff] %v5440_v28  ;;  %v946_v28 = vsel %vm882_vm15, 1, %v7929_v6 }
  0x8a   : > { %4649 = vmatmul.msk.f32.gmra.mxu2 %vm438_vm0, %v5418_v57  ;;  %v5572_v57 = vld [vmem:[%s5017_s8 + $0x1c0] sm:$0xff] }
  0x8b   : > { %4514 = vmatmul.msk.f32.gmra.mxu0 %vm438_vm0, %v5449_v58  ;;  %7981 = vst [vmem:[#allocation40_spill] sm:$0xff] %v5572_v57  ;;  %vm896_vm10 = vcmp.eq.s32.totalorder %v5572_v57, 0 }
  0x8c   : > { %4582 = vmatmul.msk.f32.gmra.mxu1 %vm438_vm0, %v5449_v58 }
  0x8d   : > { %1101 = vperm.xlu2 %4758, %v948_v59   ;;  %1098 = vperm.xlu1 %4757, %v947_v42   ;;  %v951_v42 = vsel %vm887_vm1, 1, %v7929_v6 }
  0x8e   : > { %1095 = vperm.xlu0 %4756, %v946_v28   ;;  %v5484_v28 = vld [vmem:[%s5011_s30 + $0x78] sm:$0xff] }
  0x8f   : > { %v5471_v1 = vpop.permute.xlu2 %1002  ;;  %v5473_v41 = vpop.permute.xlu1 %975  ;;  %4562 = vmatmul.msk.f32.gmra.mxu3 %vm438_vm0, %v5466_v40 }
  0x90   : > { %7961 = vst [vmem:[#allocation21_spill] sm:$0xff] %v5471_v1  ;;  %v5481_v59 = vpop.permute.xlu0 %969  ;;  %v950_v1 = vsel %vm886_vm2, 1, %v7929_v6 }
  0x91   : > { %7962 = vst [vmem:[#allocation22_spill] sm:$0xff] %v5473_v41  ;;  %v949_v41 = vsel %vm885_vm3, 1, %v7929_v6 }
  0x92   : > { %7963 = vst [vmem:[#allocation23_spill] sm:$0xff] %v5481_v59  ;;  %v5498_v59 = vld [vmem:[%s5017_s8 + $0x188] sm:$0xff]  ;;  %4650 = vmatmul.msk.f32.gmra.mxu2 %vm438_vm0, %v5449_v58  ;;  %v5610_v58 = vld [vmem:[%s5017_s8 + $0x1d8] sm:$0xff] }
  0x93   : > { %4515 = vmatmul.msk.f32.gmra.mxu0 %vm438_vm0, %v5484_v28  ;;  %7965 = vst [vmem:[#allocation25_spill] sm:$0xff] %v5498_v59  ;;  %vm889_vm5 = vcmp.eq.s32.totalorder %v5498_v59, 0  ;;  %vm899_vm13 = vcmp.eq.s32.totalorder %v5610_v58, 0 }
  0x94   : > { %4583 = vmatmul.msk.f32.gmra.mxu1 %vm438_vm0, %v5484_v28  ;;  %7989 = vst [vmem:[#allocation48_spill] sm:$0xff] %v5610_v58 }
  0x95   : > { %1110 = vperm.xlu2 %4758, %v951_v42   ;;  %1107 = vperm.xlu1 %4757, %v950_v1   ;;  %v5521_v42 = vld [vmem:[%s5011_s30 + $0x80] sm:$0xff] }
  0x96   : > { %1104 = vperm.xlu0 %4756, %v949_v41  }
  0x97   : > { %v5506_v56 = vpop.permute.xlu2 %1011  ;;  %v5508_v9 = vpop.permute.xlu1 %978  ;;  %4563 = vmatmul.msk.f32.gmra.mxu3 %vm438_vm0, %v5504_v29 }
  0x98   : > { %7967 = vst [vmem:[#allocation27_spill] sm:$0xff] %v5506_v56  ;;  %v5516_v1 = vpop.permute.xlu0 %972  ;;  %v5518_v41 = vpop.f32.mrf.mxu0  ;;  %v7972_v56 = vmov 0  }
  0x99   : > { %7968 = vst [vmem:[#allocation28_spill] sm:$0xff] %v5508_v9  ;;  %v5524_v6 = vpop.f32.mrf.mxu1  ;;  %v954_v9 = vsel %vm890_vm4, 1, %v7972_v56  ;;  %v953_v13 = vsel %vm889_vm5, 1, %v7972_v56  ;;  %v952_v43 = vsel %vm888_vm6, 1, %v7972_v56  ;;  %vm1503_vm4 = vcmp.eq.s32.totalorder %v5048_v18, 1 }
  0x9a   : > { %7969 = vst [vmem:[#allocation29_spill] sm:$0xff] %v5516_v1  ;;  %v5534_v1 = vld [vmem:[%s5017_s8 + $0x1a8] sm:$0xff]  ;;  %4651 = vmatmul.msk.f32.gmra.mxu2 %vm438_vm0, %v5484_v28  ;;  %v5648_v28 = vld [vmem:[%s5017_s8 + $0x1f0] sm:$0xff]  ;;  %vm1502_vm5 = vcmp.eq.s32.totalorder %v5035_v12, 1  ;;  %v1567_v18 = vsel %vm1503_vm4, 1, %v7972_v56  ;;  %vm1518_vm4 = vcmp.eq.s32.totalorder %v5167_v53, 1 }
  0x9b   : > { %7970 = vst [vmem:[#allocation30_spill] sm:$0xff] %v5518_v41  ;;  %4516 = vmatmul.msk.f32.gmra.mxu0 %vm438_vm0, %v5521_v42  ;;  %v5537_v41 = vld [vmem:[%s5017_s8 + $0x1a0] sm:$0xff]  ;;  %vm893_vm7 = vcmp.eq.s32.totalorder %v5534_v1, 0  ;;  %vm902_vm1 = vcmp.eq.s32.totalorder %v5648_v28, 0  ;;  %v1566_v12 = vsel %vm1502_vm5, 1, %v7972_v56  ;;  %vm1517_vm5 = vcmp.eq.s32.totalorder %v5173_v55, 1 }
  0x9c   : > { %7971 = vst [vmem:[#allocation31_spill] sm:$0xff] %v5524_v6  ;;  %4584 = vmatmul.msk.f32.gmra.mxu1 %vm438_vm0, %v5521_v42  ;;  %v5540_v6 = vld [vmem:[%s5017_s8 + $0x198] sm:$0xff]  ;;  %vm892_vm8 = vcmp.eq.s32.totalorder %v5537_v41, 0  ;;  %v1582_v53 = vsel %vm1518_vm4, 1, %v7972_v56  ;;  %v1581_v55 = vsel %vm1517_vm5, 1, %v7972_v56  ;;  %vm1533_vm4 = vcmp.eq.s32.totalorder %v5312_v49, 1 }
  0x9d   : > { %7973 = vst [vmem:[#allocation32_spill] sm:$0xff] %v5534_v1  ;;  %1119 = vperm.xlu2 %4758, %v954_v9   ;;  %1116 = vperm.xlu1 %4757, %v953_v13   ;;  %vm891_vm9 = vcmp.eq.s32.totalorder %v5540_v6, 0  ;;  %v956_v1 = vsel %vm892_vm8, 1, %v7972_v56  ;;  %vm1505_vm8 = vcmp.eq.s32.totalorder %v5044_v16, 1  ;;  %vm1532_vm5 = vcmp.eq.s32.totalorder %v5318_v51, 1 }
  0x9e   : > { %7974 = vst [vmem:[#allocation33_spill] sm:$0xff] %v5537_v41  ;;  %1113 = vperm.xlu0 %4756, %v952_v43   ;;  %v5557_v43 = vld [vmem:[%s5011_s30 + $0x88] sm:$0xff]  ;;  %v1569_v16 = vsel %vm1505_vm8, 1, %v7972_v56  ;;  %vm1520_vm8 = vcmp.eq.s32.totalorder %v5202_v63, 1  ;;  %v1597_v49 = vsel %vm1533_vm4, 1, %v7972_v56  ;;  %v1596_v51 = vsel %vm1532_vm5, 1, %v7972_v56 }
  0x9f   : > { %v5542_v14 = vpop.permute.xlu2 %1020  ;;  %v5544_v59 = vpop.permute.xlu1 %990  ;;  %4616 = vmatmul.msk.f32.vlgmr.msrb.gmra.mxu3 %vm438_vm0, %v5051_v19  ;;  %v955_v19 = vsel %vm891_vm9, 1, %v7972_v56  ;;  %7997 = vst [vmem:[#allocation56_spill] sm:$0xff] %v5648_v28  ;;  %vm1504_vm9 = vcmp.eq.s32.totalorder %v5026_v11, 1  ;;  %v1584_v63 = vsel %vm1520_vm8, 1, %v7972_v56  ;;  %vm1535_vm8 = vcmp.eq.s32.totalorder %v5347_v3, 1 }
  0xa0   : > { %7975 = vst [vmem:[#allocation34_spill] sm:$0xff] %v5542_v14  ;;  %v5552_v9 = vpop.permute.xlu0 %987  ;;  %v5554_v13 = vpop.f32.mrf.mxu0  ;;  %v1599_v3 = vsel %vm1535_vm8, 1, %v7972_v56 }
  0xa1   : > { %7976 = vst [vmem:[#allocation35_spill] sm:$0xff] %v5544_v59  ;;  %v5560_v14 = vpop.f32.mrf.mxu1  ;;  %v957_v59 = vsel %vm893_vm7, 1, %v7972_v56  ;;  %vm1506_vm7 = vcmp.eq.s32.totalorder %v5023_v10, 1 }
  0xa2   : > { %7977 = vst [vmem:[#allocation36_spill] sm:$0xff] %v5552_v9  ;;  %v5564_v41 = vpop.f32.mrf.mxu3  ;;  %v5575_v9 = vld [vmem:[%s5017_s8 + $0x1b8] sm:$0xff]  ;;  %4652 = vmatmul.msk.f32.gmra.mxu2 %vm438_vm0, %v5521_v42  ;;  %v1570_v10 = vsel %vm1506_vm7, 1, %v7972_v56  ;;  %vm1521_vm7 = vcmp.eq.s32.totalorder %v5196_v61, 1 }
  0xa3   : > { %7978 = vst [vmem:[#allocation37_spill] sm:$0xff] %v5554_v13  ;;  %4517 = vmatmul.msk.f32.gmra.mxu0 %vm438_vm0, %v5557_v43  ;;  %vm895_vm11 = vcmp.eq.s32.totalorder %v5575_v9, 0  ;;  %v1585_v61 = vsel %vm1521_vm7, 1, %v7972_v56  ;;  %vm1536_vm7 = vcmp.eq.s32.totalorder %v5341_v0, 1 }
  0xa4   : > { %7979 = vst [vmem:[#allocation38_spill] sm:$0xff] %v5560_v14  ;;  %4585 = vmatmul.msk.f32.gmra.mxu1 %vm438_vm0, %v5557_v43  ;;  %v5578_v14 = vld [vmem:[%s5017_s8 + $0x1b0] sm:$0xff]  ;;  %v959_v57 = vsel %vm895_vm11, 1, %v7972_v56  ;;  %vm1508_vm11 = vcmp.eq.s32.totalorder %v5078_v27, 1  ;;  %v1600_v0 = vsel %vm1536_vm7, 1, %v7972_v56 }
  0xa5   : > { %7980 = vst [vmem:[#allocation39_spill] sm:$0xff] %v5564_v41  ;;  %1128 = vperm.xlu2 %4758, %v957_v59   ;;  %1125 = vperm.xlu1 %4757, %v956_v1   ;;  %vm894_vm12 = vcmp.eq.s32.totalorder %v5578_v14, 0  ;;  %v5680_v42 = vpop.f32.mrf.mxu2  ;;  %v1572_v27 = vsel %vm1508_vm11, 1, %v7972_v56  ;;  %vm1523_vm11 = vcmp.eq.s32.totalorder %v5231_v8, 1 }
  0xa6   : > { %7982 = vst [vmem:[#allocation41_spill] sm:$0xff] %v5575_v9  ;;  %1122 = vperm.xlu0 %4756, %v955_v19   ;;  %v5595_v19 = vld [vmem:[%s5011_s30 + $0x90] sm:$0xff]  ;;  %v1587_v8 = vsel %vm1523_vm11, 1, %v7972_v56 }
  0xa7   : > { %v5580_v13 = vpop.permute.xlu2 %1029  ;;  %v5582_v41 = vpop.permute.xlu1 %999  ;;  %4617 = vmatmul.msk.f32.gmra.mxu3 %vm438_vm0, %v5075_v26  ;;  %v958_v26 = vsel %vm894_vm12, 1, %v7972_v56  ;;  %vm1507_vm12 = vcmp.eq.s32.totalorder %v5041_v15, 1 }
  0xa8   : > { %7983 = vst [vmem:[#allocation42_spill] sm:$0xff] %v5580_v13  ;;  %v5590_v59 = vpop.permute.xlu0 %996  ;;  %v5592_v1 = vpop.f32.mrf.mxu0  ;;  %v960_v13 = vsel %vm896_vm10, 1, %v7972_v56  ;;  %vm1509_vm10 = vcmp.eq.s32.totalorder %v5072_v25, 1 }
  0xa9   : > { %7984 = vst [vmem:[#allocation43_spill] sm:$0xff] %v5582_v41  ;;  %v5598_v41 = vpop.f32.mrf.mxu1  ;;  %v1573_v25 = vsel %vm1509_vm10, 1, %v7972_v56  ;;  %vm1524_vm10 = vcmp.eq.s32.totalorder %v5225_v5, 1 }
  0xaa   : > { %7985 = vst [vmem:[#allocation44_spill] sm:$0xff] %v5590_v59  ;;  %v5602_v9 = vpop.f32.mrf.mxu3  ;;  %v5613_v59 = vld [vmem:[%s5017_s8 + $0x1d0] sm:$0xff]  ;;  %4653 = vmatmul.msk.f32.gmra.mxu2 %vm438_vm0, %v5557_v43  ;;  %v1588_v5 = vsel %vm1524_vm10, 1, %v7972_v56 }
  0xab   : > { %7986 = vst [vmem:[#allocation45_spill] sm:$0xff] %v5592_v1  ;;  %4518 = vmatmul.msk.f32.gmra.mxu0 %vm438_vm0, %v5595_v19  ;;  %vm898_vm14 = vcmp.eq.s32.totalorder %v5613_v59, 0 }
  0xac   : > { %7987 = vst [vmem:[#allocation46_spill] sm:$0xff] %v5598_v41  ;;  %4586 = vmatmul.msk.f32.gmra.mxu1 %vm438_vm0, %v5595_v19  ;;  %v5616_v41 = vld [vmem:[%s5017_s8 + $0x1c8] sm:$0xff]  ;;  %v962_v58 = vsel %vm898_vm14, 1, %v7972_v56  ;;  %vm1511_vm14 = vcmp.eq.s32.totalorder %v5105_v35, 1 }
  0xad   : > { %7988 = vst [vmem:[#allocation47_spill] sm:$0xff] %v5602_v9  ;;  %1137 = vperm.xlu2 %4758, %v960_v13   ;;  %1134 = vperm.xlu1 %4757, %v959_v57   ;;  %vm897_vm15 = vcmp.eq.s32.totalorder %v5616_v41, 0  ;;  %v5714_v43 = vpop.f32.mrf.mxu2  ;;  %v1575_v35 = vsel %vm1511_vm14, 1, %v7972_v56  ;;  %vm1526_vm14 = vcmp.eq.s32.totalorder %v5260_v23, 1 }
  0xae   : > { %7990 = vst [vmem:[#allocation49_spill] sm:$0xff] %v5613_v59  ;;  %1131 = vperm.xlu0 %4756, %v958_v26   ;;  %v5633_v26 = vld [vmem:[%s5011_s30 + $0x98] sm:$0xff]  ;;  %v1590_v23 = vsel %vm1526_vm14, 1, %v7972_v56 }
  0xaf   : > { %v5618_v1 = vpop.permute.xlu2 %1038  ;;  %v5620_v9 = vpop.permute.xlu1 %1008  ;;  %4618 = vmatmul.msk.f32.gmra.mxu3 %vm438_vm0, %v5102_v34  ;;  %v961_v34 = vsel %vm897_vm15, 1, %v7972_v56  ;;  %vm1510_vm15 = vcmp.eq.s32.totalorder %v5069_v24, 1 }
  0xb0   : > { %7991 = vst [vmem:[#allocation50_spill] sm:$0xff] %v5618_v1  ;;  %v5628_v13 = vpop.permute.xlu0 %1005  ;;  %v5630_v57 = vpop.f32.mrf.mxu0  ;;  %v963_v1 = vsel %vm899_vm13, 1, %v7972_v56  ;;  %vm1512_vm13 = vcmp.eq.s32.totalorder %v5099_v33, 1 }
  0xb1   : > { %7992 = vst [vmem:[#allocation51_spill] sm:$0xff] %v5620_v9  ;;  %v5636_v9 = vpop.f32.mrf.mxu1  ;;  %v1576_v33 = vsel %vm1512_vm13, 1, %v7972_v56  ;;  %vm1527_vm13 = vcmp.eq.s32.totalorder %v5254_v21, 1 }
  0xb2   : > { %7993 = vst [vmem:[#allocation52_spill] sm:$0xff] %v5628_v13  ;;  %v5640_v59 = vpop.f32.mrf.mxu3  ;;  %v5651_v13 = vld [vmem:[%s5017_s8 + $0x1e8] sm:$0xff]  ;;  %4654 = vmatmul.msk.f32.gmra.mxu2 %vm438_vm0, %v5595_v19  ;;  %v1591_v21 = vsel %vm1527_vm13, 1, %v7972_v56 }
  0xb3   : > { %7994 = vst [vmem:[#allocation53_spill] sm:$0xff] %v5630_v57  ;;  %4519 = vmatmul.msk.f32.gmra.mxu0 %vm438_vm0, %v5633_v26  ;;  %vm901_vm2 = vcmp.eq.s32.totalorder %v5651_v13, 0 }
  0xb4   : > { %7995 = vst [vmem:[#allocation54_spill] sm:$0xff] %v5636_v9  ;;  %4587 = vmatmul.msk.f32.gmra.mxu1 %vm438_vm0, %v5633_v26  ;;  %v5654_v9 = vld [vmem:[%s5017_s8 + $0x1e0] sm:$0xff]  ;;  %v965_v28 = vsel %vm901_vm2, 1, %v7972_v56  ;;  %vm1514_vm2 = vcmp.eq.s32.totalorder %v5144_v47, 1 }
  0xb5   : > { %7996 = vst [vmem:[#allocation55_spill] sm:$0xff] %v5640_v59  ;;  %1146 = vperm.xlu2 %4758, %v963_v1   ;;  %1143 = vperm.xlu1 %4757, %v962_v58   ;;  %vm900_vm3 = vcmp.eq.s32.totalorder %v5654_v9, 0  ;;  %v5745_v19 = vpop.f32.mrf.mxu2  ;;  %v1578_v47 = vsel %vm1514_vm2, 1, %v7972_v56  ;;  %vm1529_vm2 = vcmp.eq.s32.totalorder %v5289_v39, 1 }
  0xb6   : > { %7998 = vst [vmem:[#allocation57_spill] sm:$0xff] %v5651_v13  ;;  %1140 = vperm.xlu0 %4756, %v961_v34   ;;  %v5671_v34 = vld [vmem:[%s5011_s30 + $0xa0] sm:$0xff]  ;;  %v1593_v39 = vsel %vm1529_vm2, 1, %v7972_v56 }
  0xb7   : > { %v5656_v57 = vpop.permute.xlu2 %1047  ;;  %v5658_v59 = vpop.permute.xlu1 %1017  ;;  %4619 = vmatmul.msk.f32.gmra.mxu3 %vm438_vm0, %v5141_v46  ;;  %v964_v46 = vsel %vm900_vm3, 1, %v7972_v56  ;;  %vm1513_vm3 = vcmp.eq.s32.totalorder %v5096_v32, 1 }
  0xb8   : > { %7999 = vst [vmem:[#allocation58_spill] sm:$0xff] %v5656_v57  ;;  %v5666_v1 = vpop.permute.xlu0 %1014  ;;  %v5668_v58 = vpop.f32.mrf.mxu0  ;;  %v966_v57 = vsel %vm902_vm1, 1, %v7972_v56  ;;  %vm1515_vm1 = vcmp.eq.s32.totalorder %v5138_v45, 1 }
  0xb9   : > { %8000 = vst [vmem:[#allocation59_spill] sm:$0xff] %v5658_v59  ;;  %v5674_v59 = vpop.f32.mrf.mxu1  ;;  %v1579_v45 = vsel %vm1515_vm1, 1, %v7972_v56  ;;  %vm1530_vm1 = vcmp.eq.s32.totalorder %v5283_v37, 1 }
  0xba   : > { %8001 = vst [vmem:[#allocation60_spill] sm:$0xff] %v5666_v1  ;;  %v5678_v13 = vpop.f32.mrf.mxu3  ;;  %v5688_v1 = vld [vmem:[%s5017_s8 + $0x1f8] sm:$0xff]  ;;  %4655 = vmatmul.msk.f32.gmra.mxu2 %vm438_vm0, %v5633_v26  ;;  %v1594_v37 = vsel %vm1530_vm1, 1, %v7972_v56 }
  0xbb   : > { %8002 = vst [vmem:[#allocation61_spill] sm:$0xff] %v5668_v58  ;;  %4520 = vmatmul.msk.f32.gmra.mxu0 %vm438_vm0, %v5671_v34  ;;  %vm903_vm6 = vcmp.eq.s32.totalorder %v5688_v1, 0 }
  0xbc   : > { %8003 = vst [vmem:[#allocation62_spill] sm:$0xff] %v5674_v59  ;;  %4588 = vmatmul.msk.f32.gmra.mxu1 %vm438_vm0, %v5671_v34 }
  0xbd   : > { %8004 = vst [vmem:[#allocation63_spill] sm:$0xff] %v5678_v13  ;;  %1155 = vperm.xlu2 %4758, %v966_v57   ;;  %1152 = vperm.xlu1 %4757, %v965_v28   ;;  %v5705_v28 = vld [vmem:[%s5011_s30 + $0xa8] sm:$0xff] }
  0xbe   : > { %1149 = vperm.xlu0 %4756, %v964_v46  }
  0xbf   : > { %v5690_v59 = vpop.permute.xlu2 %1056  ;;  %v5692_v58 = vpop.permute.xlu1 %1026  ;;  %4620 = vmatmul.msk.f32.gmra.mxu3 %vm438_vm0, %v5170_v54  ;;  %v967_v54 = vsel %vm903_vm6, 1, %v7972_v56  ;;  %vm1516_vm6 = vcmp.eq.s32.totalorder %v5135_v44, 1 }
  0xc0   : > { %8005 = vst [vmem:[#allocation64_spill] sm:$0xff] %v5692_v58  ;;  %v5700_v13 = vpop.permute.xlu0 %1023  ;;  %v5702_v57 = vpop.f32.mrf.mxu0 }
  0xc1   : > { %8006 = vst [vmem:[#allocation65_spill] sm:$0xff] %v5700_v13  ;;  %v5708_v46 = vpop.f32.mrf.mxu1 }
  0xc2   : > { %8007 = vst [vmem:[#allocation66_spill] sm:$0xff] %v5702_v57  ;;  %v5712_v58 = vpop.f32.mrf.mxu3  ;;  %4656 = vmatmul.msk.f32.gmra.mxu2 %vm438_vm0, %v5671_v34 }
  0xc3   : > { %8008 = vst [vmem:[#allocation67_spill] sm:$0xff] %v5708_v46  ;;  %4521 = vmatmul.msk.f32.gmra.mxu0 %vm438_vm0, %v5705_v28 }
  0xc4   : > { %8009 = vst [vmem:[#allocation68_spill] sm:$0xff] %v5712_v58  ;;  %4589 = vmatmul.msk.f32.gmra.mxu1 %vm438_vm0, %v5705_v28 }
  0xc5   : > { %1634 = vperm.xlu2 %4758, %v1567_v18   ;;  %1631 = vperm.xlu1 %4757, %v1566_v12   ;;  %v5736_v18 = vld [vmem:[%s5011_s30 + $0xb0] sm:$0xff] }
  0xc6   : > { %1158 = vperm.xlu0 %4756, %v967_v54  }
  0xc7   : > { %v5721_v13 = vpop.permute.xlu2 %1065  ;;  %v5723_v46 = vpop.permute.xlu1 %1035  ;;  %4621 = vmatmul.msk.f32.gmra.mxu3 %vm438_vm0, %v5199_v62  ;;  %v1568_v62 = vsel %vm1504_vm9, 1, %v7972_v56  ;;  %vm1519_vm9 = vcmp.eq.s32.totalorder %v5164_v52, 1 }
  0xc8   : > { %8010 = vst [vmem:[#allocation69_spill] sm:$0xff] %v5723_v46  ;;  %v5731_v58 = vpop.permute.xlu0 %1032  ;;  %v5733_v57 = vpop.f32.mrf.mxu0 }
  0xc9   : > { %8011 = vst [vmem:[#allocation70_spill] sm:$0xff] %v5731_v58  ;;  %v5739_v12 = vpop.f32.mrf.mxu1 }
  0xca   : > { %8012 = vst [vmem:[#allocation71_spill] sm:$0xff] %v5733_v57  ;;  %v5743_v54 = vpop.f32.mrf.mxu3  ;;  %4657 = vmatmul.msk.f32.gmra.mxu2 %vm438_vm0, %v5705_v28  ;;  %v4775_v57 = vld [vmem:[%s5017_s8 + $0x28] sm:$0xff] }
  0xcb   : > { %8013 = vst [vmem:[#allocation72_spill] sm:$0xff] %v5739_v12  ;;  %4522 = vmatmul.msk.f32.gmra.mxu0 %vm438_vm0, %v5736_v18 }
  0xcc   : > { %8014 = vst [vmem:[#allocation73_spill] sm:$0xff] %v5743_v54  ;;  %4590 = vmatmul.msk.f32.gmra.mxu1 %vm438_vm0, %v5736_v18 }
  0xcd   : > { %1643 = vperm.xlu2 %4758, %v1570_v10   ;;  %1640 = vperm.xlu1 %4757, %v1569_v16   ;;  %v5767_v10 = vld [vmem:[%s5011_s30 + $0xb8] sm:$0xff] }
  0xce   : > { %1637 = vperm.xlu0 %4756, %v1568_v62   ;;  %v5774_v62 = vpop.f32.mrf.mxu2 }
  0xcf   : > { %v5752_v11 = vpop.permute.xlu2 %1074  ;;  %v5754_v58 = vpop.permute.xlu1 %1044  ;;  %4622 = vmatmul.msk.f32.gmra.mxu3 %vm438_vm0, %v5228_v7  ;;  %8015 = vst [vmem:[#allocation74_spill] sm:$0xff] %v5774_v62  ;;  %v1571_v7 = vsel %vm1507_vm12, 1, %v7972_v56  ;;  %vm1522_vm12 = vcmp.eq.s32.totalorder %v5193_v60, 1 }
  0xd0   : > { %v5762_v54 = vpop.permute.xlu0 %1041  ;;  %v5764_v46 = vpop.f32.mrf.mxu0 }
  0xd1   : > { %v5770_v16 = vpop.f32.mrf.mxu1 }
  0xd2   : > { %v5781_v26 = vpop.f32.mrf.mxu3  ;;  %4658 = vmatmul.msk.f32.gmra.mxu2 %vm438_vm0, %v5736_v18 }
  0xd3   : > { %4523 = vmatmul.msk.f32.gmra.mxu0 %vm438_vm0, %v5767_v10  ;;  %8016 = vst [vmem:[#allocation75_spill] sm:$0xff] %v5781_v26 }
  0xd4   : > { %4591 = vmatmul.msk.f32.gmra.mxu1 %vm438_vm0, %v5767_v10 }
  0xd5   : > { %1652 = vperm.xlu2 %4758, %v1573_v25   ;;  %1649 = vperm.xlu1 %4757, %v1572_v27   ;;  %v5798_v25 = vld [vmem:[%s5011_s30 + $0xc0] sm:$0xff] }
  0xd6   : > { %1646 = vperm.xlu0 %4756, %v1571_v7   ;;  %v5805_v7 = vpop.f32.mrf.mxu2 }
  0xd7   : > { %v5783_v15 = vpop.permute.xlu2 %1083  ;;  %v5785_v12 = vpop.permute.xlu1 %1053  ;;  %4623 = vmatmul.msk.f32.gmra.mxu3 %vm438_vm0, %v5257_v22  ;;  %v1574_v22 = vsel %vm1510_vm15, 1, %v7972_v56  ;;  %vm1525_vm15 = vcmp.eq.s32.totalorder %v5222_v4, 1 }
  0xd8   : > { %8017 = vst [vmem:[#allocation76_spill] sm:$0xff] %v5783_v15  ;;  %v5793_v62 = vpop.permute.xlu0 %1050  ;;  %v5795_v26 = vpop.f32.mrf.mxu0 }
  0xd9   : > { %8018 = vst [vmem:[#allocation77_spill] sm:$0xff] %v5795_v26  ;;  %v5801_v27 = vpop.f32.mrf.mxu1 }
  0xda   : > { %8019 = vst [vmem:[#allocation78_spill] sm:$0xff] %v5801_v27  ;;  %v5812_v24 = vpop.f32.mrf.mxu3  ;;  %4659 = vmatmul.msk.f32.gmra.mxu2 %vm438_vm0, %v5767_v10 }
  0xdb   : > { %4524 = vmatmul.msk.f32.gmra.mxu0 %vm438_vm0, %v5798_v25 }
  0xdc   : > { %4592 = vmatmul.msk.f32.gmra.mxu1 %vm438_vm0, %v5798_v25 }
  0xdd   : > { %1661 = vperm.xlu2 %4758, %v1576_v33   ;;  %1658 = vperm.xlu1 %4757, %v1575_v35   ;;  %v5829_v35 = vld [vmem:[%s5011_s30 + $0xc8] sm:$0xff] }
  0xde   : > { %1655 = vperm.xlu0 %4756, %v1574_v22  }
  0xdf   : > { %v5814_v34 = vpop.permute.xlu2 %1092  ;;  %v5816_v15 = vpop.permute.xlu1 %1062  ;;  %4624 = vmatmul.msk.f32.gmra.mxu3 %vm438_vm0, %v5286_v38  ;;  %v1577_v38 = vsel %vm1513_vm3, 1, %v7972_v56  ;;  %vm1528_vm3 = vcmp.eq.s32.totalorder %v5251_v20, 1 }
  0xe0   : > { %8020 = vst [vmem:[#allocation79_spill] sm:$0xff] %v5814_v34  ;;  %v5824_v27 = vpop.permute.xlu0 %1059  ;;  %v5826_v33 = vpop.f32.mrf.mxu0 }
  0xe1   : > { %8021 = vst [vmem:[#allocation80_spill] sm:$0xff] %v5826_v33  ;;  %v5832_v22 = vpop.f32.mrf.mxu1  ;;  %v5836_v34 = vpop.f32.mrf.mxu2 }
  0xe2   : > { %8022 = vst [vmem:[#allocation81_spill] sm:$0xff] %v5832_v22  ;;  %4660 = vmatmul.msk.f32.gmra.mxu2 %vm438_vm0, %v5798_v25 }
  0xe3   : > { %8023 = vst [vmem:[#allocation82_spill] sm:$0xff] %v5836_v34  ;;  %4525 = vmatmul.msk.f32.gmra.mxu0 %vm438_vm0, %v5829_v35 }
  0xe4   : > { %4593 = vmatmul.msk.f32.gmra.mxu1 %vm438_vm0, %v5829_v35 }
  0xe5   : > { %1670 = vperm.xlu2 %4758, %v1579_v45   ;;  %1667 = vperm.xlu1 %4757, %v1578_v47   ;;  %v5858_v45 = vld [vmem:[%s5011_s30 + $0xd0] sm:$0xff] }
  0xe6   : > { %1664 = vperm.xlu0 %4756, %v1577_v38   ;;  %v5863_v38 = vpop.f32.mrf.mxu3 }
  0xe7   : > { %v5843_v32 = vpop.permute.xlu2 %1101  ;;  %v5845_v28 = vpop.permute.xlu1 %1071  ;;  %4625 = vmatmul.msk.f32.gmra.mxu3 %vm438_vm0, %v5315_v50  ;;  %8027 = vst [vmem:[#allocation86_spill] sm:$0xff] %v5863_v38  ;;  %v1580_v50 = vsel %vm1516_vm6, 1, %v7972_v56  ;;  %vm1531_vm6 = vcmp.eq.s32.totalorder %v5280_v36, 1 }
  0xe8   : > { %8024 = vst [vmem:[#allocation83_spill] sm:$0xff] %v5843_v32  ;;  %v5853_v26 = vpop.permute.xlu0 %1068  ;;  %v5855_v34 = vpop.f32.mrf.mxu0 }
  0xe9   : > { %8025 = vst [vmem:[#allocation84_spill] sm:$0xff] %v5855_v34  ;;  %v5861_v47 = vpop.f32.mrf.mxu1  ;;  %v5867_v18 = vpop.f32.mrf.mxu2 }
  0xea   : > { %8026 = vst [vmem:[#allocation85_spill] sm:$0xff] %v5861_v47  ;;  %4661 = vmatmul.msk.f32.gmra.mxu2 %vm438_vm0, %v5829_v35 }
  0xeb   : > { %8028 = vst [vmem:[#allocation87_spill] sm:$0xff] %v5867_v18  ;;  %4526 = vmatmul.msk.f32.gmra.mxu0 %vm438_vm0, %v5858_v45 }
  0xec   : > { %4594 = vmatmul.msk.f32.gmra.mxu1 %vm438_vm0, %v5858_v45 }
  0xed   : > { %1679 = vperm.xlu2 %4758, %v1582_v53   ;;  %1676 = vperm.xlu1 %4757, %v1581_v55   ;;  %v5889_v53 = vld [vmem:[%s5011_s30 + $0xd8] sm:$0xff] }
  0xee   : > { %1673 = vperm.xlu0 %4756, %v1580_v50   ;;  %v5903_v10 = vpop.f32.mrf.mxu3 }
  0xef   : > { %v5874_v44 = vpop.permute.xlu2 %1110  ;;  %v5876_v38 = vpop.permute.xlu1 %1080  ;;  %4626 = vmatmul.msk.f32.gmra.mxu3 %vm438_vm0, %v5344_v2  ;;  %v1583_v2 = vsel %vm1519_vm9, 1, %v7972_v56  ;;  %8032 = vst [vmem:[#allocation91_spill] sm:$0xff] %v5903_v10  ;;  %vm1534_vm9 = vcmp.eq.s32.totalorder %v5309_v48, 1 }
  0xf0   : > { %8029 = vst [vmem:[#allocation88_spill] sm:$0xff] %v5874_v44  ;;  %v5884_v32 = vpop.permute.xlu0 %1077  ;;  %v5886_v47 = vpop.f32.mrf.mxu0 }
  0xf1   : > { %8030 = vst [vmem:[#allocation89_spill] sm:$0xff] %v5886_v47  ;;  %v5892_v55 = vpop.f32.mrf.mxu1  ;;  %v5896_v50 = vpop.f32.mrf.mxu2  ;;  %v8091_v47 = vld [vmem:[#allocation26_spill] sm:$0xff] }
  0xf2   : > { %8031 = vst [vmem:[#allocation90_spill] sm:$0xff] %v5892_v55  ;;  %4662 = vmatmul.msk.f32.gmra.mxu2 %vm438_vm0, %v5858_v45  ;;  %v8090_v55 = vld [vmem:[#allocation25_spill] sm:$0xff]  ;;  %vm1550_vm8 = vcmp.eq.s32.totalorder %v8091_v47, 1 }
  0xf3   : > { %4527 = vmatmul.msk.f32.gmra.mxu0 %vm438_vm0, %v5889_v53  ;;  %vm1551_vm7 = vcmp.eq.s32.totalorder %v8090_v55, 1 }
  0xf4   : > { %4595 = vmatmul.msk.f32.gmra.mxu1 %vm438_vm0, %v5889_v53  ;;  %v1615_v47 = vsel %vm1551_vm7, 1, %v7972_v56  ;;  %vm1185_vm7 = vcmp.eq.s32.totalorder %v5754_v58, 1 }
  0xf5   : > { %1688 = vperm.xlu2 %4758, %v1585_v61   ;;  %1685 = vperm.xlu1 %4757, %v1584_v63   ;;  %v5920_v61 = vld [vmem:[%s5011_s30 + $0xe0] sm:$0xff] }
  0xf6   : > { %1682 = vperm.xlu0 %4756, %v1583_v2   ;;  %v5934_v60 = vpop.f32.mrf.mxu3 }
  0xf7   : > { %v5905_v52 = vpop.permute.xlu2 %1119  ;;  %v5907_v44 = vpop.permute.xlu1 %1089  ;;  %4627 = vmatmul.msk.f32.gmra.mxu3 %vm438_vm0, %v5373_v31  ;;  %v1586_v31 = vsel %vm1522_vm12, 1, %v7972_v56 }
  0xf8   : > { %8033 = vst [vmem:[#allocation92_spill] sm:$0xff] %v5905_v52  ;;  %v5915_v34 = vpop.permute.xlu0 %1086  ;;  %v5917_v10 = vpop.f32.mrf.mxu0 }
  0xf9   : > { %8034 = vst [vmem:[#allocation93_spill] sm:$0xff] %v5917_v10  ;;  %v5923_v63 = vpop.f32.mrf.mxu1  ;;  %v5927_v2 = vpop.f32.mrf.mxu2 }
  0xfa   : > { %8035 = vst [vmem:[#allocation94_spill] sm:$0xff] %v5923_v63  ;;  %4663 = vmatmul.msk.f32.gmra.mxu2 %vm438_vm0, %v5889_v53 }
  0xfb   : > { %8036 = vst [vmem:[#allocation95_spill] sm:$0xff] %v5927_v2  ;;  %4528 = vmatmul.msk.f32.gmra.mxu0 %vm438_vm0, %v5920_v61 }
  0xfc   : > { %4596 = vmatmul.msk.f32.gmra.mxu1 %vm438_vm0, %v5920_v61 }
  0xfd   : > { %1697 = vperm.xlu2 %4758, %v1588_v5   ;;  %1694 = vperm.xlu1 %4757, %v1587_v8   ;;  %v5951_v8 = vld [vmem:[%s5011_s30 + $0xe8] sm:$0xff] }
  0xfe   : > { %1691 = vperm.xlu0 %4756, %v1586_v31  }
  0xff   : > { %v5936_v25 = vpop.permute.xlu2 %1128  ;;  %v5938_v52 = vpop.permute.xlu1 %1098  ;;  %4628 = vmatmul.msk.f32.gmra.mxu3 %vm438_vm0, %v5404_v17  ;;  %v1589_v17 = vsel %vm1525_vm15, 1, %v7972_v56 }
 0x100   : > { %8037 = vst [vmem:[#allocation96_spill] sm:$0xff] %v5936_v25  ;;  %v5946_v63 = vpop.permute.xlu0 %1095  ;;  %v5948_v5 = vpop.f32.mrf.mxu0 }
 0x101   : > { %8038 = vst [vmem:[#allocation97_spill] sm:$0xff] %v5948_v5  ;;  %v5954_v31 = vpop.f32.mrf.mxu1  ;;  %v5958_v25 = vpop.f32.mrf.mxu2 }
 0x102   : > { %8039 = vst [vmem:[#allocation98_spill] sm:$0xff] %v5954_v31  ;;  %4664 = vmatmul.msk.f32.gmra.mxu2 %vm438_vm0, %v5920_v61 }
 0x103   : > { %8040 = vst [vmem:[#allocation99_spill] sm:$0xff] %v5958_v25  ;;  %4529 = vmatmul.msk.f32.gmra.mxu0 %vm438_vm0, %v5951_v8 }
 0x104   : > { %4597 = vmatmul.msk.f32.gmra.mxu1 %vm438_vm0, %v5951_v8 }
 0x105   : > { %1706 = vperm.xlu2 %4758, %v1591_v21   ;;  %1703 = vperm.xlu1 %4757, %v1590_v23   ;;  %v5980_v21 = vld [vmem:[%s5011_s30 + $0xf0] sm:$0xff] }
 0x106   : > { %1700 = vperm.xlu0 %4756, %v1589_v17   ;;  %v5985_v17 = vpop.f32.mrf.mxu3 }
 0x107   : > { %v5965_v4 = vpop.permute.xlu2 %1137  ;;  %v5967_v35 = vpop.permute.xlu1 %1107  ;;  %4629 = vmatmul.msk.f32.gmra.mxu3 %vm438_vm0, %v5435_v30  ;;  %8045 = vst [vmem:[#allocation104_spill] sm:$0xff] %v5985_v17  ;;  %v1592_v30 = vsel %vm1528_vm3, 1, %v7972_v56 }
 0x108   : > { %8041 = vst [vmem:[#allocation100_spill] sm:$0xff] %v5965_v4  ;;  %v5975_v10 = vpop.permute.xlu0 %1104  ;;  %v5977_v31 = vpop.f32.mrf.mxu0 }
 0x109   : > { %8042 = vst [vmem:[#allocation101_spill] sm:$0xff] %v5967_v35  ;;  %v5983_v23 = vpop.f32.mrf.mxu1  ;;  %v5989_v45 = vpop.f32.mrf.mxu2 }
 0x10a   : > { %8043 = vst [vmem:[#allocation102_spill] sm:$0xff] %v5977_v31  ;;  %4665 = vmatmul.msk.f32.gmra.mxu2 %vm438_vm0, %v5951_v8 }
 0x10b   : > { %8044 = vst [vmem:[#allocation103_spill] sm:$0xff] %v5983_v23  ;;  %4530 = vmatmul.msk.f32.gmra.mxu0 %vm438_vm0, %v5980_v21 }
 0x10c   : > { %8046 = vst [vmem:[#allocation105_spill] sm:$0xff] %v5989_v45  ;;  %4598 = vmatmul.msk.f32.gmra.mxu1 %vm438_vm0, %v5980_v21 }
 0x10d   : > { %1715 = vperm.xlu2 %4758, %v1594_v37   ;;  %1712 = vperm.xlu1 %4757, %v1593_v39   ;;  %v6011_v37 = vld [vmem:[%s5011_s30 + $0xf8] sm:$0xff] }
 0x10e   : > { %1709 = vperm.xlu0 %4756, %v1592_v30   ;;  %v6025_v53 = vpop.f32.mrf.mxu3 }
 0x10f   : > { %v5996_v20 = vpop.permute.xlu2 %1146  ;;  %v5998_v35 = vpop.permute.xlu1 %1116  ;;  %4630 = vmatmul.msk.f32.gmra.mxu3 %vm438_vm0, %v5466_v40  ;;  %v1595_v40 = vsel %vm1531_vm6, 1, %v7972_v56 }
 0x110   : > { %8047 = vst [vmem:[#allocation106_spill] sm:$0xff] %v5996_v20  ;;  %v6006_v17 = vpop.permute.xlu0 %1113  ;;  %v6008_v4 = vpop.f32.mrf.mxu0 }
 0x111   : > { %8048 = vst [vmem:[#allocation107_spill] sm:$0xff] %v5998_v35  ;;  %v6014_v39 = vpop.f32.mrf.mxu1  ;;  %v6018_v30 = vpop.f32.mrf.mxu2 }
 0x112   : > { %8049 = vst [vmem:[#allocation108_spill] sm:$0xff] %v6006_v17  ;;  %4666 = vmatmul.msk.f32.gmra.mxu2 %vm438_vm0, %v5980_v21 }
 0x113   : > { %8050 = vst [vmem:[#allocation109_spill] sm:$0xff] %v6008_v4  ;;  %4531 = vmatmul.msk.f32.gmra.mxu0 %vm438_vm0, %v6011_v37 }
 0x114   : > { %8051 = vst [vmem:[#allocation110_spill] sm:$0xff] %v6014_v39  ;;  %4599 = vmatmul.msk.f32.gmra.mxu1 %vm438_vm0, %v6011_v37 }
 0x115   : > { %8052 = vst [vmem:[#allocation111_spill] sm:$0xff] %v6018_v30  ;;  %1724 = vperm.xlu2 %4758, %v1597_v49   ;;  %1721 = vperm.xlu1 %4757, %v1596_v51   ;;  %v6042_v49 = vld [vmem:[%s5011_s30 + $0x100] sm:$0xff] }
 0x116   : > { %1718 = vperm.xlu0 %4756, %v1595_v40   ;;  %v6056_v48 = vpop.f32.mrf.mxu3 }
 0x117   : > { %v6027_v36 = vpop.permute.xlu2 %1155  ;;  %v6029_v17 = vpop.permute.xlu1 %1125  ;;  %4631 = vmatmul.msk.f32.gmra.mxu3 %vm438_vm0, %v5504_v29  ;;  %v1598_v29 = vsel %vm1534_vm9, 1, %v7972_v56 }
 0x118   : > { %8053 = vst [vmem:[#allocation112_spill] sm:$0xff] %v6027_v36  ;;  %v6037_v35 = vpop.permute.xlu0 %1122  ;;  %v6039_v20 = vpop.f32.mrf.mxu0 }
 0x119   : > { %8054 = vst [vmem:[#allocation113_spill] sm:$0xff] %v6029_v17  ;;  %v6045_v51 = vpop.f32.mrf.mxu1  ;;  %v6049_v40 = vpop.f32.mrf.mxu2  ;;  %v8060_v17 = vld [vmem:[#allocation8_spill] sm:$0xff] }
 0x11a   : > { %8055 = vst [vmem:[#allocation114_spill] sm:$0xff] %v6037_v35  ;;  %v8059_v35 = vld [vmem:[#allocation7_spill] sm:$0xff]  ;;  %vm1538_vm11 = vcmp.eq.s32.totalorder %v8060_v17, 1  ;;  %4667 = vmatmul.msk.f32.gmra.mxu2 %vm438_vm0, %v6011_v37 }
 0x11b   : > { %8056 = vst [vmem:[#allocation115_spill] sm:$0xff] %v6039_v20  ;;  %4532 = vmatmul.msk.f32.gmra.mxu0 %vm438_vm0, %v6042_v49  ;;  %vm1539_vm10 = vcmp.eq.s32.totalorder %v8059_v35, 1  ;;  %v1602_v17 = vsel %vm1538_vm11, 1, %v7972_v56  ;;  %vm1553_vm11 = vcmp.eq.s32.totalorder %v5540_v6, 1 }
 0x11c   : > { %8057 = vst [vmem:[#allocation116_spill] sm:$0xff] %v6045_v51  ;;  %4600 = vmatmul.msk.f32.gmra.mxu1 %vm438_vm0, %v6042_v49  ;;  %v4759_v51 = vld [vmem:[%s5011_s30 + $0x180] sm:$0xff]  ;;  %v1603_v35 = vsel %vm1539_vm10, 1, %v7972_v56  ;;  %v1617_v6 = vsel %vm1553_vm11, 1, %v7972_v56 }
 0x11d   : > { %8058 = vst [vmem:[#allocation117_spill] sm:$0xff] %v6049_v40  ;;  %1733 = vperm.xlu2 %4758, %v1600_v0   ;;  %1730 = vperm.xlu1 %4757, %v1599_v3   ;;  %v6073_v3 = vld [vmem:[%s5011_s30 + $0x108] sm:$0xff] }
 0x11e   : > { %1727 = vperm.xlu0 %4756, %v1598_v29   ;;  %v8063_v29 = vld [vmem:[#allocation5_spill] sm:$0xff]  ;;  %v4760_v40 = vld [vmem:[%s5011_s30 + $0x188] sm:$0xff] }
 0x11f   : > { %v6058_v61 = vpop.permute.xlu1 %1134  ;;  %v6060_v36 = vpop.permute.xlu2 %1634  ;;  %4684 = vmatmul.msk.f32.vlgmr.msra.gmra.mxu3 %vm438_vm0, %v4759_v51  ;;  %vm1537_vm12 = vcmp.eq.s32.totalorder %v8063_v29, 1 }
 0x120   : > { %v6068_v20 = vpop.permute.xlu0 %1131  ;;  %v6070_v0 = vpop.f32.mrf.mxu0  ;;  %v1601_v8 = vsel %vm1537_vm12, 1, %v7972_v56 }
 0x121   : > { %8061 = vst [vmem:[#allocation7_spill] sm:$0xff] %v6068_v20  ;;  %v6076_v23 = vpop.f32.mrf.mxu1  ;;  %v6080_v31 = vpop.f32.mrf.mxu2  ;;  %v8082_v20 = vld [vmem:[#allocation20_spill] sm:$0xff] }
 0x122   : > { %8062 = vst [vmem:[#allocation8_spill] sm:$0xff] %v6070_v0  ;;  %v8067_v0 = vld [vmem:[#allocation12_spill] sm:$0xff]  ;;  %vm1547_vm5 = vcmp.eq.s32.totalorder %v8082_v20, 1  ;;  %4668 = vmatmul.msk.f32.gmra.mxu2 %vm438_vm0, %v6042_v49 }
 0x123   : > { %8064 = vst [vmem:[#allocation5_spill] sm:$0xff] %v6076_v23  ;;  %4533 = vmatmul.msk.f32.gmra.mxu0 %vm438_vm0, %v6073_v3  ;;  %v8066_v23 = vld [vmem:[#allocation11_spill] sm:$0xff]  ;;  %vm1541_vm14 = vcmp.eq.s32.totalorder %v8067_v0, 1  ;;  %v1611_v49 = vsel %vm1547_vm5, 1, %v7972_v56  ;;  %vm1562_vm5 = vcmp.eq.s32.totalorder %v5654_v9, 1 }
 0x124   : > { %8065 = vst [vmem:[#allocation118_spill] sm:$0xff] %v6080_v31  ;;  %4601 = vmatmul.msk.f32.gmra.mxu1 %vm438_vm0, %v6073_v3  ;;  %vm1542_vm13 = vcmp.eq.s32.totalorder %v8066_v23, 1  ;;  %v1605_v21 = vsel %vm1541_vm14, 1, %v7972_v56  ;;  %vm1556_vm14 = vcmp.eq.s32.totalorder %v5578_v14, 1 }
 0x125   : > { %1742 = vperm.xlu2 %4758, %v1603_v35   ;;  %1739 = vperm.xlu1 %4757, %v1602_v17   ;;  %v6102_v35 = vld [vmem:[%s5011_s30 + $0x110] sm:$0xff]  ;;  %v8070_v17 = vld [vmem:[#allocation6_spill] sm:$0xff]  ;;  %v1606_v0 = vsel %vm1542_vm13, 1, %v7972_v56  ;;  %v1620_v14 = vsel %vm1556_vm14, 1, %v7972_v56 }
 0x126   : > { %1736 = vperm.xlu0 %4756, %v1601_v8   ;;  %vm1540_vm15 = vcmp.eq.s32.totalorder %v8070_v17, 1  ;;  %v6105_v8 = vpop.f32.mrf.mxu3 }
 0x127   : > { %v6087_v51 = vpop.permute.xlu1 %1143  ;;  %v6089_v29 = vpop.permute.xlu2 %1643  ;;  %4685 = vmatmul.msk.f32.gmra.mxu3 %vm438_vm0, %v4760_v40  ;;  %8071 = vst [vmem:[#allocation6_spill] sm:$0xff] %v6105_v8  ;;  %v1604_v40 = vsel %vm1540_vm15, 1, %v7972_v56 }
 0x128   : > { %v6097_v39 = vpop.permute.xlu0 %1140  ;;  %v6099_v4 = vpop.f32.mrf.mxu0 }
 0x129   : > { %8068 = vst [vmem:[#allocation11_spill] sm:$0xff] %v6097_v39  ;;  %v6107_v23 = vpop.f32.mrf.mxu1  ;;  %v6111_v45 = vpop.f32.mrf.mxu2 }
 0x12a   : > { %8069 = vst [vmem:[#allocation12_spill] sm:$0xff] %v6099_v4  ;;  %v8075_v4 = vld [vmem:[#allocation16_spill] sm:$0xff]  ;;  %4669 = vmatmul.msk.f32.gmra.mxu2 %vm438_vm0, %v6073_v3  ;;  %v1614_v3 = vsel %vm1550_vm8, 1, %v7972_v56 }
 0x12b   : > { %8072 = vst [vmem:[#allocation119_spill] sm:$0xff] %v6107_v23  ;;  %4534 = vmatmul.msk.f32.gmra.mxu0 %vm438_vm0, %v6102_v35  ;;  %v8074_v23 = vld [vmem:[#allocation15_spill] sm:$0xff]  ;;  %vm1544_vm2 = vcmp.eq.s32.totalorder %v8075_v4, 1 }
 0x12c   : > { %8073 = vst [vmem:[#allocation120_spill] sm:$0xff] %v6111_v45  ;;  %4602 = vmatmul.msk.f32.gmra.mxu1 %vm438_vm0, %v6102_v35  ;;  %vm1545_vm1 = vcmp.eq.s32.totalorder %v8074_v23, 1  ;;  %v4761_v45 = vld [vmem:[%s5011_s30 + $0x190] sm:$0xff]  ;;  %v1608_v37 = vsel %vm1544_vm2, 1, %v7972_v56  ;;  %vm1559_vm2 = vcmp.eq.s32.totalorder %v5616_v41, 1 }
 0x12d   : > { %1751 = vperm.xlu2 %4758, %v1606_v0   ;;  %1748 = vperm.xlu1 %4757, %v1605_v21   ;;  %v6133_v0 = vld [vmem:[%s5011_s30 + $0x118] sm:$0xff]  ;;  %v1609_v4 = vsel %vm1545_vm1, 1, %v7972_v56  ;;  %v1623_v41 = vsel %vm1559_vm2, 1, %v7972_v56  ;;  %vm2169_vm2 = vcmp.eq.s32.totalorder %v4775_v57, 2 }
 0x12e   : > { %1745 = vperm.xlu0 %4756, %v1604_v40   ;;  %v8077_v21 = vld [vmem:[#allocation10_spill] sm:$0xff]  ;;  %v6138_v23 = vpop.f32.mrf.mxu3 }
 0x12f   : > { %v6118_v17 = vpop.permute.xlu1 %1152  ;;  %v6120_v8 = vpop.permute.xlu2 %1652  ;;  %4686 = vmatmul.msk.f32.gmra.mxu3 %vm438_vm0, %v4761_v45  ;;  %vm1543_vm3 = vcmp.eq.s32.totalorder %v8077_v21, 1 }
 0x130   : > { %v6128_v39 = vpop.permute.xlu0 %1149  ;;  %v6130_v31 = vpop.f32.mrf.mxu0  ;;  %v1607_v45 = vsel %vm1543_vm3, 1, %v7972_v56 }
 0x131   : > { %8076 = vst [vmem:[#allocation15_spill] sm:$0xff] %v6130_v31  ;;  %v6136_v40 = vpop.f32.mrf.mxu1  ;;  %v6142_v5 = vpop.f32.mrf.mxu2  ;;  %v8081_v31 = vld [vmem:[#allocation19_spill] sm:$0xff] }
 0x132   : > { %8078 = vst [vmem:[#allocation16_spill] sm:$0xff] %v6136_v40  ;;  %vm1548_vm4 = vcmp.eq.s32.totalorder %v8081_v31, 1  ;;  %4670 = vmatmul.msk.f32.gmra.mxu2 %vm438_vm0, %v6102_v35 }
 0x133   : > { %8079 = vst [vmem:[#allocation10_spill] sm:$0xff] %v6142_v5  ;;  %4535 = vmatmul.msk.f32.gmra.mxu0 %vm438_vm0, %v6133_v0  ;;  %v4762_v5 = vld [vmem:[%s5011_s30 + $0x198] sm:$0xff]  ;;  %v1612_v20 = vsel %vm1548_vm4, 1, %v7972_v56 }
 0x134   : > { %4603 = vmatmul.msk.f32.gmra.mxu1 %vm438_vm0, %v6133_v0 }
 0x135   : > { %1760 = vperm.xlu2 %4758, %v1609_v4   ;;  %1757 = vperm.xlu1 %4757, %v1608_v37   ;;  %v6164_v4 = vld [vmem:[%s5011_s30 + $0x120] sm:$0xff]  ;;  %v8084_v37 = vld [vmem:[#allocation14_spill] sm:$0xff] }
 0x136   : > { %1754 = vperm.xlu0 %4756, %v1607_v45   ;;  %vm1546_vm6 = vcmp.eq.s32.totalorder %v8084_v37, 1  ;;  %v6169_v31 = vpop.f32.mrf.mxu3 }
 0x137   : > { %v6149_v21 = vpop.permute.xlu2 %1661  ;;  %v6151_v40 = vpop.permute.xlu1 %1631  ;;  %4687 = vmatmul.msk.f32.gmra.mxu3 %vm438_vm0, %v4762_v5  ;;  %8086 = vst [vmem:[#allocation14_spill] sm:$0xff] %v6169_v31  ;;  %v1610_v5 = vsel %vm1546_vm6, 1, %v7972_v56 }
 0x138   : > { %8080 = vst [vmem:[#allocation121_spill] sm:$0xff] %v6149_v21  ;;  %v6159_v2 = vpop.permute.xlu0 %1158  ;;  %v6161_v30 = vpop.f32.mrf.mxu0 }
 0x139   : > { %8083 = vst [vmem:[#allocation19_spill] sm:$0xff] %v6161_v30  ;;  %v6167_v45 = vpop.f32.mrf.mxu1  ;;  %v6173_v21 = vpop.f32.mrf.mxu2 }
 0x13a   : > { %8085 = vst [vmem:[#allocation20_spill] sm:$0xff] %v6167_v45  ;;  %4671 = vmatmul.msk.f32.gmra.mxu2 %vm438_vm0, %v6133_v0  ;;  %v4774_v45 = vld [vmem:[%s5017_s8 + $0x30] sm:$0xff] }
 0x13b   : > { %8087 = vst [vmem:[#allocation122_spill] sm:$0xff] %v6173_v21  ;;  %4536 = vmatmul.msk.f32.gmra.mxu0 %vm438_vm0, %v6164_v4  ;;  %v4763_v21 = vld [vmem:[%s5011_s30 + $0x1a0] sm:$0xff] }
 0x13c   : > { %4604 = vmatmul.msk.f32.gmra.mxu1 %vm438_vm0, %v6164_v4 }
 0x13d   : > { %1769 = vperm.xlu2 %4758, %v1612_v20   ;;  %1766 = vperm.xlu1 %4757, %v1611_v49   ;;  %v6195_v20 = vld [vmem:[%s5011_s30 + $0x128] sm:$0xff]  ;;  %v8093_v49 = vld [vmem:[#allocation18_spill] sm:$0xff] }
 0x13e   : > { %1763 = vperm.xlu0 %4756, %v1610_v5   ;;  %vm1549_vm9 = vcmp.eq.s32.totalorder %v8093_v49, 1  ;;  %v6200_v55 = vpop.f32.mrf.mxu3 }
 0x13f   : > { %v6180_v37 = vpop.permute.xlu2 %1670  ;;  %v6182_v31 = vpop.permute.xlu1 %1640  ;;  %4688 = vmatmul.msk.f32.gmra.mxu3 %vm438_vm0, %v4763_v21  ;;  %8095 = vst [vmem:[#allocation18_spill] sm:$0xff] %v6200_v55  ;;  %v1613_v21 = vsel %vm1549_vm9, 1, %v7972_v56 }
 0x140   : > { %8088 = vst [vmem:[#allocation123_spill] sm:$0xff] %v6180_v37  ;;  %v6190_v25 = vpop.permute.xlu0 %1637  ;;  %v6192_v22 = vpop.f32.mrf.mxu0 }
 0x141   : > { %8089 = vst [vmem:[#allocation124_spill] sm:$0xff] %v6182_v31  ;;  %v6198_v5 = vpop.f32.mrf.mxu1  ;;  %v6204_v37 = vpop.f32.mrf.mxu2  ;;  %v4776_v31 = vld [vmem:[%s5011_s30 + $0x1d8] sm:$0xff] }
 0x142   : > { %8092 = vst [vmem:[#allocation25_spill] sm:$0xff] %v6192_v22  ;;  %v4764_v22 = vld [vmem:[%s5011_s30 + $0x1a8] sm:$0xff]  ;;  %4672 = vmatmul.msk.f32.gmra.mxu2 %vm438_vm0, %v6164_v4 }
 0x143   : > { %8094 = vst [vmem:[#allocation26_spill] sm:$0xff] %v6198_v5  ;;  %4537 = vmatmul.msk.f32.gmra.mxu0 %vm438_vm0, %v6195_v20  ;;  %v8099_v5 = vld [vmem:[#allocation33_spill] sm:$0xff] }
 0x144   : > { %8096 = vst [vmem:[#allocation125_spill] sm:$0xff] %v6204_v37  ;;  %4605 = vmatmul.msk.f32.gmra.mxu1 %vm438_vm0, %v6195_v20  ;;  %vm1554_vm10 = vcmp.eq.s32.totalorder %v8099_v5, 1 }
 0x145   : > { %1778 = vperm.xlu2 %4758, %v1615_v47   ;;  %1775 = vperm.xlu1 %4757, %v1614_v3   ;;  %v6226_v47 = vld [vmem:[%s5011_s30 + $0x130] sm:$0xff]  ;;  %v8102_v3 = vld [vmem:[#allocation24_spill] sm:$0xff]  ;;  %v1618_v5 = vsel %vm1554_vm10, 1, %v7972_v56  ;;  %vm1565_vm10 = vcmp.eq.s32.totalorder %v5688_v1, 1 }
 0x146   : > { %1772 = vperm.xlu0 %4756, %v1613_v21   ;;  %vm1552_vm12 = vcmp.eq.s32.totalorder %v8102_v3, 1 }
 0x147   : > { %v6211_v49 = vpop.permute.xlu2 %1679  ;;  %v6213_v55 = vpop.permute.xlu1 %1649  ;;  %4689 = vmatmul.msk.f32.gmra.mxu3 %vm438_vm0, %v4764_v22  ;;  %v1616_v22 = vsel %vm1552_vm12, 1, %v7972_v56 }
 0x148   : > { %8097 = vst [vmem:[#allocation126_spill] sm:$0xff] %v6211_v49  ;;  %v6221_v37 = vpop.permute.xlu0 %1646  ;;  %v6223_v33 = vpop.f32.mrf.mxu0 }
 0x149   : > { %8098 = vst [vmem:[#allocation127_spill] sm:$0xff] %v6213_v55  ;;  %v6229_v21 = vpop.f32.mrf.mxu1  ;;  %v6233_v49 = vpop.f32.mrf.mxu3 }
 0x14a   : > { %8100 = vst [vmem:[#allocation33_spill] sm:$0xff] %v6221_v37  ;;  %v6235_v35 = vpop.f32.mrf.mxu2  ;;  %4673 = vmatmul.msk.f32.gmra.mxu2 %vm438_vm0, %v6195_v20 }
 0x14b   : > { %8101 = vst [vmem:[#allocation128_spill] sm:$0xff] %v6223_v33  ;;  %4538 = vmatmul.msk.f32.gmra.mxu0 %vm438_vm0, %v6226_v47  ;;  %v8108_v33 = vld [vmem:[#allocation41_spill] sm:$0xff] }
 0x14c   : > { %8103 = vst [vmem:[#allocation24_spill] sm:$0xff] %v6229_v21  ;;  %4606 = vmatmul.msk.f32.gmra.mxu1 %vm438_vm0, %v6226_v47  ;;  %vm1557_vm13 = vcmp.eq.s32.totalorder %v8108_v33, 1 }
 0x14d   : > { %8104 = vst [vmem:[#allocation129_spill] sm:$0xff] %v6233_v49  ;;  %1787 = vperm.xlu2 %4758, %v1618_v5   ;;  %1784 = vperm.xlu1 %4757, %v1617_v6   ;;  %v4765_v49 = vld [vmem:[%s5011_s30 + $0x1b0] sm:$0xff]  ;;  %v6257_v5 = vld [vmem:[%s5011_s30 + $0x138] sm:$0xff]  ;;  %v8111_v6 = vld [vmem:[#allocation32_spill] sm:$0xff]  ;;  %v1621_v33 = vsel %vm1557_vm13, 1, %v7972_v56 }
 0x14e   : > { %8105 = vst [vmem:[#allocation130_spill] sm:$0xff] %v6235_v35  ;;  %1781 = vperm.xlu0 %4756, %v1616_v22   ;;  %vm1555_vm15 = vcmp.eq.s32.totalorder %v8111_v6, 1 }
 0x14f   : > { %v6242_v3 = vpop.permute.xlu2 %1688  ;;  %v6244_v21 = vpop.permute.xlu1 %1658  ;;  %4690 = vmatmul.msk.f32.gmra.mxu3 %vm438_vm0, %v4765_v49  ;;  %v1619_v0 = vsel %vm1555_vm15, 1, %v7972_v56  ;;  %vm1184_vm15 = vcmp.eq.s32.totalorder %v5762_v54, 1 }
 0x150   : > { %8106 = vst [vmem:[#allocation131_spill] sm:$0xff] %v6242_v3  ;;  %v6252_v35 = vpop.permute.xlu0 %1655  ;;  %v6254_v37 = vpop.f32.mrf.mxu0 }
 0x151   : > { %8107 = vst [vmem:[#allocation132_spill] sm:$0xff] %v6244_v21  ;;  %v6260_v22 = vpop.f32.mrf.mxu1  ;;  %v6271_v49 = vpop.f32.mrf.mxu3  ;;  %v4767_v21 = vld [vmem:[%s5011_s30 + $0x1c0] sm:$0xff] }
 0x152   : > { %8109 = vst [vmem:[#allocation41_spill] sm:$0xff] %v6252_v35  ;;  %v6264_v3 = vpop.f32.mrf.mxu2  ;;  %4674 = vmatmul.msk.f32.gmra.mxu2 %vm438_vm0, %v6226_v47 }
 0x153   : > { %8110 = vst [vmem:[#allocation133_spill] sm:$0xff] %v6254_v37  ;;  %4539 = vmatmul.msk.f32.gmra.mxu0 %vm438_vm0, %v6257_v5 }
 0x154   : > { %8112 = vst [vmem:[#allocation32_spill] sm:$0xff] %v6260_v22  ;;  %4607 = vmatmul.msk.f32.gmra.mxu1 %vm438_vm0, %v6257_v5  ;;  %v8117_v22 = vld [vmem:[#allocation49_spill] sm:$0xff] }
 0x155   : > { %8113 = vst [vmem:[#allocation134_spill] sm:$0xff] %v6264_v3  ;;  %1796 = vperm.xlu2 %4758, %v1621_v33   ;;  %1793 = vperm.xlu1 %4757, %v1620_v14   ;;  %vm1560_vm1 = vcmp.eq.s32.totalorder %v8117_v22, 1  ;;  %v4766_v3 = vld [vmem:[%s5011_s30 + $0x1b8] sm:$0xff]  ;;  %v6288_v33 = vld [vmem:[%s5011_s30 + $0x140] sm:$0xff]  ;;  %v8119_v14 = vld [vmem:[#allocation40_spill] sm:$0xff] }
 0x156   : > { %8114 = vst [vmem:[#allocation135_spill] sm:$0xff] %v6271_v49  ;;  %1790 = vperm.xlu0 %4756, %v1619_v0   ;;  %vm1558_vm3 = vcmp.eq.s32.totalorder %v8119_v14, 1  ;;  %v1624_v22 = vsel %vm1560_vm1, 1, %v7972_v56  ;;  %vm2170_vm1 = vcmp.eq.s32.totalorder %v4774_v45, 2 }
 0x157   : > { %v6273_v6 = vpop.permute.xlu2 %1697  ;;  %v6275_v35 = vpop.permute.xlu1 %1667  ;;  %4691 = vmatmul.msk.f32.gmra.mxu3 %vm438_vm0, %v4766_v3  ;;  %v1622_v4 = vsel %vm1558_vm3, 1, %v7972_v56 }
 0x158   : > { %8115 = vst [vmem:[#allocation136_spill] sm:$0xff] %v6273_v6  ;;  %v6283_v37 = vpop.permute.xlu0 %1664  ;;  %v6285_v49 = vpop.f32.mrf.mxu0 }
 0x159   : > { %8116 = vst [vmem:[#allocation137_spill] sm:$0xff] %v6275_v35  ;;  %v6291_v0 = vpop.f32.mrf.mxu1  ;;  %v6302_v3 = vpop.f32.mrf.mxu3 }
 0x15a   : > { %8118 = vst [vmem:[#allocation49_spill] sm:$0xff] %v6283_v37  ;;  %v6295_v6 = vpop.f32.mrf.mxu2  ;;  %v8123_v37 = vld [vmem:[#allocation57_spill] sm:$0xff]  ;;  %4675 = vmatmul.msk.f32.gmra.mxu2 %vm438_vm0, %v6257_v5 }
 0x15b   : > { %8120 = vst [vmem:[#allocation40_spill] sm:$0xff] %v6295_v6  ;;  %4540 = vmatmul.msk.f32.gmra.mxu0 %vm438_vm0, %v6288_v33  ;;  %vm1563_vm4 = vcmp.eq.s32.totalorder %v8123_v37, 1 }
 0x15c   : > { %4608 = vmatmul.msk.f32.gmra.mxu1 %vm438_vm0, %v6288_v33  ;;  %8121 = vst [vmem:[#allocation138_spill] sm:$0xff] %v6302_v3  ;;  %v1627_v20 = vsel %vm1563_vm4, 1, %v7972_v56  ;;  %vm1188_vm4 = vcmp.eq.s32.totalorder %v5785_v12, 1  ;;  %v2233_v12 = vsel %vm2169_vm2, 1, %v7972_v56 }
 0x15d   : > { %1805 = vperm.xlu2 %4758, %v1624_v22   ;;  %1802 = vperm.xlu1 %4757, %v1623_v41   ;;  %v6316_v41 = vld [vmem:[%s5011_s30 + $0x148] sm:$0xff] }
 0x15e   : > { %1799 = vperm.xlu0 %4756, %v1622_v4   ;;  %v8125_v4 = vld [vmem:[#allocation48_spill] sm:$0xff] }
 0x15f   : > { %v1707_v14 = vpop.permute.xlu2 %1706  ;;  %v6304_v35 = vpop.permute.xlu1 %1676  ;;  %4692 = vmatmul.msk.f32.gmra.mxu3 %vm438_vm0, %v4767_v21  ;;  %vm1561_vm8 = vcmp.eq.s32.totalorder %v8125_v4, 1  ;;  %v1626_v21 = vsel %vm1562_vm5, 1, %v7972_v56  ;;  %v4768_v4 = vld [vmem:[%s5017_s8] sm:$0xff] }
 0x160   : > { %8122 = vst [vmem:[#allocation139_spill] sm:$0xff] %v6304_v35  ;;  %vm1847_vm6 = vcmp.eq.s32.totalorder %v1707_v14, 1  ;;  %v6312_v18 = vpop.permute.xlu0 %1673  ;;  %v723_v22 = vpop.f32.mrf.mxu0  ;;  %v1625_v58 = vsel %vm1561_vm8, 1, %v7972_v56  ;;  %vm2164_vm9 = vcmp.eq.s32.totalorder %v4768_v4, 2  ;;  %v1629_v4 = vsel %vm1565_vm10, 1, %v7972_v56 }
 0x161   : > { %8124 = vst [vmem:[#allocation57_spill] sm:$0xff] %v6312_v18  ;;  %v1249_v37 = vsel %vm1185_vm7, %v723_v22, 0.0  ;;  %v1385_v3 = vpop.f32.mrf.mxu1  ;;  %v2228_v1 = vsel %vm2164_vm9, 1, %v7972_v56  ;;  %v6352_v47 = vpop.f32.mrf.mxu3  ;;  %vm1187_vm7 = vcmp.eq.s32.totalorder %v5793_v62, 1 }
 0x162   : > { %v6319_v9 = vsel %vm1847_vm6, %v1385_v3, %v1249_v37  ;;  %v6323_v14 = vpop.f32.mrf.mxu2  ;;  %v4769_v37 = vld [vmem:[%s5011_s30 + $0x1c8] sm:$0xff]  ;;  %4676 = vmatmul.msk.f32.gmra.mxu2 %vm438_vm0, %v6288_v33 }
 0x163   : > { %8126 = vst [vmem:[#allocation48_spill] sm:$0xff] %v6319_v9  ;;  %4541 = vmatmul.msk.f32.gmra.mxu0 %vm438_vm0, %v6316_v41 }
 0x164   : > { %8127 = vst [vmem:[#allocation140_spill] sm:$0xff] %v6323_v14  ;;  %4609 = vmatmul.msk.f32.gmra.mxu1 %vm438_vm0, %v6316_v41 }
 0x165   : > { %1814 = vperm.xlu2 %4758, %v1627_v20   ;;  %1811 = vperm.xlu1 %4757, %v1626_v21   ;;  %v6345_v20 = vld [vmem:[%s5011_s30 + $0x150] sm:$0xff]  ;;  %v8130_v21 = vld [vmem:[#allocation56_spill] sm:$0xff] }
 0x166   : > { %1808 = vperm.xlu0 %4756, %v1625_v58   ;;  %vm1564_vm11 = vcmp.eq.s32.totalorder %v8130_v21, 1  ;;  %8131 = vst [vmem:[#allocation56_spill] sm:$0xff] %v6352_v47  ;;  %v4770_v47 = vld [vmem:[%s5017_s8 + $0x18] sm:$0xff] }
 0x167   : > { %v6330_v3 = vpop.permute.xlu2 %1715  ;;  %v6332_v22 = vpop.permute.xlu1 %1685  ;;  %4693 = vmatmul.msk.f32.gmra.mxu3 %vm438_vm0, %v4769_v37  ;;  %v1628_v21 = vsel %vm1564_vm11, 1, %v7972_v56  ;;  %vm2167_vm12 = vcmp.eq.s32.totalorder %v4770_v47, 2 }
 0x168   : > { %8128 = vst [vmem:[#allocation141_spill] sm:$0xff] %v6332_v22  ;;  %v6340_v14 = vpop.permute.xlu0 %1682  ;;  %v6342_v9 = vpop.f32.mrf.mxu0  ;;  %v2231_v47 = vsel %vm2167_vm12, 1, %v7972_v56  ;;  %vm1850_vm6 = vcmp.eq.s32.totalorder %v6330_v3, 1 }
 0x169   : > { %8129 = vst [vmem:[#allocation142_spill] sm:$0xff] %v6340_v14  ;;  %v6348_v58 = vpop.f32.mrf.mxu1  ;;  %v4772_v14 = vld [vmem:[%s5011_s30 + $0x1d0] sm:$0xff] }
 0x16a   : > { %v6354_v37 = vpop.f32.mrf.mxu2  ;;  %4677 = vmatmul.msk.f32.gmra.mxu2 %vm438_vm0, %v6316_v41 }
 0x16b   : > { %8132 = vst [vmem:[#allocation143_spill] sm:$0xff] %v6354_v37  ;;  %4542 = vmatmul.msk.f32.gmra.mxu0 %vm438_vm0, %v6345_v20  ;;  %v4771_v37 = vld [vmem:[%s5017_s8 + $0x10] sm:$0xff] }
 0x16c   : > { %4610 = vmatmul.msk.f32.gmra.mxu1 %vm438_vm0, %v6345_v20  ;;  %vm2166_vm13 = vcmp.eq.s32.totalorder %v4771_v37, 2 }
 0x16d   : > { %2293 = vperm.xlu2 %4758, %v2228_v1   ;;  %1820 = vperm.xlu1 %4757, %v1629_v4   ;;  %v6374_v1 = vld [vmem:[%s5011_s30 + $0x158] sm:$0xff]  ;;  %v4773_v4 = vld [vmem:[%s5017_s8 + $0x8] sm:$0xff]  ;;  %v2230_v37 = vsel %vm2166_vm13, 1, %v7972_v56 }
 0x16e   : > { %1817 = vperm.xlu0 %4756, %v1628_v21   ;;  %vm2165_vm14 = vcmp.eq.s32.totalorder %v4773_v4, 2 }
 0x16f   : > { %v6361_v22 = vpop.permute.xlu2 %1724  ;;  %v6363_v18 = vpop.permute.xlu1 %1694  ;;  %4694 = vmatmul.msk.f32.gmra.mxu3 %vm438_vm0, %v4772_v14  ;;  %v2229_v5 = vsel %vm2165_vm14, 1, %v7972_v56 }
 0x170   : > { %8133 = vst [vmem:[#allocation144_spill] sm:$0xff] %v6363_v18  ;;  %v6371_v35 = vpop.permute.xlu0 %1691  ;;  %v729_v6 = vpop.f32.mrf.mxu0 }
 0x171   : > { %v6377_v21 = vpop.f32.mrf.mxu1  ;;  %v6388_v14 = vpop.f32.mrf.mxu3 }
 0x172   : > { %v6381_v18 = vpop.f32.mrf.mxu2  ;;  %8135 = vst [vmem:[#allocation146_spill] sm:$0xff] %v6388_v14  ;;  %v4777_v14 = vld [vmem:[%s5017_s8 + $0x20] sm:$0xff]  ;;  %4678 = vmatmul.msk.f32.gmra.mxu2 %vm438_vm0, %v6345_v20 }
 0x173   : > { %8134 = vst [vmem:[#allocation145_spill] sm:$0xff] %v6381_v18  ;;  %4543 = vmatmul.msk.f32.gmra.mxu0 %vm438_vm0, %v6374_v1  ;;  %vm2168_vm5 = vcmp.eq.s32.totalorder %v4777_v14, 2  ;;  %v4778_v14 = vld [vmem:[%s5017_s8 + $0x48] sm:$0xff] }
 0x174   : > { %4611 = vmatmul.msk.f32.gmra.mxu1 %vm438_vm0, %v6374_v1  ;;  %vm2173_vm8 = vcmp.eq.s32.totalorder %v4778_v14, 2  ;;  %v4783_v14 = vld [vmem:[%s5017_s8 + $0x58] sm:$0xff] }
 0x175   : > { %2302 = vperm.xlu2 %4758, %v2231_v47   ;;  %2299 = vperm.xlu1 %4757, %v2230_v37   ;;  %v1248_v47 = vsel %vm1184_vm15, %v6285_v49, 0.0  ;;  %vm2175_vm15 = vcmp.eq.s32.totalorder %v4783_v14, 2  ;;  %v4787_v14 = vld [vmem:[%s5017_s8 + $0x70] sm:$0xff] }
 0x176   : > { %2296 = vperm.xlu0 %4756, %v2229_v5   ;;  %v6404_v5 = vld [vmem:[%s5011_s30 + $0x160] sm:$0xff] }
 0x177   : > { %v6391_v4 = vpop.permute.xlu2 %1733  ;;  %v1704_v18 = vpop.permute.xlu1 %1703  ;;  %4695 = vmatmul.msk.f32.gmra.mxu3 %vm438_vm0, %v4776_v31 }
 0x178   : > { %vm1846_vm3 = vcmp.eq.s32.totalorder %v1704_v18, 1  ;;  %v6400_v37 = vpop.permute.xlu0 %1700  ;;  %v732_v54 = vpop.f32.mrf.mxu0  ;;  %v2234_v18 = vsel %vm2170_vm1, 1, %v7972_v56  ;;  %vm1189_vm1 = vcmp.eq.s32.totalorder %v5690_v59, 1 }
 0x179   : > { %v6409_v30 = vsel %vm1846_vm3, %v6291_v0, %v1248_v47  ;;  %v1252_v33 = vsel %vm1188_vm4, %v732_v54, 0.0  ;;  %v1394_v31 = vpop.f32.mrf.mxu1  ;;  %v2232_v0 = vsel %vm2168_vm5, 1, %v7972_v56  ;;  %v6424_v45 = vpop.f32.mrf.mxu3  ;;  %v4779_v47 = vld [vmem:[%s5017_s8 + $0x40] sm:$0xff]  ;;  %vm1190_vm3 = vcmp.eq.s32.totalorder %v5824_v27, 1 }
 0x17a   : > { %8136 = vst [vmem:[#allocation147_spill] sm:$0xff] %v6409_v30  ;;  %v6411_v55 = vsel %vm1850_vm6, %v1394_v31, %v1252_v33  ;;  %v6417_v49 = vpop.f32.mrf.mxu2  ;;  %vm2172_vm9 = vcmp.eq.s32.totalorder %v4779_v47, 2  ;;  %v4780_v54 = vld [vmem:[%s5011_s30 + $0x1e0] sm:$0xff]  ;;  %v8139_v33 = vld [vmem:[#allocation58_spill] sm:$0xff]  ;;  %v1251_v31 = vsel %vm1187_vm7, %v729_v6, 0.0  ;;  %v2237_v6 = vsel %vm2173_vm8, 1, %v7972_v56  ;;  %4679 = vmatmul.msk.f32.gmra.mxu2 %vm438_vm0, %v6374_v1 }
 0x17b   : > { %8137 = vst [vmem:[#allocation148_spill] sm:$0xff] %v6411_v55  ;;  %4544 = vmatmul.msk.f32.gmra.mxu0 %vm438_vm0, %v6404_v5  ;;  %vm1186_vm10 = vcmp.eq.s32.totalorder %v8139_v33, 1  ;;  %v4784_v47 = vld [vmem:[%s5011_s30 + $0x1e8] sm:$0xff]  ;;  %v2239_v27 = vsel %vm2175_vm15, 1, %v7972_v56  ;;  %vm2178_vm7 = vcmp.eq.s32.totalorder %v4787_v14, 2  ;;  %vm1191_vm8 = vcmp.eq.s32.totalorder %v5816_v15, 1 }
 0x17c   : > { %8138 = vst [vmem:[#allocation149_spill] sm:$0xff] %v6417_v49  ;;  %4612 = vmatmul.msk.f32.gmra.mxu1 %vm438_vm0, %v6404_v5  ;;  %v1250_v49 = vsel %vm1186_vm10, %v6342_v9, 0.0  ;;  %vm1853_vm10 = vcmp.eq.s32.totalorder %v6361_v22, 1 }
 0x17d   : > { %2311 = vperm.xlu2 %4758, %v2234_v18   ;;  %2308 = vperm.xlu1 %4757, %v2233_v12   ;;  %v6437_v12 = vld [vmem:[%s5011_s30 + $0x168] sm:$0xff] }
 0x17e   : > { %2305 = vperm.xlu0 %4756, %v2232_v0   ;;  %v4781_v0 = vld [vmem:[%s5017_s8 + $0x38] sm:$0xff] }
 0x17f   : > { %v6427_v57 = vpop.permute.xlu2 %1742  ;;  %v1713_v3 = vpop.permute.xlu1 %1712  ;;  %4696 = vmatmul.msk.f32.gmra.mxu3 %vm438_vm0, %v4780_v54  ;;  %vm2171_vm12 = vcmp.eq.s32.totalorder %v4781_v0, 2  ;;  %v6469_v0 = vld [vmem:[%s5011_s30 + $0x170] sm:$0xff] }
 0x180   : > { %vm1849_vm11 = vcmp.eq.s32.totalorder %v1713_v3, 1  ;;  %v1710_v18 = vpop.permute.xlu0 %1709  ;;  %v735_v62 = vpop.f32.mrf.mxu0  ;;  %v2236_v3 = vsel %vm2172_vm9, 1, %v7972_v56  ;;  %v2235_v9 = vsel %vm2171_vm12, 1, %v7972_v56 }
 0x181   : > { %v6442_v30 = vsel %vm1849_vm11, %v6377_v21, %v1251_v31  ;;  %vm1848_vm13 = vcmp.eq.s32.totalorder %v1710_v18, 1  ;;  %v1397_v41 = vpop.f32.mrf.mxu1 }
 0x182   : > { %8140 = vst [vmem:[#allocation58_spill] sm:$0xff] %v6442_v30  ;;  %v6445_v54 = vsel %vm1848_vm13, %v6348_v58, %v1250_v49  ;;  %v6451_v33 = vpop.f32.mrf.mxu2  ;;  %v4782_v49 = vld [vmem:[%s5017_s8 + $0x60] sm:$0xff]  ;;  %4680 = vmatmul.msk.f32.gmra.mxu2 %vm438_vm0, %v6404_v5  ;;  %vm1192_vm13 = vcmp.eq.s32.totalorder %v5721_v13, 1 }
 0x183   : > { %8141 = vst [vmem:[#allocation150_spill] sm:$0xff] %v6451_v33  ;;  %4545 = vmatmul.msk.f32.gmra.mxu0 %vm438_vm0, %v6437_v12  ;;  %vm2176_vm14 = vcmp.eq.s32.totalorder %v4782_v49, 2  ;;  %v4786_v49 = vld [vmem:[%s5017_s8 + $0x78] sm:$0xff]  ;;  %v4831_v33 = vld [vmem:[%s5017_s8 + $0x1c0] sm:$0xff] }
 0x184   : > { %4613 = vmatmul.msk.f32.gmra.mxu1 %vm438_vm0, %v6437_v12  ;;  %v2240_v59 = vsel %vm2176_vm14, 1, %v7972_v56  ;;  %vm2179_vm6 = vcmp.eq.s32.totalorder %v4786_v49, 2 }
 0x185   : > { %2320 = vperm.xlu2 %4758, %v2237_v6   ;;  %2317 = vperm.xlu1 %4757, %v2236_v3   ;;  %v4785_v6 = vld [vmem:[%s5017_s8 + $0x50] sm:$0xff]  ;;  %v1253_v3 = vsel %vm1189_vm1, %v735_v62, 0.0  ;;  %v2243_v1 = vsel %vm2179_vm6, 1, %v7972_v56 }
 0x186   : > { %2314 = vperm.xlu0 %4756, %v2235_v9   ;;  %vm2174_vm4 = vcmp.eq.s32.totalorder %v4785_v6, 2 }
 0x187   : > { %v6458_v58 = vpop.permute.xlu2 %1751  ;;  %v1722_v21 = vpop.permute.xlu1 %1721  ;;  %4697 = vmatmul.msk.f32.gmra.mxu3 %vm438_vm0, %v4784_v47 }
 0x188   : > { %vm1852_vm2 = vcmp.eq.s32.totalorder %v1722_v21, 1  ;;  %v1719_v31 = vpop.permute.xlu0 %1718  ;;  %v738_v18 = vpop.f32.mrf.mxu0 }
 0x189   : > { %vm1851_vm5 = vcmp.eq.s32.totalorder %v1719_v31, 1  ;;  %v1254_v9 = vsel %vm1190_vm3, %v738_v18, 0.0  ;;  %v1400_v30 = vpop.f32.mrf.mxu1  ;;  %v6480_v21 = vpop.f32.mrf.mxu3  ;;  %v4788_v31 = vld [vmem:[%s5011_s30 + $0x1f0] sm:$0xff]  ;;  %vm1193_vm3 = vcmp.eq.s32.totalorder %v5853_v26, 1 }
 0x18a   : > { %v6472_v20 = vsel %vm1851_vm5, %v1397_v41, %v1253_v3  ;;  %v6474_v47 = vsel %vm1852_vm2, %v1400_v30, %v1254_v9  ;;  %8143 = vst [vmem:[#allocation152_spill] sm:$0xff] %v6480_v21  ;;  %v6482_v6 = vpop.f32.mrf.mxu2  ;;  %v2238_v30 = vsel %vm2174_vm4, 1, %v7972_v56  ;;  %v6501_v9 = vld [vmem:[%s5011_s30 + $0x178] sm:$0xff]  ;;  %4681 = vmatmul.msk.f32.gmra.mxu2 %vm438_vm0, %v6437_v12 }
 0x18b   : > { %8142 = vst [vmem:[#allocation151_spill] sm:$0xff] %v6474_v47  ;;  %4546 = vmatmul.msk.f32.gmra.mxu0 %vm438_vm0, %v6469_v0 }
 0x18c   : > { %4614 = vmatmul.msk.f32.gmra.mxu1 %vm438_vm0, %v6469_v0 }
 0x18d   : > { %2329 = vperm.xlu2 %4758, %v2240_v59   ;;  %2326 = vperm.xlu1 %4757, %v2239_v27   ;;  %v4789_v59 = vld [vmem:[%s5017_s8 + $0x68] sm:$0xff] }
 0x18e   : > { %2323 = vperm.xlu0 %4756, %v2238_v30   ;;  %vm2177_vm9 = vcmp.eq.s32.totalorder %v4789_v59, 2  ;;  %v4790_v59 = vld [vmem:[%s5017_s8 + $0x90] sm:$0xff] }
 0x18f   : > { %v6489_v62 = vpop.permute.xlu2 %1760  ;;  %v6491_v41 = vpop.permute.xlu1 %1730  ;;  %4698 = vmatmul.msk.f32.gmra.mxu3 %vm438_vm0, %v4788_v31  ;;  %v2242_v31 = vsel %vm2178_vm7, 1, %v7972_v56  ;;  %v2241_v15 = vsel %vm2177_vm9, 1, %v7972_v56  ;;  %vm2182_vm11 = vcmp.eq.s32.totalorder %v4790_v59, 2 }
 0x190   : > { %v1728_v18 = vpop.permute.xlu0 %1727  ;;  %v741_v3 = vpop.f32.mrf.mxu0  ;;  %vm1855_vm5 = vcmp.eq.s32.totalorder %v6491_v41, 1  ;;  %v4797_v41 = vld [vmem:[%s5017_s8 + $0xc0] sm:$0xff] }
 0x191   : > { %v1255_v27 = vsel %vm1191_vm8, %v741_v3, 0.0  ;;  %v1403_v30 = vpop.f32.mrf.mxu1  ;;  %v6517_v22 = vpop.f32.mrf.mxu3  ;;  %vm1854_vm15 = vcmp.eq.s32.totalorder %v1728_v18, 1  ;;  %vm2188_vm6 = vcmp.eq.s32.totalorder %v4797_v41, 2  ;;  %vm1194_vm8 = vcmp.eq.s32.totalorder %v5845_v28, 1 }
 0x192   : > { %v6505_v14 = vsel %vm1853_vm10, %v1403_v30, %v1255_v27  ;;  %v6510_v21 = vpop.f32.mrf.mxu2  ;;  %v4791_v27 = vld [vmem:[%s5017_s8 + $0x88] sm:$0xff]  ;;  %v4792_v30 = vld [vmem:[%s5011_s30 + $0x1f8] sm:$0xff]  ;;  %4682 = vmatmul.msk.f32.gmra.mxu2 %vm438_vm0, %v6469_v0  ;;  %vm1856_vm10 = vcmp.eq.s32.totalorder %v6391_v4, 1  ;;  %v2252_v41 = vsel %vm2188_vm6, 1, %v7972_v56  ;;  %s4701_s30 = sshll.u32 %s4950_s19, 2  ;;  %s223_s19 = scalar_lea.vmem [#allocation2], %s4493_s29 }
 0x193   : > { %8144 = vst [vmem:[#allocation153_spill] sm:$0xff] %v6505_v14  ;;  %4547 = vmatmul.msk.f32.gmra.mxu0 %vm438_vm0, %v6501_v9  ;;  %vm2181_vm12 = vcmp.eq.s32.totalorder %v4791_v27, 2  ;;  %v2246_v27 = vsel %vm2182_vm11, 1, %v7972_v56  ;;  %vm1215_vm11 = vcmp.eq.s32.totalorder %v6058_v61, 1  ;;  %s4403_s7 = sshll.u32 %s223_s19, 4  ;;  %s4404_s7 = int_to_ptr.vmem [resolvable:$true] %s4403_s7 }
 0x194   : > { %8145 = vst [vmem:[#allocation154_spill] sm:$0xff] %v6510_v21  ;;  %4615 = vmatmul.msk.f32.gmra.mxu1 %vm438_vm0, %v6501_v9  ;;  %v2245_v5 = vsel %vm2181_vm12, 1, %v7972_v56 }
 0x195   : > { %2338 = vperm.xlu2 %4758, %v2243_v1   ;;  %2335 = vperm.xlu1 %4757, %v2242_v31   ;;  %v4793_v1 = vld [vmem:[%s5017_s8 + $0x80] sm:$0xff] }
 0x196   : > { %2332 = vperm.xlu0 %4756, %v2241_v15   ;;  %vm2180_vm14 = vcmp.eq.s32.totalorder %v4793_v1, 2  ;;  %v4794_v1 = vld [vmem:[%s5017_s8 + $0xa8] sm:$0xff] }
 0x197   : > { %v6519_v49 = vpop.permute.xlu2 %1769  ;;  %v6521_v3 = vpop.permute.xlu1 %1739  ;;  %4699 = vmatmul.msk.f32.gmra.mxu3 %vm438_vm0, %v4792_v30  ;;  %v2244_v30 = vsel %vm2180_vm14, 1, %v7972_v56  ;;  %vm2185_vm1 = vcmp.eq.s32.totalorder %v4794_v1, 2 }
 0x198   : > { %8146 = vst [vmem:[#allocation155_spill] sm:$0xff] %v6519_v49  ;;  %v6529_v47 = vpop.permute.xlu0 %1736  ;;  %v744_v21 = vpop.f32.mrf.mxu0  ;;  %v2249_v1 = vsel %vm2185_vm1, 1, %v7972_v56 }
 0x199   : > { %v1256_v31 = vsel %vm1192_vm13, %v744_v21, 0.0  ;;  %v1406_v15 = vpop.f32.mrf.mxu1  ;;  %v6540_v13 = vpop.f32.mrf.mxu3 }
 0x19a   : > { %v6533_v59 = vsel %vm1854_vm15, %v1406_v15, %v1256_v31  ;;  %v6537_v49 = vpop.f32.mrf.mxu2  ;;  %v4795_v31 = vld [vmem:[%s5017_s8 + $0xa0] sm:$0xff]  ;;  %4683 = vmatmul.msk.f32.gmra.mxu2 %vm438_vm0, %v6501_v9  ;;  %vm1195_vm15 = vcmp.eq.s32.totalorder %v5752_v11, 1 }
 0x19b   : > { %8147 = vst [vmem:[#allocation156_spill] sm:$0xff] %v6537_v49  ;;  %vm2184_vm2 = vcmp.eq.s32.totalorder %v4795_v31, 2 }
 0x19c   : > { %v2248_v31 = vsel %vm2184_vm2, 1, %v7972_v56  ;;  %vm1857_vm2 = vcmp.eq.s32.totalorder %v6529_v47, 1 }
 0x19d   : > { %2347 = vperm.xlu2 %4758, %v2246_v27   ;;  %2344 = vperm.xlu1 %4757, %v2245_v5   ;;  %v4796_v27 = vld [vmem:[%s5017_s8 + $0x98] sm:$0xff] }
 0x19e   : > { %2341 = vperm.xlu0 %4756, %v2244_v30   ;;  %vm2183_vm4 = vcmp.eq.s32.totalorder %v4796_v27, 2 }
 0x19f   : > { %v6542_v18 = vpop.permute.xlu2 %1778  ;;  %v6544_v21 = vpop.permute.xlu1 %1748  ;;  %v2247_v49 = vsel %vm2183_vm4, 1, %v7972_v56 }
 0x1a0   : > { %8148 = vst [vmem:[#allocation157_spill] sm:$0xff] %v6542_v18  ;;  %v6550_v15 = vpop.permute.xlu0 %1745  ;;  %v747_v14 = vpop.f32.mrf.mxu0 }
 0x1a1   : > { %8149 = vst [vmem:[#allocation158_spill] sm:$0xff] %v6550_v15  ;;  %v1257_v5 = vsel %vm1193_vm3, %v747_v14, 0.0  ;;  %v1409_v30 = vpop.f32.mrf.mxu1  ;;  %v4798_v14 = vld [vmem:[%s5017_s8 + $0xb8] sm:$0xff]  ;;  %v6579_v0 = vpop.f32.mrf.mxu3  ;;  %vm1218_vm3 = vcmp.eq.s32.totalorder %v6087_v51, 1 }
 0x1a2   : > { %v6555_v18 = vsel %vm1855_vm5, %v1409_v30, %v1257_v5  ;;  %v6559_v12 = vpop.f32.mrf.mxu2  ;;  %vm2187_vm7 = vcmp.eq.s32.totalorder %v4798_v14, 2  ;;  %8154 = vst [vmem:[#allocation163_spill] sm:$0xff] %v6579_v0 }
 0x1a3   : > { %8150 = vst [vmem:[#allocation159_spill] sm:$0xff] %v6555_v18  ;;  %v4799_v18 = vld [vmem:[%s5017_s8 + $0xb0] sm:$0xff]  ;;  %v2251_v14 = vsel %vm2187_vm7, 1, %v7972_v56  ;;  %vm1196_vm7 = vcmp.eq.s32.totalorder %v5884_v32, 1 }
 0x1a4   : > { %vm2186_vm9 = vcmp.eq.s32.totalorder %v4799_v18, 2 }
 0x1a5   : > { %2356 = vperm.xlu2 %4758, %v2249_v1   ;;  %2353 = vperm.xlu1 %4757, %v2248_v31   ;;  %v2250_v28 = vsel %vm2186_vm9, 1, %v7972_v56  ;;  %vm1858_vm9 = vcmp.eq.s32.totalorder %v6521_v3, 1 }
 0x1a6   : > { %2350 = vperm.xlu0 %4756, %v2247_v49  }
 0x1a7   : > { %v6562_v26 = vpop.permute.xlu2 %1787  ;;  %v6564_v27 = vpop.permute.xlu1 %1757 }
 0x1a8   : > { %8151 = vst [vmem:[#allocation160_spill] sm:$0xff] %v6562_v26  ;;  %v6570_v5 = vpop.permute.xlu0 %1754  ;;  %v750_v30 = vpop.f32.mrf.mxu0 }
 0x1a9   : > { %8152 = vst [vmem:[#allocation161_spill] sm:$0xff] %v6570_v5  ;;  %v1258_v49 = vsel %vm1194_vm8, %v750_v30, 0.0  ;;  %v1412_v1 = vpop.f32.mrf.mxu1  ;;  %v4800_v30 = vld [vmem:[%s5017_s8 + $0xd8] sm:$0xff] }
 0x1aa   : > { %v6575_v31 = vsel %vm1856_vm10, %v1412_v1, %v1258_v49  ;;  %v6581_v26 = vpop.f32.mrf.mxu2  ;;  %vm2191_vm12 = vcmp.eq.s32.totalorder %v4800_v30, 2  ;;  %v4801_v49 = vld [vmem:[%s5017_s8 + $0xd0] sm:$0xff]  ;;  %v1279_v1 = vsel %vm1215_vm11, %v5812_v24, 0.0  ;;  %v4804_v30 = vld [vmem:[%s5017_s8 + $0xe8] sm:$0xff]  ;;  %vm1221_vm10 = vcmp.eq.s32.totalorder %v6118_v17, 1  ;;  %v4808_v17 = vld [vmem:[%s5017_s8 + $0xf8] sm:$0xff] }
 0x1ab   : > { %8153 = vst [vmem:[#allocation162_spill] sm:$0xff] %v6575_v31  ;;  %vm2190_vm13 = vcmp.eq.s32.totalorder %v4801_v49, 2  ;;  %v2255_v24 = vsel %vm2191_vm12, 1, %v7972_v56  ;;  %vm2193_vm5 = vcmp.eq.s32.totalorder %v4804_v30, 2  ;;  %v4806_v30 = vld [vmem:[%s5017_s8 + $0x108] sm:$0xff] }
 0x1ac   : > { %8155 = vst [vmem:[#allocation164_spill] sm:$0xff] %v6581_v26  ;;  %vm2197_vm11 = vcmp.eq.s32.totalorder %v4806_v30, 2 }
 0x1ad   : > { %2365 = vperm.xlu2 %4758, %v2252_v41   ;;  %2362 = vperm.xlu1 %4757, %v2251_v14   ;;  %v4802_v41 = vld [vmem:[%s5017_s8 + $0xc8] sm:$0xff] }
 0x1ae   : > { %2359 = vperm.xlu0 %4756, %v2250_v28   ;;  %vm2189_vm1 = vcmp.eq.s32.totalorder %v4802_v41, 2  ;;  %v6608_v41 = vpop.f32.mrf.mxu3 }
 0x1af   : > { %v1797_v4 = vpop.permute.xlu2 %1796  ;;  %v6585_v18 = vpop.permute.xlu1 %1766  ;;  %v2253_v11 = vsel %vm2189_vm1, 1, %v7972_v56  ;;  %vm1859_vm1 = vcmp.eq.s32.totalorder %v6427_v57, 1 }
 0x1b0   : > { %vm1877_vm14 = vcmp.eq.s32.totalorder %v1797_v4, 1  ;;  %v6592_v0 = vpop.permute.xlu0 %1763  ;;  %v753_v61 = vpop.f32.mrf.mxu0  ;;  %v2254_v4 = vsel %vm2190_vm13, 1, %v7972_v56 }
 0x1b1   : > { %8156 = vst [vmem:[#allocation165_spill] sm:$0xff] %v6592_v0  ;;  %v6598_v14 = vsel %vm1877_vm14, %v6424_v45, %v1279_v1  ;;  %v1259_v28 = vsel %vm1195_vm15, %v753_v61, 0.0  ;;  %v1415_v49 = vpop.f32.mrf.mxu1  ;;  %v4803_v1 = vld [vmem:[%s5017_s8 + $0xf0] sm:$0xff]  ;;  %v1282_v61 = vsel %vm1218_vm3, %v5934_v60, 0.0  ;;  %vm1197_vm14 = vcmp.eq.s32.totalorder %v5876_v38, 1  ;;  %v4832_v0 = vld [vmem:[%s5017_s8 + $0x1b8] sm:$0xff] }
 0x1b2   : > { %8157 = vst [vmem:[#allocation166_spill] sm:$0xff] %v6598_v14  ;;  %v6600_v9 = vsel %vm1857_vm2, %v1415_v49, %v1259_v28  ;;  %v6605_v26 = vpop.f32.mrf.mxu2  ;;  %vm2194_vm4 = vcmp.eq.s32.totalorder %v4803_v1, 2  ;;  %v4805_v14 = vld [vmem:[%s5017_s8 + $0xe0] sm:$0xff]  ;;  %vm2195_vm15 = vcmp.eq.s32.totalorder %v4808_v17, 2 }
 0x1b3   : > { %8158 = vst [vmem:[#allocation167_spill] sm:$0xff] %v6605_v26  ;;  %vm2192_vm8 = vcmp.eq.s32.totalorder %v4805_v14, 2  ;;  %v2258_v60 = vsel %vm2194_vm4, 1, %v7972_v56  ;;  %v2259_v38 = vsel %vm2195_vm15, 1, %v7972_v56 }
 0x1b4   : > { %v2256_v32 = vsel %vm2192_vm8, 1, %v7972_v56 }
 0x1b5   : > { %2374 = vperm.xlu2 %4758, %v2255_v24   ;;  %2371 = vperm.xlu1 %4757, %v2254_v4  }
 0x1b6   : > { %2368 = vperm.xlu0 %4756, %v2253_v11   ;;  %v1493_v3 = vpop.f32.mrf.mxu3 }
 0x1b7   : > { %v1806_v45 = vpop.permute.xlu2 %1805  ;;  %v6611_v47 = vpop.permute.xlu1 %1775 }
 0x1b8   : > { %8159 = vst [vmem:[#allocation168_spill] sm:$0xff] %v6611_v47  ;;  %vm1880_vm6 = vcmp.eq.s32.totalorder %v1806_v45, 1  ;;  %v6616_v28 = vpop.permute.xlu0 %1772  ;;  %v756_v49 = vpop.f32.mrf.mxu0  ;;  %v2257_v45 = vsel %vm2193_vm5, 1, %v7972_v56 }
 0x1b9   : > { %8160 = vst [vmem:[#allocation169_spill] sm:$0xff] %v6616_v28  ;;  %v6622_v51 = vsel %vm1880_vm6, %v6540_v13, %v1282_v61  ;;  %v1260_v24 = vsel %vm1196_vm7, %v756_v49, 0.0  ;;  %v1418_v4 = vpop.f32.mrf.mxu1  ;;  %v4807_v61 = vld [vmem:[%s5017_s8 + $0x100] sm:$0xff]  ;;  %v1285_v49 = vsel %vm1221_vm10, %v6056_v48, 0.0  ;;  %v2261_v48 = vsel %vm2197_vm11, 1, %v7972_v56  ;;  %v4830_v28 = vld [vmem:[%s5017_s8 + $0x1c8] sm:$0xff] }
 0x1ba   : > { %8161 = vst [vmem:[#allocation170_spill] sm:$0xff] %v6622_v51  ;;  %v6624_v11 = vsel %vm1858_vm9, %v1418_v4, %v1260_v24  ;;  %v6628_v1 = vpop.f32.mrf.mxu2  ;;  %vm2196_vm12 = vcmp.eq.s32.totalorder %v4807_v61, 2  ;;  %vm1199_vm7 = vcmp.eq.s32.totalorder %v5915_v34, 1  ;;  %vm1861_vm9 = vcmp.eq.s32.totalorder %v6544_v21, 1 }
 0x1bb   : > { %vm1220_vm10 = vcmp.eq.s32.totalorder %v6128_v39, 1  ;;  %v4817_v39 = vld [vmem:[%s5017_s8 + $0x140] sm:$0xff] }
 0x1bc   : > { %vm2204_vm15 = vcmp.eq.s32.totalorder %v4817_v39, 2 }
 0x1bd   : > { %2383 = vperm.xlu2 %4758, %v2258_v60   ;;  %2380 = vperm.xlu1 %4757, %v2257_v45  }
 0x1be   : > { %2377 = vperm.xlu0 %4756, %v2256_v32  }
 0x1bf   : > { %v1815_v13 = vpop.permute.xlu2 %1814  ;;  %v6632_v14 = vpop.permute.xlu1 %1784 }
 0x1c0   : > { %8162 = vst [vmem:[#allocation171_spill] sm:$0xff] %v6632_v14  ;;  %vm1883_vm13 = vcmp.eq.s32.totalorder %v1815_v13, 1  ;;  %v6637_v24 = vpop.permute.xlu0 %1781  ;;  %v759_v4 = vpop.f32.mrf.mxu0  ;;  %v2260_v13 = vsel %vm2196_vm12, 1, %v7972_v56  ;;  %v4812_v14 = vld [vmem:[%s5017_s8 + $0x138] sm:$0xff] }
 0x1c1   : > { %8163 = vst [vmem:[#allocation172_spill] sm:$0xff] %v6637_v24  ;;  %v1261_v60 = vsel %vm1197_vm14, %v759_v4, 0.0  ;;  %v6642_v45 = vsel %vm1883_vm13, %v1493_v3, %v1285_v49  ;;  %v1421_v32 = vpop.f32.mrf.mxu1  ;;  %v4809_v3 = vld [vmem:[%s5017_s8 + $0x120] sm:$0xff]  ;;  %v4810_v49 = vld [vmem:[%s5017_s8 + $0x118] sm:$0xff]  ;;  %vm2203_vm5 = vcmp.eq.s32.totalorder %v4812_v14, 2  ;;  %vm1200_vm14 = vcmp.eq.s32.totalorder %v5907_v44, 1 }
 0x1c2   : > { %8164 = vst [vmem:[#allocation173_spill] sm:$0xff] %v6642_v45  ;;  %v6644_v30 = vsel %vm1859_vm1, %v1421_v32, %v1261_v60  ;;  %v6648_v61 = vpop.f32.mrf.mxu2  ;;  %vm2200_vm2 = vcmp.eq.s32.totalorder %v4809_v3, 2  ;;  %vm2199_vm3 = vcmp.eq.s32.totalorder %v4810_v49, 2  ;;  %v4811_v32 = vld [vmem:[%s5017_s8 + $0x110] sm:$0xff]  ;;  %vm1862_vm1 = vcmp.eq.s32.totalorder %v6458_v58, 1  ;;  %v4829_v24 = vld [vmem:[%s5017_s8 + $0x1a0] sm:$0xff] }
 0x1c3   : > { %8165 = vst [vmem:[#allocation174_spill] sm:$0xff] %v6644_v30  ;;  %vm2198_vm4 = vcmp.eq.s32.totalorder %v4811_v32, 2  ;;  %v4813_v32 = vld [vmem:[%s5017_s8 + $0x130] sm:$0xff]  ;;  %v4814_v30 = vld [vmem:[%s5017_s8 + $0x128] sm:$0xff] }
 0x1c4   : > { %8166 = vst [vmem:[#allocation175_spill] sm:$0xff] %v6648_v61  ;;  %vm2202_vm6 = vcmp.eq.s32.totalorder %v4813_v32, 2  ;;  %vm2201_vm8 = vcmp.eq.s32.totalorder %v4814_v30, 2 }
 0x1c5   : > { %2392 = vperm.xlu2 %4758, %v2261_v48   ;;  %2389 = vperm.xlu1 %4757, %v2260_v13   ;;  %v2264_v48 = vsel %vm2200_vm2, 1, %v7972_v56  ;;  %v2263_v13 = vsel %vm2199_vm3, 1, %v7972_v56  ;;  %v2266_v14 = vsel %vm2202_vm6, 1, %v7972_v56  ;;  %v2265_v32 = vsel %vm2201_vm8, 1, %v7972_v56 }
 0x1c6   : > { %2386 = vperm.xlu0 %4756, %v2259_v38   ;;  %v2262_v38 = vsel %vm2198_vm4, 1, %v7972_v56  ;;  %vm1223_vm2 = vcmp.eq.s32.totalorder %v6159_v2, 1  ;;  %v4820_v2 = vld [vmem:[%s5017_s8 + $0x158] sm:$0xff] }
 0x1c7   : > { %v6651_v57 = vpop.permute.xlu2 %2293  ;;  %v6653_v4 = vpop.permute.xlu1 %1793  ;;  %v1287_v39 = vsel %vm1223_vm2, %v6138_v23, 0.0  ;;  %vm2207_vm6 = vcmp.eq.s32.totalorder %v4820_v2, 2 }
 0x1c8   : > { %v6657_v17 = vpop.permute.xlu0 %1790  ;;  %v6659_v60 = vpop.f32.mrf.mxu0  ;;  %v2271_v23 = vsel %vm2207_vm6, 1, %v7972_v56  ;;  %vm2220_vm6 = vcmp.eq.s32.totalorder %v4831_v33, 2 }
 0x1c9   : > { %8167 = vst [vmem:[#allocation176_spill] sm:$0xff] %v6657_v17  ;;  %v6662_v45 = vpop.f32.mrf.mxu1  ;;  %v4826_v17 = vld [vmem:[%s5017_s8 + $0x188] sm:$0xff]  ;;  %v2284_v33 = vsel %vm2220_vm6, 1, %v7972_v56 }
 0x1ca   : > { %8168 = vst [vmem:[#allocation177_spill] sm:$0xff] %v6659_v60  ;;  %v6667_v3 = vpop.f32.mrf.mxu2 }
 0x1cb   : > { %8169 = vst [vmem:[#allocation178_spill] sm:$0xff] %v6662_v45  ;;  %v306_v45 = vld [vmem:[%s6862_s28] sm:$0xff] }
 0x1cc   : > { %8170 = vst [vmem:[#allocation179_spill] sm:$0xff] %v6667_v3  ;;  %v2267_v3 = vsel %vm2203_vm5, 1, %v7972_v56 }
 0x1cd   : > { %2401 = vperm.xlu2 %4758, %v2264_v48   ;;  %2398 = vperm.xlu1 %4757, %v2263_v13  }
 0x1ce   : > { %2395 = vperm.xlu0 %4756, %v2262_v38  }
 0x1cf   : > { %v6669_v49 = vpop.permute.xlu2 %2302  ;;  %v6671_v51 = vpop.permute.xlu1 %1802 }
 0x1d0   : > { %v6675_v47 = vpop.permute.xlu0 %1799  ;;  %v765_v61 = vpop.f32.mrf.mxu0 }
 0x1d1   : > { %8171 = vst [vmem:[#allocation180_spill] sm:$0xff] %v6675_v47  ;;  %v1263_v48 = vsel %vm1199_vm7, %v765_v61, 0.0  ;;  %v1427_v13 = vpop.f32.mrf.mxu1  ;;  %v6685_v47 = vpop.f32.mrf.mxu3  ;;  %v4815_v61 = vld [vmem:[%s5017_s8 + $0x150] sm:$0xff] }
 0x1d2   : > { %v6680_v38 = vsel %vm1861_vm9, %v1427_v13, %v1263_v48  ;;  %8172 = vst [vmem:[#allocation181_spill] sm:$0xff] %v6685_v47  ;;  %v6688_v34 = vpop.f32.mrf.mxu2  ;;  %vm2206_vm11 = vcmp.eq.s32.totalorder %v4815_v61, 2  ;;  %v4816_v48 = vld [vmem:[%s5017_s8 + $0x148] sm:$0xff]  ;;  %v1284_v13 = vsel %vm1220_vm10, %v6025_v53, 0.0  ;;  %vm1202_vm9 = vcmp.eq.s32.totalorder %v5946_v63, 1 }
 0x1d3   : > { %vm2205_vm12 = vcmp.eq.s32.totalorder %v4816_v48, 2  ;;  %v2270_v53 = vsel %vm2206_vm11, 1, %v7972_v56  ;;  %v2268_v48 = vsel %vm2204_vm15, 1, %v7972_v56  ;;  %vm1864_vm11 = vcmp.eq.s32.totalorder %v6564_v27, 1  ;;  %v4824_v27 = vld [vmem:[%s5017_s8 + $0x198] sm:$0xff] }
 0x1d4   : > { %vm2213_vm15 = vcmp.eq.s32.totalorder %v4826_v17, 2 }
 0x1d5   : > { %2410 = vperm.xlu2 %4758, %v2267_v3   ;;  %2407 = vperm.xlu1 %4757, %v2266_v14  }
 0x1d6   : > { %2404 = vperm.xlu0 %4756, %v2265_v32  }
 0x1d7   : > { %v6690_v21 = vpop.permute.xlu2 %2311  ;;  %v1812_v30 = vpop.permute.xlu1 %1811 }
 0x1d8   : > { %vm1882_vm13 = vcmp.eq.s32.totalorder %v1812_v30, 1  ;;  %v6695_v31 = vpop.permute.xlu0 %1808  ;;  %v768_v47 = vpop.f32.mrf.mxu0  ;;  %v2269_v30 = vsel %vm2205_vm12, 1, %v7972_v56  ;;  %vm2215_vm12 = vcmp.eq.s32.totalorder %v4824_v27, 2 }
 0x1d9   : > { %8173 = vst [vmem:[#allocation182_spill] sm:$0xff] %v6695_v31  ;;  %v1264_v3 = vsel %vm1200_vm14, %v768_v47, 0.0  ;;  %v1430_v14 = vpop.f32.mrf.mxu1  ;;  %v6701_v32 = vsel %vm1882_vm13, %v6608_v41, %v1284_v13  ;;  %v1499_v44 = vpop.f32.mrf.mxu3  ;;  %v4818_v41 = vld [vmem:[%s5017_s8 + $0x168] sm:$0xff]  ;;  %v4819_v13 = vld [vmem:[%s5017_s8 + $0x160] sm:$0xff]  ;;  %vm1203_vm14 = vcmp.eq.s32.totalorder %v5938_v52, 1  ;;  %v2279_v27 = vsel %vm2215_vm12, 1, %v7972_v56 }
 0x1da   : > { %8174 = vst [vmem:[#allocation183_spill] sm:$0xff] %v6701_v32  ;;  %v6703_v61 = vsel %vm1862_vm1, %v1430_v14, %v1264_v3  ;;  %vm2209_vm3 = vcmp.eq.s32.totalorder %v4818_v41, 2  ;;  %vm2208_vm4 = vcmp.eq.s32.totalorder %v4819_v13, 2  ;;  %v6725_v13 = vpop.f32.mrf.mxu2  ;;  %v4823_v32 = vld [vmem:[%s5017_s8 + $0x170] sm:$0xff]  ;;  %vm1865_vm1 = vcmp.eq.s32.totalorder %v6489_v62, 1 }
 0x1db   : > { %8175 = vst [vmem:[#allocation184_spill] sm:$0xff] %v6703_v61  ;;  %v2272_v41 = vsel %vm2208_vm4, 1, %v7972_v56  ;;  %vm2210_vm10 = vcmp.eq.s32.totalorder %v4823_v32, 2  ;;  %v4827_v62 = vld [vmem:[%s5017_s8 + $0x1b0] sm:$0xff]  ;;  %vm2216_vm4 = vcmp.eq.s32.totalorder %v4829_v24, 2 }
 0x1dc   : > { %vm2218_vm2 = vcmp.eq.s32.totalorder %v4827_v62, 2  ;;  %v2280_v55 = vsel %vm2216_vm4, 1, %v7972_v56 }
 0x1dd   : > { %2419 = vperm.xlu2 %4758, %v2270_v53   ;;  %2416 = vperm.xlu1 %4757, %v2269_v30  }
 0x1de   : > { %2413 = vperm.xlu0 %4756, %v2268_v48   ;;  %v2273_v48 = vsel %vm2209_vm3, 1, %v7972_v56 }
 0x1df   : > { %v6709_v58 = vpop.permute.xlu2 %2320  ;;  %v1821_v47 = vpop.permute.xlu1 %1820 }
 0x1e0   : > { %vm1885_vm5 = vcmp.eq.s32.totalorder %v1821_v47, 1  ;;  %v6714_v3 = vpop.permute.xlu0 %1817  ;;  %v6716_v14 = vpop.f32.mrf.mxu0 }
 0x1e1   : > { %8176 = vst [vmem:[#allocation185_spill] sm:$0xff] %v6714_v3  ;;  %v6719_v53 = vsel %vm1885_vm5, %v1499_v44, %v1287_v39  ;;  %v6721_v30 = vpop.f32.mrf.mxu1  ;;  %v4821_v44 = vld [vmem:[%s5017_s8 + $0x180] sm:$0xff]  ;;  %v4822_v39 = vld [vmem:[%s5017_s8 + $0x178] sm:$0xff]  ;;  %vm2221_vm5 = vcmp.eq.s32.totalorder %v4830_v28, 2 }
 0x1e2   : > { %8177 = vst [vmem:[#allocation186_spill] sm:$0xff] %v6716_v14  ;;  %vm2212_vm7 = vcmp.eq.s32.totalorder %v4821_v44, 2  ;;  %vm2211_vm8 = vcmp.eq.s32.totalorder %v4822_v39, 2  ;;  %v2274_v39 = vsel %vm2210_vm10, 1, %v7972_v56  ;;  %v6744_v31 = vpop.f32.mrf.mxu2  ;;  %v2285_v28 = vsel %vm2221_vm5, 1, %v7972_v56 }
 0x1e3   : > { %8178 = vst [vmem:[#allocation187_spill] sm:$0xff] %v6719_v53  ;;  %v2276_v61 = vsel %vm2212_vm7, 1, %v7972_v56  ;;  %v2275_v44 = vsel %vm2211_vm8, 1, %v7972_v56  ;;  %vm1205_vm7 = vcmp.eq.s32.totalorder %v5975_v10, 1  ;;  %vm2219_vm8 = vcmp.eq.s32.totalorder %v4832_v0, 2  ;;  %v6798_v10 = vpop.f32.mrf.mxu3 }
 0x1e4   : > { %8179 = vst [vmem:[#allocation188_spill] sm:$0xff] %v6721_v30 }
 0x1e5   : > { %2428 = vperm.xlu2 %4758, %v2273_v48   ;;  %2425 = vperm.xlu1 %4757, %v2272_v41   ;;  %8180 = vst [vmem:[#allocation189_spill] sm:$0xff] %v6744_v31  ;;  %v2277_v31 = vsel %vm2213_vm15, 1, %v7972_v56 }
 0x1e6   : > { %2422 = vperm.xlu0 %4756, %v2271_v23   ;;  %8186 = vst [vmem:[#allocation195_spill] sm:$0xff] %v6798_v10 }
 0x1e7   : > { %v6728_v47 = vpop.permute.xlu2 %2329  ;;  %v6730_v3 = vpop.permute.xlu1 %2299 }
 0x1e8   : > { %v6734_v2 = vpop.permute.xlu0 %2296  ;;  %v774_v53 = vpop.f32.mrf.mxu0  ;;  %vm2486_vm5 = vcmp.eq.s32.totalorder %v6730_v3, 1 }
 0x1e9   : > { %v1266_v48 = vsel %vm1202_vm9, %v774_v53, 0.0  ;;  %v1436_v41 = vpop.f32.mrf.mxu1  ;;  %v4825_v53 = vld [vmem:[%s5017_s8 + $0x190] sm:$0xff]  ;;  %vm1867_vm9 = vcmp.eq.s32.totalorder %v6585_v18, 1 }
 0x1ea   : > { %v6739_v23 = vsel %vm1864_vm11, %v1436_v41, %v1266_v48  ;;  %vm2214_vm13 = vcmp.eq.s32.totalorder %v4825_v53, 2  ;;  %v6762_v52 = vpop.f32.mrf.mxu2 }
 0x1eb   : > { %v2278_v53 = vsel %vm2214_vm13, 1, %v7972_v56  ;;  %8181 = vst [vmem:[#allocation190_spill] sm:$0xff] %v6762_v52 }
 0x1ed   : > { %2437 = vperm.xlu2 %4758, %v2276_v61   ;;  %2434 = vperm.xlu1 %4757, %v2275_v44  }
 0x1ee   : > { %2431 = vperm.xlu0 %4756, %v2274_v39  }
 0x1ef   : > { %v6746_v63 = vpop.permute.xlu2 %2338  ;;  %v6748_v32 = vpop.permute.xlu1 %2308 }
 0x1f0   : > { %v6752_v48 = vpop.permute.xlu0 %2305  ;;  %v777_v41 = vpop.f32.mrf.mxu0 }
 0x1f1   : > { %v1267_v61 = vsel %vm1203_vm14, %v777_v41, 0.0  ;;  %v1439_v44 = vpop.f32.mrf.mxu1  ;;  %v4828_v41 = vld [vmem:[%s5017_s8 + $0x1a8] sm:$0xff] }
 0x1f2   : > { %v6757_v39 = vsel %vm1865_vm1, %v1439_v44, %v1267_v61  ;;  %vm2217_vm3 = vcmp.eq.s32.totalorder %v4828_v41, 2  ;;  %vm1822_vm1 = vcmp.eq.s32.totalorder %v6151_v40, 1  ;;  %v8204_v40 = vld [vmem:[#allocation45_spill] sm:$0xff] }
 0x1f5   : > { %2446 = vperm.xlu2 %4758, %v2279_v27   ;;  %2443 = vperm.xlu1 %4757, %v2278_v53   ;;  %v2281_v53 = vsel %vm2217_vm3, 1, %v7972_v56  ;;  %vm2484_vm3 = vcmp.eq.s32.totalorder %v6651_v57, 1 }
 0x1f6   : > { %2440 = vperm.xlu0 %4756, %v2277_v31   ;;  %v2282_v31 = vsel %vm2218_vm2, 1, %v7972_v56  ;;  %vm1824_vm2 = vcmp.eq.s32.totalorder %v6190_v25, 1  ;;  %v8206_v25 = vld [vmem:[#allocation46_spill] sm:$0xff] }
 0x1f7   : > { %v6764_v17 = vpop.permute.xlu2 %2347  ;;  %v6766_v26 = vpop.permute.xlu1 %2317 }
 0x1f8   : > { %8182 = vst [vmem:[#allocation191_spill] sm:$0xff] %v6764_v17  ;;  %v6770_v61 = vpop.permute.xlu0 %2314  ;;  %v6772_v44 = vpop.f32.mrf.mxu0  ;;  %v4835_v17 = vld [vmem:[%s5017_s8 + $0x1d0] sm:$0xff] }
 0x1f9   : > { %8183 = vst [vmem:[#allocation192_spill] sm:$0xff] %v6772_v44  ;;  %v6775_v27 = vpop.f32.mrf.mxu1  ;;  %v2283_v44 = vsel %vm2219_vm8, 1, %v7972_v56  ;;  %vm2222_vm12 = vcmp.eq.s32.totalorder %v4835_v17, 2  ;;  %v4836_v17 = vld [vmem:[%s5017_s8 + $0x1e8] sm:$0xff] }
 0x1fa   : > { %8184 = vst [vmem:[#allocation193_spill] sm:$0xff] %v6775_v27  ;;  %vm2225_vm13 = vcmp.eq.s32.totalorder %v4836_v17, 2 }
 0x1fb   : > { %v2289_v5 = vsel %vm2225_vm13, 1, %v7972_v56  ;;  %vm1823_vm13 = vcmp.eq.s32.totalorder %v6060_v36, 1 }
 0x1fd   : > { %2455 = vperm.xlu2 %4758, %v2282_v31   ;;  %2452 = vperm.xlu1 %4757, %v2281_v53  }
 0x1fe   : > { %2449 = vperm.xlu0 %4756, %v2280_v55  }
 0x1ff   : > { %v6780_v62 = vpop.permute.xlu2 %2356  ;;  %v6782_v41 = vpop.permute.xlu1 %2326 }
 0x200   : > { %8185 = vst [vmem:[#allocation194_spill] sm:$0xff] %v6780_v62  ;;  %v6786_v24 = vpop.permute.xlu0 %2323  ;;  %v783_v27 = vpop.f32.mrf.mxu0 }
 0x201   : > { %v1269_v55 = vsel %vm1205_vm7, %v783_v27, 0.0  ;;  %v1445_v31 = vpop.f32.mrf.mxu1  ;;  %v6795_v62 = vpop.f32.mrf.mxu2  ;;  %v4833_v27 = vld [vmem:[%s5017_s8 + $0x1e0] sm:$0xff]  ;;  %vm1829_vm7 = vcmp.eq.s32.totalorder %v6120_v8, 1  ;;  %v8210_v8 = vld [vmem:[#allocation61_spill] sm:$0xff] }
 0x202   : > { %v6791_v53 = vsel %vm1867_vm9, %v1445_v31, %v1269_v55  ;;  %vm2224_vm10 = vcmp.eq.s32.totalorder %v4833_v27, 2  ;;  %v4834_v55 = vld [vmem:[%s5017_s8 + $0x1d8] sm:$0xff] }
 0x203   : > { %vm2223_vm11 = vcmp.eq.s32.totalorder %v4834_v55, 2  ;;  %v2288_v30 = vsel %vm2224_vm10, 1, %v7972_v56  ;;  %vm1826_vm10 = vcmp.eq.s32.totalorder %v6089_v29, 1 }
 0x205   : > { %2464 = vperm.xlu2 %4758, %v2285_v28   ;;  %2461 = vperm.xlu1 %4757, %v2284_v33   ;;  %v2287_v28 = vsel %vm2223_vm11, 1, %v7972_v56  ;;  %vm2491_vm11 = vcmp.eq.s32.totalorder %v6770_v61, 1  ;;  %v8211_v61 = vld [vmem:[#allocation37_spill] sm:$0xff] }
 0x206   : > { %2458 = vperm.xlu0 %4756, %v2283_v44   ;;  %v2286_v44 = vsel %vm2222_vm12, 1, %v7972_v56 }
 0x207   : > { %v6800_v0 = vpop.permute.xlu2 %2365  ;;  %v6802_v18 = vpop.permute.xlu1 %2335 }
 0x208   : > { %8187 = vst [vmem:[#allocation196_spill] sm:$0xff] %v6800_v0  ;;  %v6806_v31 = vpop.permute.xlu0 %2332  ;;  %v6820_v0 = vpop.f32.mrf.mxu3 }
 0x209   : > { %v6812_v33 = vpop.f32.mrf.mxu2  ;;  %8191 = vst [vmem:[#allocation200_spill] sm:$0xff] %v6820_v0 }
 0x20a   : > { %8188 = vst [vmem:[#allocation197_spill] sm:$0xff] %v6812_v33 }
 0x20d   : > { %2473 = vperm.xlu2 %4758, %v2288_v30   ;;  %2470 = vperm.xlu1 %4757, %v2287_v28  }
 0x20e   : > { %2467 = vperm.xlu0 %4756, %v2286_v44  }
 0x20f   : > { %v6814_v10 = vpop.permute.xlu2 %2374  ;;  %v6816_v27 = vpop.permute.xlu1 %2344 }
 0x210   : > { %8189 = vst [vmem:[#allocation198_spill] sm:$0xff] %v6814_v10  ;;  %v6818_v55 = vpop.permute.xlu0 %2341  ;;  %v6832_v44 = vpop.f32.mrf.mxu3 }
 0x211   : > { %8190 = vst [vmem:[#allocation199_spill] sm:$0xff] %v6818_v55  ;;  %v6824_v14 = vpop.f32.mrf.mxu2  ;;  %v8200_v55 = vld [vmem:[#allocation23_spill] sm:$0xff] }
 0x212   : > { %8192 = vst [vmem:[#allocation201_spill] sm:$0xff] %v6824_v14  ;;  %vm1160_vm15 = vcmp.eq.s32.totalorder %v8200_v55, 1  ;;  %v8203_v55 = vld [vmem:[#allocation30_spill] sm:$0xff] }
 0x213   : > { %8195 = vst [vmem:[#allocation204_spill] sm:$0xff] %v6832_v44 }
 0x216   : > { %2476 = vperm.xlu0 %4756, %v2289_v5  }
 0x217   : > { %v6826_v52 = vpop.permute.xlu2 %2383  ;;  %v6828_v30 = vpop.permute.xlu1 %2353 }
 0x218   : > { %8193 = vst [vmem:[#allocation202_spill] sm:$0xff] %v6826_v52  ;;  %v6830_v28 = vpop.permute.xlu0 %2350  ;;  %v6842_v5 = vpop.f32.mrf.mxu3 }
 0x219   : > { %8194 = vst [vmem:[#allocation203_spill] sm:$0xff] %v6830_v28  ;;  %v6840_v17 = vpop.f32.mrf.mxu2 }
 0x21a   : > { %8198 = vst [vmem:[#allocation207_spill] sm:$0xff] %v6842_v5  ;;  %v8205_v5 = vld [vmem:[#allocation31_spill] sm:$0xff] }
 0x21f   : > { %v6834_v33 = vpop.permute.xlu2 %2392  ;;  %v6836_v10 = vpop.permute.xlu1 %2362 }
 0x220   : > { %8196 = vst [vmem:[#allocation205_spill] sm:$0xff] %v6834_v33  ;;  %v6838_v0 = vpop.permute.xlu0 %2359 }
 0x221   : > { %8197 = vst [vmem:[#allocation206_spill] sm:$0xff] %v6838_v0  ;;  %v6854_v33 = vpop.f32.mrf.mxu2  ;;  %v6871_v0 = vpop.f32.mrf.mxu3 }
 0x227   : > { %v2402_v56 = vpop.permute.xlu2 %2401  ;;  %v6844_v14 = vpop.permute.xlu1 %2371 }
 0x228   : > { %vm2520_vm14 = vcmp.eq.s32.totalorder %v2402_v56, 1  ;;  %v6846_v52 = vpop.permute.xlu0 %2368  ;;  %v8202_v56 = vld [vmem:[#allocation22_spill] sm:$0xff] }
 0x229   : > { %8199 = vst [vmem:[#allocation208_spill] sm:$0xff] %v6846_v52  ;;  %v6851_v44 = vsel %vm2520_vm14, %v6725_v13, %v6624_v11  ;;  %vm1162_vm4 = vcmp.eq.s32.totalorder %v8202_v56, 1  ;;  %v1224_v11 = vsel %vm1160_vm15, %v8203_v55, 0.0  ;;  %v308_v56 = vld [vmem:[%s6862_s28 + $0x10] sm:$0xff]  ;;  %vm2488_vm14 = vcmp.eq.s32.totalorder %v6752_v48, 1 }
 0x22a   : > { %8201 = vst [vmem:[#allocation23_spill] sm:$0xff] %v6851_v44  ;;  %v1226_v13 = vsel %vm1162_vm4, %v8204_v40, 0.0  ;;  %v1886_v44 = vsel %vm1822_vm1, %v8205_v5, %v1224_v11  ;;  %v8208_v11 = vld [vmem:[#allocation35_spill] sm:$0xff]  ;;  %vm2485_vm15 = vcmp.eq.s32.totalorder %v6734_v2, 1  ;;  %v313_v40 = vld [vmem:[%s6862_s28 + $0x38] sm:$0xff] }
 0x22b   : > { %v1888_v52 = vsel %vm1824_vm2, %v8206_v25, %v1226_v13  ;;  %v2548_v57 = vsel %vm2484_vm3, %v5680_v42, %v1886_v44  ;;  %v8207_v44 = vld [vmem:[#allocation9_spill] sm:$0xff]  ;;  %vm1167_vm9 = vcmp.eq.s32.totalorder %v8208_v11, 1  ;;  %v8213_v13 = vld [vmem:[#allocation38_spill] sm:$0xff]  ;;  %v310_v2 = vld [vmem:[%s6862_s28 + $0x20] sm:$0xff]  ;;  %vm1842_vm3 = vcmp.eq.s32.totalorder %v6371_v35, 1 }
 0x22c   : > { %v2550_v28 = vsel %vm2486_vm5, %v5745_v19, %v1888_v52  ;;  %v2612_v5 = vmul.f32 %v2548_v57, %v306_v45  ;;  %vm1164_vm8 = vcmp.eq.s32.totalorder %v8207_v44, 1  ;;  %v8209_v19 = vld [vmem:[#allocation29_spill] sm:$0xff]  ;;  %v6893_v45 = vpop.f32.mrf.mxu2  ;;  %v6910_v44 = vpop.f32.mrf.mxu3  ;;  %v8221_v35 = vld [vmem:[#allocation20_spill] sm:$0xff] }
 0x22d   : > { %v2614_v42 = vmul.f32 %v2550_v28, %v308_v56  ;;  %vm1161_vm12 = vcmp.eq.s32.totalorder %v8209_v19, 1  ;;  %v8212_v28 = vld [vmem:[#allocation62_spill] sm:$0xff] }
 0x22e   : > { %v2676_v29 = vsel %vm438_vm0, %v2612_v5, 0.0 }
 0x22f   : > { %v2411_v15 = vpop.permute.xlu2 %2410  ;;  %v6875_v60 = vpop.permute.xlu1 %2380  ;;  %v2682_v48 = vsel %vm438_vm0, %v2614_v42, 0.0 }
 0x230   : > { %vm2523_vm6 = vcmp.eq.s32.totalorder %v2411_v15, 1  ;;  %v6878_v55 = vpop.permute.xlu0 %2377  ;;  %v1231_v15 = vsel %vm1167_vm9, %v5764_v46, 0.0  ;;  %vm2490_vm9 = vcmp.eq.s32.totalorder %v6690_v21, 1 }
 0x231   : > { %v6882_v3 = vsel %vm2523_vm6, %v6795_v62, %v6680_v38  ;;  %v1228_v38 = vsel %vm1164_vm8, %v8210_v8, 0.0  ;;  %v1893_v52 = vsel %vm1829_vm7, %v5770_v16, %v1231_v15  ;;  %v1225_v62 = vsel %vm1161_vm12, %v8211_v61, 0.0  ;;  %v8214_v15 = vld [vmem:[#allocation28_spill] sm:$0xff]  ;;  %v8215_v8 = vld [vmem:[#allocation42_spill] sm:$0xff] }
 0x232   : > { %v1890_v46 = vsel %vm1826_vm10, %v8212_v28, %v1228_v38  ;;  %v2555_v36 = vsel %vm2491_vm11, %v5896_v50, %v1893_v52  ;;  %v1887_v25 = vsel %vm1823_vm13, %v8213_v13, %v1225_v62  ;;  %v307_v50 = vld [vmem:[%s6862_s28 + $0x8] sm:$0xff]  ;;  %vm1163_vm2 = vcmp.eq.s32.totalorder %v8214_v15, 1  ;;  %v8216_v38 = vld [vmem:[#allocation127_spill] sm:$0xff] }
 0x233   : > { %v2552_v57 = vsel %vm2488_vm14, %v5805_v7, %v1890_v46  ;;  %v2549_v5 = vsel %vm2485_vm15, %v5714_v43, %v1887_v25  ;;  %v2619_v19 = vmul.f32 %v2555_v36, %v313_v40  ;;  %vm1180_vm4 = vcmp.eq.s32.totalorder %v8215_v8, 1  ;;  %v8217_v52 = vld [vmem:[#allocation36_spill] sm:$0xff] }
 0x234   : > { %v2616_v7 = vmul.f32 %v2552_v57, %v310_v2  ;;  %vm1828_vm5 = vcmp.eq.s32.totalorder %v8216_v38, 1  ;;  %vm2504_vm6 = vcmp.eq.s32.totalorder %v6828_v30, 1  ;;  %v2613_v43 = vmul.f32 %v2549_v5, %v307_v50  ;;  %v8222_v30 = vld [vmem:[#allocation53_spill] sm:$0xff]  ;;  %v8224_v13 = vld [vmem:[#allocation40_spill] sm:$0xff]  ;;  %v2107_v21 = vpop.f32.mrf.mxu2  ;;  %v8225_v2 = vld [vmem:[#allocation54_spill] sm:$0xff] }
 0x235   : > { %vm1166_vm7 = vcmp.eq.s32.totalorder %v8217_v52, 1  ;;  %vm2487_vm10 = vcmp.eq.s32.totalorder %v6669_v49, 1  ;;  %v2697_v46 = vsel %vm438_vm0, %v2619_v19, 0.0  ;;  %v1227_v36 = vsel %vm1163_vm2, %v8222_v30, 0.0  ;;  %v8226_v50 = vld [vmem:[#allocation87_spill] sm:$0xff]  ;;  %v312_v52 = vld [vmem:[%s6862_s28 + $0x30] sm:$0xff]  ;;  %v6956_v49 = vpop.f32.mrf.mxu3 }
 0x236   : > { %2677 = vadd.xlane.f32.xlu2 %v2676_v29  ;;  %v8218_v29 = vld [vmem:[#allocation19_spill] sm:$0xff]  ;;  %v2688_v57 = vsel %vm438_vm0, %v2616_v7, 0.0  ;;  %v2679_v19 = vsel %vm438_vm0, %v2613_v43, 0.0  ;;  %v309_v7 = vld [vmem:[%s6862_s28 + $0x18] sm:$0xff]  ;;  %vm1845_vm14 = vcmp.eq.s32.totalorder %v6400_v37, 1  ;;  %v8230_v30 = vld [vmem:[#allocation132_spill] sm:$0xff] }
 0x237   : > { %v2420_v16 = vpop.permute.xlu2 %2419  ;;  %v6906_v56 = vpop.permute.xlu1 %2389  ;;  %2683 = vadd.xlane.f32.xlu1 %v2682_v48  ;;  %v1244_v61 = vsel %vm1180_vm4, %v8218_v29, 0.0  ;;  %v8223_v48 = vld [vmem:[#allocation72_spill] sm:$0xff]  ;;  %v8227_v29 = vld [vmem:[#allocation74_spill] sm:$0xff]  ;;  %vm2507_vm2 = vcmp.eq.s32.totalorder %v6836_v10, 1 }
 0x238   : > { %vm2526_vm1 = vcmp.eq.s32.totalorder %v2420_v16, 1  ;;  %v6912_v11 = vpop.permute.xlu0 %2386  ;;  %v1906_v28 = vsel %vm1842_vm3, %v8221_v35, %v1244_v61  ;;  %v326_v16 = vld [vmem:[%s6862_s28 + $0xa0] sm:$0xff]  ;;  %v8228_v35 = vld [vmem:[#allocation13_spill] sm:$0xff]  ;;  %v8234_v37 = vld [vmem:[#allocation80_spill] sm:$0xff] }
 0x239   : > { %v6917_v42 = vsel %vm2526_vm1, %v6840_v17, %v6739_v23  ;;  %v8219_v23 = vld [vmem:[#allocation124_spill] sm:$0xff]  ;;  %v8220_v17 = vld [vmem:[#allocation71_spill] sm:$0xff]  ;;  %v2568_v25 = vsel %vm2504_vm6, %v8224_v13, %v1906_v28  ;;  %vm1165_vm13 = vcmp.eq.s32.totalorder %v8228_v35, 1  ;;  %vm1831_vm1 = vcmp.eq.s32.totalorder %v8230_v30, 1 }
 0x23a   : > { %vm1825_vm8 = vcmp.eq.s32.totalorder %v8219_v23, 1  ;;  %v1230_v62 = vsel %vm1166_vm7, %v8220_v17, 0.0  ;;  %v2632_v43 = vmul.f32 %v2568_v25, %v326_v16  ;;  %v8235_v13 = vld [vmem:[#allocation32_spill] sm:$0xff]  ;;  %vm2489_vm6 = vcmp.eq.s32.totalorder %v6748_v32, 1  ;;  %v8237_v16 = vld [vmem:[#allocation81_spill] sm:$0xff] }
 0x23b   : > { %v1892_v40 = vsel %vm1828_vm5, %v8223_v48, %v1230_v62  ;;  %v1889_v5 = vsel %vm1825_vm8, %v8225_v2, %v1227_v36  ;;  %v8233_v36 = vld [vmem:[#allocation133_spill] sm:$0xff]  ;;  %vm2493_vm5 = vcmp.eq.s32.totalorder %v6709_v58, 1  ;;  %vm2510_vm8 = vcmp.eq.s32.totalorder %v6844_v14, 1 }
 0x23c   : > { %v2554_v15 = vsel %vm2490_vm9, %v8226_v50, %v1892_v40  ;;  %v2551_v61 = vsel %vm2487_vm10, %v8227_v29, %v1889_v5  ;;  %v8238_v5 = vld [vmem:[#allocation145_spill] sm:$0xff] }
 0x23d   : > { %v2618_v28 = vmul.f32 %v2554_v15, %v312_v52  ;;  %v329_v15 = vld [vmem:[%s6862_s28 + $0xb8] sm:$0xff] }
 0x23e   : > { %2698 = vadd.xlane.f32.xlu2 %v2697_v46  ;;  %v8229_v46 = vld [vmem:[#allocation50_spill] sm:$0xff] }
 0x23f   : > { %v2429_v8 = vpop.permute.xlu2 %2428  ;;  %v2399_v38 = vpop.permute.xlu1 %2398  ;;  %2689 = vadd.xlane.f32.xlu1 %v2688_v57  ;;  %vm1183_vm15 = vcmp.eq.s32.totalorder %v8229_v46, 1  ;;  %v2736_v57 = vsel %vm438_vm0, %v2632_v43, 0.0  ;;  %v2694_v58 = vsel %vm438_vm0, %v2618_v28, 0.0  ;;  %v311_v46 = vld [vmem:[%s6862_s28 + $0x28] sm:$0xff]  ;;  %v8242_v28 = vld [vmem:[#allocation49_spill] sm:$0xff] }
 0x240   : > { %vm2529_vm11 = vcmp.eq.s32.totalorder %v2429_v8, 1  ;;  %vm2519_vm12 = vcmp.eq.s32.totalorder %v2399_v38, 1  ;;  %v6944_v23 = vpop.permute.xlu0 %2395  ;;  %2680 = vadd.xlane.f32.xlu0 %v2679_v19  ;;  %v1247_v48 = vsel %vm1183_vm15, %v8233_v36, 0.0  ;;  %v8239_v8 = vld [vmem:[#allocation67_spill] sm:$0xff]  ;;  %vm1833_vm7 = vcmp.eq.s32.totalorder %v8242_v28, 1  ;;  %v8243_v36 = vld [vmem:[#allocation21_spill] sm:$0xff] }
 0x241   : > { %v6949_v17 = vsel %vm2519_vm12, %v6688_v34, %v6600_v9  ;;  %v6952_v62 = vsel %vm2529_vm11, %v2107_v21, %v6791_v53  ;;  %v2615_v9 = vmul.f32 %v2551_v61, %v309_v7  ;;  %v8231_v34 = vld [vmem:[#allocation44_spill] sm:$0xff]  ;;  %v8232_v53 = vld [vmem:[#allocation33_spill] sm:$0xff]  ;;  %v1909_v25 = vsel %vm1845_vm14, %v8235_v13, %v1247_v48  ;;  %v8236_v21 = vld [vmem:[#allocation66_spill] sm:$0xff] }
 0x242   : > { %vm1169_vm3 = vcmp.eq.s32.totalorder %v8231_v34, 1  ;;  %vm1827_vm4 = vcmp.eq.s32.totalorder %v8232_v53, 1  ;;  %v1229_v10 = vsel %vm1165_vm13, %v8236_v21, 0.0  ;;  %v2571_v50 = vsel %vm2507_vm2, %v8238_v5, %v1909_v25  ;;  %v8240_v19 = vld [vmem:[#allocation99_spill] sm:$0xff]  ;;  %v315_v61 = vld [vmem:[%s6862_s28 + $0x48] sm:$0xff]  ;;  %v8241_v7 = vld [vmem:[#allocation82_spill] sm:$0xff] }
 0x243   : > { %v1233_v40 = vsel %vm1169_vm3, %v8234_v37, 0.0  ;;  %v1891_v38 = vsel %vm1827_vm4, %v8239_v8, %v1229_v10  ;;  %v2685_v29 = vsel %vm438_vm0, %v2615_v9, 0.0  ;;  %v2635_v30 = vmul.f32 %v2571_v50, %v329_v15  ;;  %v8244_v48 = vld [vmem:[#allocation41_spill] sm:$0xff]  ;;  %v6991_v9 = vpop.f32.mrf.mxu3  ;;  %v8248_v21 = vld [vmem:[#allocation90_spill] sm:$0xff] }
 0x244   : > { %v1895_v2 = vsel %vm1831_vm1, %v8237_v16, %v1233_v40  ;;  %v2553_v43 = vsel %vm2489_vm6, %v8241_v7, %v1891_v38  ;;  %vm1171_vm9 = vcmp.eq.s32.totalorder %v8243_v36, 1  ;;  %vm1830_vm10 = vcmp.eq.s32.totalorder %v8244_v48, 1  ;;  %v8245_v37 = vld [vmem:[#allocation17_spill] sm:$0xff]  ;;  %v8249_v5 = vld [vmem:[#allocation78_spill] sm:$0xff]  ;;  %v8252_v7 = vld [vmem:[#allocation43_spill] sm:$0xff] }
 0x245   : > { %v2557_v52 = vsel %vm2493_vm5, %v8240_v19, %v1895_v2  ;;  %v2617_v53 = vmul.f32 %v2553_v43, %v311_v46  ;;  %vm2495_vm11 = vcmp.eq.s32.totalorder %v6782_v41, 1  ;;  %vm1168_vm12 = vcmp.eq.s32.totalorder %v8245_v37, 1  ;;  %v8246_v40 = vld [vmem:[#allocation89_spill] sm:$0xff]  ;;  %v317_v38 = vld [vmem:[%s6862_s28 + $0x58] sm:$0xff]  ;;  %v8251_v19 = vld [vmem:[#allocation95_spill] sm:$0xff] }
 0x246   : > { %2737 = vadd.xlane.f32.xlu2 %v2736_v57  ;;  %v2621_v34 = vmul.f32 %v2557_v52, %v315_v61  ;;  %v1235_v13 = vsel %vm1171_vm9, %v8246_v40, 0.0  ;;  %vm2492_vm13 = vcmp.eq.s32.totalorder %v6766_v26, 1  ;;  %v2745_v25 = vsel %vm438_vm0, %v2635_v30, 0.0  ;;  %v8247_v57 = vld [vmem:[#allocation77_spill] sm:$0xff]  ;;  %v8253_v43 = vld [vmem:[#allocation123_spill] sm:$0xff]  ;;  %v8259_v40 = vld [vmem:[#allocation98_spill] sm:$0xff] }
 0x247   : > { %v6978_v32 = vpop.permute.xlu2 %2437  ;;  %2695 = vadd.xlane.f32.xlu1 %v2694_v58  ;;  %v1232_v14 = vsel %vm1168_vm12, %v8247_v57, 0.0  ;;  %v1897_v10 = vsel %vm1833_vm7, %v8248_v21, %v1235_v13  ;;  %v2574_v16 = vsel %vm2510_vm8, %v6482_v6, %v6445_v54  ;;  %v332_v2 = vld [vmem:[%s6862_s28 + $0xd0] sm:$0xff]  ;;  %v8250_v58 = vld [vmem:[#allocation111_spill] sm:$0xff]  ;;  %v2691_v26 = vsel %vm438_vm0, %v2617_v53, 0.0 }
 0x248   : > { %v6983_v35 = vpop.permute.xlu0 %2404  ;;  %2686 = vadd.xlane.f32.xlu0 %v2685_v29  ;;  %v2703_v41 = vsel %vm438_vm0, %v2621_v34, 0.0  ;;  %v1894_v50 = vsel %vm1830_vm10, %v8249_v5, %v1232_v14  ;;  %v2559_v15 = vsel %vm2495_vm11, %v8250_v58, %v1897_v10  ;;  %v314_v54 = vld [vmem:[%s6862_s28 + $0x40] sm:$0xff]  ;;  %v2638_v6 = vmul.f32 %v2574_v16, %v332_v2  ;;  %v8256_v28 = vld [vmem:[#allocation121_spill] sm:$0xff]  ;;  %v335_v14 = vld [vmem:[%s6862_s28 + $0xe8] sm:$0xff] }
 0x249   : > { %v2556_v52 = vsel %vm2492_vm13, %v8251_v19, %v1894_v50  ;;  %v2623_v61 = vmul.f32 %v2559_v15, %v317_v38  ;;  %vm1170_vm14 = vcmp.eq.s32.totalorder %v8252_v7, 1  ;;  %vm1835_vm15 = vcmp.eq.s32.totalorder %v8253_v43, 1  ;;  %v8254_v30 = vld [vmem:[#allocation51_spill] sm:$0xff]  ;;  %v8257_v53 = vld [vmem:[#allocation97_spill] sm:$0xff]  ;;  %v8262_v2 = vld [vmem:[#allocation118_spill] sm:$0xff] }
 0x24a   : > { %vm2513_vm1 = vcmp.eq.s32.totalorder %v6875_v60, 1  ;;  %v2620_v46 = vmul.f32 %v2556_v52, %v314_v54  ;;  %vm1173_vm2 = vcmp.eq.s32.totalorder %v8254_v30, 1  ;;  %v8255_v34 = vld [vmem:[#allocation7_spill] sm:$0xff]  ;;  %vm1832_vm4 = vcmp.eq.s32.totalorder %v8256_v28, 1  ;;  %v8258_v60 = vld [vmem:[#allocation84_spill] sm:$0xff]  ;;  %v8261_v16 = vld [vmem:[#allocation85_spill] sm:$0xff] }
 0x24b   : > { %vm1214_vm3 = vcmp.eq.s32.totalorder %v8255_v34, 1  ;;  %vm2497_vm5 = vcmp.eq.s32.totalorder %v6806_v31, 1  ;;  %v1237_v36 = vsel %vm1173_vm2, %v8257_v53, 0.0  ;;  %vm1876_vm6 = vcmp.eq.s32.totalorder %v6653_v4, 1  ;;  %v7028_v57 = vpop.f32.mrf.mxu3  ;;  %v8260_v21 = vld [vmem:[#allocation75_spill] sm:$0xff]  ;;  %v319_v15 = vld [vmem:[%s6862_s28 + $0x68] sm:$0xff] }
 0x24c   : > { %vm2494_vm7 = vcmp.eq.s32.totalorder %v6786_v24, 1  ;;  %v2754_v48 = vsel %vm438_vm0, %v2638_v6, 0.0  ;;  %v1234_v37 = vsel %vm1170_vm14, %v8258_v60, 0.0  ;;  %v1899_v13 = vsel %vm1835_vm15, %v8259_v40, %v1237_v36  ;;  %v316_v52 = vld [vmem:[%s6862_s28 + $0x50] sm:$0xff]  ;;  %v8265_v43 = vld [vmem:[#allocation52_spill] sm:$0xff]  ;;  %v8266_v24 = vld [vmem:[#allocation139_spill] sm:$0xff] }
 0x24d   : > { %v2709_v31 = vsel %vm438_vm0, %v2623_v61, 0.0  ;;  %v1278_v10 = vsel %vm1214_vm3, %v8260_v21, 0.0  ;;  %v2561_v5 = vsel %vm2497_vm5, %v8262_v2, %v1899_v13  ;;  %v2700_v58 = vsel %vm438_vm0, %v2620_v46, 0.0  ;;  %v7047_v61 = vpop.permute.xlu1 %2407  ;;  %v8267_v30 = vld [vmem:[#allocation60_spill] sm:$0xff]  ;;  %v8269_v34 = vld [vmem:[#allocation137_spill] sm:$0xff]  ;;  %v8272_v36 = vld [vmem:[#allocation110_spill] sm:$0xff] }
 0x24e   : > { %2746 = vadd.xlane.f32.xlu2 %v2745_v25  ;;  %v2577_v25 = vsel %vm2513_vm1, %v6559_v12, %v6472_v20  ;;  %v8264_v12 = vld [vmem:[#allocation105_spill] sm:$0xff]  ;;  %v2625_v4 = vmul.f32 %v2561_v5, %v319_v15  ;;  %vm1172_vm10 = vcmp.eq.s32.totalorder %v8265_v43, 1  ;;  %vm1837_vm11 = vcmp.eq.s32.totalorder %v8266_v24, 1  ;;  %v8273_v40 = vld [vmem:[#allocation91_spill] sm:$0xff] }
 0x24f   : > { %v7005_v8 = vpop.permute.xlu2 %2446  ;;  %2704 = vadd.xlane.f32.xlu1 %v2703_v41  ;;  %v1896_v41 = vsel %vm1832_vm4, %v8261_v16, %v1234_v37  ;;  %v2641_v6 = vmul.f32 %v2577_v25, %v335_v14  ;;  %vm2516_vm12 = vcmp.eq.s32.totalorder %v6906_v56, 1  ;;  %vm1175_vm13 = vcmp.eq.s32.totalorder %v8267_v30, 1  ;;  %v8270_v28 = vld [vmem:[#allocation109_spill] sm:$0xff]  ;;  %v338_v37 = vld [vmem:[%s6862_s28 + $0x100] sm:$0xff]  ;;  %v8274_v25 = vld [vmem:[#allocation94_spill] sm:$0xff] }
 0x250   : > { %v7010_v29 = vpop.permute.xlu0 %2413  ;;  %2692 = vadd.xlane.f32.xlu0 %v2691_v26  ;;  %v8263_v26 = vld [vmem:[#allocation146_spill] sm:$0xff]  ;;  %v2558_v38 = vsel %vm2494_vm7, %v8264_v12, %v1896_v41  ;;  %vm1834_vm15 = vcmp.eq.s32.totalorder %v8269_v34, 1  ;;  %vm2499_vm1 = vcmp.eq.s32.totalorder %v6746_v63, 1  ;;  %vm1879_vm2 = vcmp.eq.s32.totalorder %v6671_v51, 1  ;;  %v8271_v53 = vld [vmem:[#allocation93_spill] sm:$0xff] }
 0x251   : > { %v1940_v20 = vsel %vm1876_vm6, %v8263_v26, %v1278_v10  ;;  %v2622_v46 = vmul.f32 %v2558_v38, %v316_v52  ;;  %vm2496_vm3 = vcmp.eq.s32.totalorder %v6728_v47, 1  ;;  %v1236_v56 = vsel %vm1172_vm10, %v8271_v53, 0.0  ;;  %v8275_v14 = vld [vmem:[#allocation10_spill] sm:$0xff]  ;;  %v8279_v51 = vld [vmem:[#allocation57_spill] sm:$0xff]  ;;  %v8280_v47 = vld [vmem:[#allocation27_spill] sm:$0xff] }
 0x252   : > { %v2580_v60 = vsel %vm2516_vm12, %v6628_v1, %v6533_v59  ;;  %v2715_v63 = vsel %vm438_vm0, %v2625_v4, 0.0  ;;  %v321_v41 = vld [vmem:[%s6862_s28 + $0x78] sm:$0xff]  ;;  %v8276_v1 = vld [vmem:[#allocation117_spill] sm:$0xff]  ;;  %vm1836_vm7 = vcmp.eq.s32.totalorder %v8279_v51, 1  ;;  %vm2498_vm10 = vcmp.eq.s32.totalorder %v6802_v18, 1  ;;  %v323_v53 = vld [vmem:[%s6862_s28 + $0x88] sm:$0xff] }
 0x253   : > { %v2706_v16 = vsel %vm438_vm0, %v2622_v46, 0.0  ;;  %v2143_v5 = vpop.f32.mrf.mxu3  ;;  %v2644_v15 = vmul.f32 %v2580_v60, %v338_v37  ;;  %v8278_v38 = vld [vmem:[#allocation34_spill] sm:$0xff]  ;;  %v8283_v24 = vld [vmem:[#allocation5_spill] sm:$0xff] }
 0x254   : > { %vm1177_vm6 = vcmp.eq.s32.totalorder %v8278_v38, 1  ;;  %v8282_v4 = vld [vmem:[#allocation102_spill] sm:$0xff] }
 0x256   : > { %2755 = vadd.xlane.f32.xlu2 %v2754_v48 }
 0x257   : > { %v2456_v50 = vpop.permute.xlu2 %2455  ;;  %2710 = vadd.xlane.f32.xlu1 %v2709_v31  ;;  %v1898_v31 = vsel %vm1834_vm15, %v8274_v25, %v1236_v56  ;;  %v8286_v56 = vld [vmem:[#allocation120_spill] sm:$0xff]  ;;  %v8290_v25 = vld [vmem:[#allocation131_spill] sm:$0xff] }
 0x258   : > { %vm2538_vm8 = vcmp.eq.s32.totalorder %v2456_v50, 1  ;;  %v2423_v19 = vpop.permute.xlu0 %2422  ;;  %2701 = vadd.xlane.f32.xlu0 %v2700_v58  ;;  %v2560_v2 = vsel %vm2496_vm3, %v8276_v1, %v1898_v31  ;;  %v318_v50 = vld [vmem:[%s6862_s28 + $0x60] sm:$0xff] }
 0x259   : > { %v7045_v54 = vsel %vm2538_vm8, %v6956_v49, %v1940_v20  ;;  %vm2527_vm9 = vcmp.eq.s32.totalorder %v2423_v19, 1  ;;  %v8268_v49 = vld [vmem:[#allocation11_spill] sm:$0xff]  ;;  %v8277_v20 = vld [vmem:[#allocation142_spill] sm:$0xff]  ;;  %v2624_v12 = vmul.f32 %v2560_v2, %v318_v50  ;;  %vm2501_vm8 = vcmp.eq.s32.totalorder %v6816_v27, 1  ;;  %v8281_v19 = vld [vmem:[#allocation8_spill] sm:$0xff] }
 0x25a   : > { %v7051_v7 = vsel %vm2527_vm9, %v6854_v33, %v6757_v39  ;;  %vm1217_vm14 = vcmp.eq.s32.totalorder %v8268_v49, 1  ;;  %v1239_v39 = vsel %vm1175_vm13, %v8270_v28, 0.0  ;;  %v2763_v33 = vsel %vm438_vm0, %v2641_v6, 0.0  ;;  %v341_v49 = vld [vmem:[%s6862_s28 + $0x118] sm:$0xff]  ;;  %v8284_v27 = vld [vmem:[#allocation103_spill] sm:$0xff]  ;;  %v8285_v28 = vld [vmem:[#allocation125_spill] sm:$0xff] }
 0x25b   : > { %v1901_v48 = vsel %vm1837_vm11, %v8272_v36, %v1239_v39  ;;  %v1281_v13 = vsel %vm1217_vm14, %v8273_v40, 0.0  ;;  %vm1839_vm5 = vcmp.eq.s32.totalorder %v8277_v20, 1  ;;  %vm1174_vm9 = vcmp.eq.s32.totalorder %v8280_v47, 1  ;;  %v320_v36 = vld [vmem:[%s6862_s28 + $0x70] sm:$0xff]  ;;  %v8297_v2 = vld [vmem:[#allocation199_spill] sm:$0xff]  ;;  %v8300_v20 = vld [vmem:[#allocation190_spill] sm:$0xff] }
 0x25c   : > { %v2563_v21 = vsel %vm2499_vm1, %v8275_v14, %v1901_v48  ;;  %v1943_v59 = vsel %vm1879_vm2, %v6517_v22, %v1281_v13  ;;  %v7088_v22 = vpop.permute.xlu1 %2416  ;;  %v1241_v52 = vsel %vm1177_vm6, %v8281_v19, 0.0  ;;  %v2772_v6 = vsel %vm438_vm0, %v2644_v15, 0.0  ;;  %v8287_v48 = vld [vmem:[#allocation76_spill] sm:$0xff]  ;;  %v8289_v13 = vld [vmem:[#allocation59_spill] sm:$0xff]  ;;  %v344_v47 = vld [vmem:[%s6862_s28 + $0x130] sm:$0xff] }
 0x25d   : > { %v2627_v26 = vmul.f32 %v2563_v21, %v321_v41  ;;  %v1238_v43 = vsel %vm1174_vm9, %v8282_v4, 0.0  ;;  %v1903_v46 = vsel %vm1839_vm5, %v8283_v24, %v1241_v52  ;;  %vm1198_vm11 = vcmp.eq.s32.totalorder %v8287_v48, 1  ;;  %v8291_v14 = vld [vmem:[#allocation64_spill] sm:$0xff]  ;;  %v8292_v21 = vld [vmem:[#allocation126_spill] sm:$0xff]  ;;  %v8309_v48 = vld [vmem:[#allocation141_spill] sm:$0xff] }
 0x25e   : > { %2764 = vadd.xlane.f32.xlu2 %v2763_v33  ;;  %v1900_v34 = vsel %vm1836_vm7, %v8284_v27, %v1238_v43  ;;  %v2565_v39 = vsel %vm2501_vm8, %v8285_v28, %v1903_v46  ;;  %v2712_v33 = vsel %vm438_vm0, %v2624_v12, 0.0  ;;  %v2647_v60 = vmul.f32 %v6949_v17, %v341_v49  ;;  %v8295_v17 = vld [vmem:[#allocation15_spill] sm:$0xff]  ;;  %v8299_v15 = vld [vmem:[#allocation16_spill] sm:$0xff]  ;;  %v325_v24 = vld [vmem:[%s6862_s28 + $0x98] sm:$0xff] }
 0x25f   : > { %v2465_v10 = vpop.permute.xlu2 %2464  ;;  %2716 = vadd.xlane.f32.xlu1 %v2715_v63  ;;  %v2721_v30 = vsel %vm438_vm0, %v2627_v26, 0.0  ;;  %v2562_v18 = vsel %vm2498_vm10, %v8286_v56, %v1900_v34  ;;  %v8288_v63 = vld [vmem:[#allocation177_spill] sm:$0xff]  ;;  %v2629_v40 = vmul.f32 %v2565_v39, %v323_v53  ;;  %vm1176_vm12 = vcmp.eq.s32.totalorder %v8289_v13, 1  ;;  %v8301_v19 = vld [vmem:[#allocation116_spill] sm:$0xff]  ;;  %v8303_v46 = vld [vmem:[#allocation122_spill] sm:$0xff] }
 0x260   : > { %vm2541_vm4 = vcmp.eq.s32.totalorder %v2465_v10, 1  ;;  %2707 = vadd.xlane.f32.xlu0 %v2706_v16  ;;  %v1262_v37 = vsel %vm1198_vm11, %v8288_v63, 0.0  ;;  %vm1841_vm13 = vcmp.eq.s32.totalorder %v8290_v25, 1  ;;  %vm2522_vm14 = vcmp.eq.s32.totalorder %v7047_v61, 1  ;;  %v8293_v10 = vld [vmem:[#allocation158_spill] sm:$0xff]  ;;  %v8294_v16 = vld [vmem:[#allocation203_spill] sm:$0xff] }
 0x261   : > { %v7082_v58 = vsel %vm2541_vm4, %v2143_v5, %v1943_v59  ;;  %v2626_v31 = vmul.f32 %v2562_v18, %v320_v36  ;;  %vm1179_vm15 = vcmp.eq.s32.totalorder %v8291_v14, 1  ;;  %vm1838_vm1 = vcmp.eq.s32.totalorder %v8292_v21, 1  ;;  %v8296_v59 = vld [vmem:[#allocation178_spill] sm:$0xff]  ;;  %v8298_v5 = vld [vmem:[#allocation115_spill] sm:$0xff]  ;;  %v8306_v53 = vld [vmem:[#allocation65_spill] sm:$0xff]  ;;  %v7143_v14 = vpop.f32.mrf.mxu0 }
 0x262   : > { %vm1860_vm2 = vcmp.eq.s32.totalorder %v8293_v10, 1  ;;  %vm2503_vm3 = vcmp.eq.s32.totalorder %v8294_v16, 1  ;;  %v1243_v41 = vsel %vm1179_vm15, %v8295_v17, 0.0  ;;  %vm2500_vm4 = vcmp.eq.s32.totalorder %v8297_v2, 1  ;;  %v322_v49 = vld [vmem:[%s6862_s28 + $0x80] sm:$0xff]  ;;  %v8305_v28 = vld [vmem:[#allocation186_spill] sm:$0xff] }
 0x263   : > { %v1924_v1 = vsel %vm1860_vm2, %v8296_v59, %v1262_v37  ;;  %v2781_v61 = vsel %vm438_vm0, %v2647_v60, 0.0  ;;  %v1240_v50 = vsel %vm1176_vm12, %v8298_v5, 0.0  ;;  %v1905_v26 = vsel %vm1841_vm13, %v8299_v15, %v1243_v41  ;;  %v8304_v27 = vld [vmem:[#allocation79_spill] sm:$0xff]  ;;  %v8307_v56 = vld [vmem:[#allocation136_spill] sm:$0xff]  ;;  %v8308_v36 = vld [vmem:[#allocation69_spill] sm:$0xff] }
 0x264   : > { %v2586_v12 = vsel %vm2522_vm14, %v8300_v20, %v1924_v1  ;;  %v7121_v38 = vpop.permute.xlu1 %2425  ;;  %v2727_v51 = vsel %vm438_vm0, %v2629_v40, 0.0  ;;  %v1902_v52 = vsel %vm1838_vm1, %v8301_v19, %v1240_v50  ;;  %v2718_v43 = vsel %vm438_vm0, %v2626_v31, 0.0  ;;  %v8310_v60 = vld [vmem:[#allocation161_spill] sm:$0xff]  ;;  %v8311_v63 = vld [vmem:[#allocation206_spill] sm:$0xff]  ;;  %v8312_v37 = vld [vmem:[#allocation128_spill] sm:$0xff] }
 0x265   : > { %vm1201_vm5 = vcmp.eq.s32.totalorder %v8304_v27, 1  ;;  %v2650_v34 = vmul.f32 %v2586_v12, %v344_v47  ;;  %vm1178_vm6 = vcmp.eq.s32.totalorder %v8306_v53, 1  ;;  %vm1844_vm7 = vcmp.eq.s32.totalorder %v8307_v56, 1  ;;  %v8313_v13 = vld [vmem:[#allocation188_spill] sm:$0xff]  ;;  %v8314_v31 = vld [vmem:[#allocation191_spill] sm:$0xff]  ;;  %v8317_v41 = vld [vmem:[#allocation201_spill] sm:$0xff]  ;;  %v7156_v47 = vpop.f32.mrf.mxu1 }
 0x266   : > { %2773 = vadd.xlane.f32.xlu2 %v2772_v6  ;;  %v8302_v6 = vld [vmem:[#allocation134_spill] sm:$0xff]  ;;  %v1265_v39 = vsel %vm1201_vm5, %v8305_v28, 0.0  ;;  %vm2525_vm8 = vcmp.eq.s32.totalorder %v7088_v22, 1  ;;  %vm1182_vm9 = vcmp.eq.s32.totalorder %v8308_v36, 1  ;;  %vm1840_vm10 = vcmp.eq.s32.totalorder %v8309_v48, 1  ;;  %v8315_v21 = vld [vmem:[#allocation12_spill] sm:$0xff] }
 0x267   : > { %2722 = vadd.xlane.f32.xlu1 %v2721_v30  ;;  %v2567_v4 = vsel %vm2503_vm3, %v8302_v6, %v1905_v26  ;;  %v2564_v30 = vsel %vm2500_vm4, %v8303_v46, %v1902_v52  ;;  %vm1863_vm11 = vcmp.eq.s32.totalorder %v8310_v60, 1  ;;  %vm2506_vm12 = vcmp.eq.s32.totalorder %v8311_v63, 1  ;;  %v8316_v16 = vld [vmem:[#allocation24_spill] sm:$0xff]  ;;  %v8319_v50 = vld [vmem:[#allocation143_spill] sm:$0xff]  ;;  %v328_v20 = vld [vmem:[%s6862_s28 + $0xb0] sm:$0xff] }
 0x268   : > { %2713 = vadd.xlane.f32.xlu0 %v2712_v33  ;;  %v2631_v33 = vmul.f32 %v2567_v4, %v325_v24  ;;  %v2628_v18 = vmul.f32 %v2564_v30, %v322_v49  ;;  %v1246_v40 = vsel %vm1182_vm9, %v8312_v37, 0.0  ;;  %v1927_v25 = vsel %vm1863_vm11, %v8313_v13, %v1265_v39  ;;  %v347_v2 = vld [vmem:[%s6862_s28 + $0x148] sm:$0xff]  ;;  %v8320_v12 = vld [vmem:[#allocation130_spill] sm:$0xff]  ;;  %v324_v52 = vld [vmem:[%s6862_s28 + $0x90] sm:$0xff]  ;;  %v7160_v4 = vpop.f32.mrf.mxu2  ;;  %v7163_v30 = vpop.permute.xlu0 %2431 }
 0x269   : > { %vm2502_vm13 = vcmp.eq.s32.totalorder %v8314_v31, 1  ;;  %v2790_v22 = vsel %vm438_vm0, %v2650_v34, 0.0  ;;  %v1242_v10 = vsel %vm1178_vm6, %v8315_v21, 0.0  ;;  %v1908_v17 = vsel %vm1844_vm7, %v8316_v16, %v1246_v40  ;;  %v8321_v6 = vld [vmem:[#allocation83_spill] sm:$0xff]  ;;  %v8322_v24 = vld [vmem:[#allocation192_spill] sm:$0xff]  ;;  %v8324_v28 = vld [vmem:[#allocation165_spill] sm:$0xff] }
 0x26a   : > { %v2589_v59 = vsel %vm2525_vm8, %v8317_v41, %v1927_v25  ;;  %v2733_v1 = vsel %vm438_vm0, %v2631_v33, 0.0  ;;  %v2570_v15 = vsel %vm2506_vm12, %v8319_v50, %v1908_v17  ;;  %v2724_v26 = vsel %vm438_vm0, %v2628_v18, 0.0  ;;  %v8323_v34 = vld [vmem:[#allocation144_spill] sm:$0xff]  ;;  %v8326_v33 = vld [vmem:[#allocation70_spill] sm:$0xff]  ;;  %v8327_v53 = vld [vmem:[#allocation193_spill] sm:$0xff]  ;;  %v789_v25 = vpop.f32.mrf.mxu0 }
 0x26b   : > { %vm1204_vm14 = vcmp.eq.s32.totalorder %v8321_v6, 1  ;;  %v2634_v49 = vmul.f32 %v2570_v15, %v328_v20  ;;  %vm2528_vm15 = vcmp.eq.s32.totalorder %v7121_v38, 1  ;;  %vm1843_vm1 = vcmp.eq.s32.totalorder %v8323_v34, 1  ;;  %v8325_v39 = vld [vmem:[#allocation208_spill] sm:$0xff]  ;;  %v8328_v18 = vld [vmem:[#allocation194_spill] sm:$0xff]  ;;  %v8329_v48 = vld [vmem:[#allocation25_spill] sm:$0xff] }
 0x26c   : > { %v2435_v19 = vpop.permute.xlu1 %2434  ;;  %v1268_v46 = vsel %vm1204_vm14, %v8322_v24, 0.0  ;;  %vm1866_vm2 = vcmp.eq.s32.totalorder %v8324_v28, 1  ;;  %vm2509_vm3 = vcmp.eq.s32.totalorder %v8325_v39, 1  ;;  %vm1181_vm4 = vcmp.eq.s32.totalorder %v8326_v33, 1  ;;  %v350_v37 = vld [vmem:[%s6862_s28 + $0x160] sm:$0xff]  ;;  %v8330_v40 = vld [vmem:[#allocation26_spill] sm:$0xff] }
 0x26d   : > { %v1930_v56 = vsel %vm1866_vm2, %v8327_v53, %v1268_v46  ;;  %vm2505_vm5 = vcmp.eq.s32.totalorder %v8328_v18, 1  ;;  %v1245_v60 = vsel %vm1181_vm4, %v8329_v48, 0.0  ;;  %v2742_v63 = vsel %vm438_vm0, %v2634_v49, 0.0  ;;  %v8331_v31 = vld [vmem:[#allocation48_spill] sm:$0xff]  ;;  %v8335_v20 = vld [vmem:[#allocation169_spill] sm:$0xff]  ;;  %v334_v28 = vld [vmem:[%s6862_s28 + $0xe0] sm:$0xff] }
 0x26e   : > { %2782 = vadd.xlane.f32.xlu2 %v2781_v61  ;;  %v8318_v61 = vld [vmem:[#allocation119_spill] sm:$0xff]  ;;  %v2592_v38 = vsel %vm2528_vm15, %v6893_v45, %v1930_v56  ;;  %v1907_v13 = vsel %vm1843_vm1, %v8330_v40, %v1245_v60  ;;  %v331_v16 = vld [vmem:[%s6862_s28 + $0xc8] sm:$0xff]  ;;  %vm2531_vm7 = vcmp.eq.s32.totalorder %v2435_v19, 1  ;;  %vm1869_vm8 = vcmp.eq.s32.totalorder %v8335_v20, 1  ;;  %v8340_v39 = vld [vmem:[#allocation149_spill] sm:$0xff] }
 0x26f   : > { %2728 = vadd.xlane.f32.xlu1 %v2727_v51  ;;  %v1904_v5 = vsel %vm1840_vm10, %v8318_v61, %v1242_v10  ;;  %v8333_v17 = vld [vmem:[#allocation140_spill] sm:$0xff]  ;;  %v2656_v45 = vmul.f32 %v2592_v38, %v350_v37  ;;  %v1451_v61 = vpop.f32.mrf.mxu1  ;;  %vm2512_vm9 = vcmp.eq.s32.totalorder %v6878_v55, 1  ;;  %v8339_v55 = vld [vmem:[#allocation147_spill] sm:$0xff]  ;;  %vm2515_vm14 = vcmp.eq.s32.totalorder %v6912_v11, 1  ;;  %v8344_v40 = vld [vmem:[#allocation129_spill] sm:$0xff] }
 0x270   : > { %2719 = vadd.xlane.f32.xlu0 %v2718_v43  ;;  %v2566_v51 = vsel %vm2502_vm13, %v8320_v12, %v1904_v5  ;;  %v2653_v43 = vmul.f32 %v2589_v59, %v347_v2  ;;  %v2569_v41 = vsel %vm2505_vm5, %v8333_v17, %v1907_v13  ;;  %v327_v59 = vld [vmem:[%s6862_s28 + $0xa8] sm:$0xff]  ;;  %v2113_v15 = vpop.f32.mrf.mxu2  ;;  %v7187_v12 = vpop.permute.xlu0 %2440  ;;  %v330_v53 = vld [vmem:[%s6862_s28 + $0xc0] sm:$0xff]  ;;  %v356_v17 = vld [vmem:[%s6862_s28 + $0x190] sm:$0xff]  ;;  %vm2518_vm4 = vcmp.eq.s32.totalorder %v6944_v23, 1 }
 0x271   : > { %v2630_v27 = vmul.f32 %v2566_v51, %v324_v52  ;;  %v8336_v51 = vld [vmem:[#allocation196_spill] sm:$0xff]  ;;  %v2808_v6 = vsel %vm438_vm0, %v2656_v45, 0.0  ;;  %v8343_v38 = vld [vmem:[#allocation55_spill] sm:$0xff]  ;;  %v337_v45 = vld [vmem:[%s6862_s28 + $0xf8] sm:$0xff] }
 0x272   : > { %v2799_v36 = vsel %vm438_vm0, %v2653_v43, 0.0  ;;  %vm2508_vm10 = vcmp.eq.s32.totalorder %v8336_v51, 1  ;;  %v353_v43 = vld [vmem:[%s6862_s28 + $0x178] sm:$0xff]  ;;  %v8337_v46 = vld [vmem:[#allocation148_spill] sm:$0xff]  ;;  %v340_v23 = vld [vmem:[%s6862_s28 + $0x110] sm:$0xff] }
 0x273   : > { %v2730_v10 = vsel %vm438_vm0, %v2630_v27, 0.0  ;;  %v8338_v49 = vld [vmem:[#allocation156_spill] sm:$0xff]  ;;  %v2572_v33 = vsel %vm2508_vm10, %v8340_v39, %v8339_v55  ;;  %v8356_v39 = vld [vmem:[#allocation162_spill] sm:$0xff] }
 0x274   : > { %v2444_v5 = vpop.permute.xlu1 %2443  ;;  %v2576_v27 = vsel %vm2512_vm9, %v8338_v49, %v8337_v46  ;;  %v8341_v56 = vld [vmem:[#allocation92_spill] sm:$0xff]  ;;  %v2636_v60 = vmul.f32 %v2572_v33, %v330_v53  ;;  %v8355_v46 = vld [vmem:[#allocation202_spill] sm:$0xff]  ;;  %v8357_v33 = vld [vmem:[#allocation179_spill] sm:$0xff]  ;;  %vm2521_vm9 = vcmp.eq.s32.totalorder %v6983_v35, 1 }
 0x275   : > { %vm1210_vm11 = vcmp.eq.s32.totalorder %v8341_v56, 1  ;;  %v2640_v48 = vmul.f32 %v2576_v27, %v334_v28  ;;  %vm2534_vm13 = vcmp.eq.s32.totalorder %v2444_v5, 1  ;;  %v8352_v20 = vld [vmem:[#allocation176_spill] sm:$0xff]  ;;  %vm2514_vm5 = vcmp.eq.s32.totalorder %v8355_v46, 1  ;;  %v8367_v35 = vld [vmem:[#allocation159_spill] sm:$0xff] }
 0x276   : > { %2791 = vadd.xlane.f32.xlu2 %v2790_v22  ;;  %v8332_v22 = vld [vmem:[#allocation150_spill] sm:$0xff]  ;;  %v2748_v11 = vsel %vm438_vm0, %v2636_v60, 0.0  ;;  %vm1875_vm2 = vcmp.eq.s32.totalorder %v8352_v20, 1  ;;  %v359_v55 = vld [vmem:[%s6862_s28 + $0x1a8] sm:$0xff]  ;;  %v2582_v53 = vsel %vm2518_vm4, %v8357_v33, %v8356_v39 }
 0x277   : > { %2734 = vadd.xlane.f32.xlu1 %v2733_v1  ;;  %v2573_v21 = vsel %vm2509_vm3, %v8332_v22, %v8331_v31  ;;  %v8334_v1 = vld [vmem:[#allocation88_spill] sm:$0xff] }
 0x278   : > { %2725 = vadd.xlane.f32.xlu0 %v2724_v26  ;;  %vm1207_vm6 = vcmp.eq.s32.totalorder %v8334_v1, 1  ;;  %v2637_v50 = vmul.f32 %v2573_v21, %v331_v16  ;;  %v2633_v26 = vmul.f32 %v2569_v41, %v327_v59  ;;  %v8346_v22 = vld [vmem:[#allocation204_spill] sm:$0xff]  ;;  %v2760_v16 = vsel %vm438_vm0, %v2640_v48, 0.0  ;;  %v8347_v41 = vld [vmem:[#allocation153_spill] sm:$0xff]  ;;  %v8348_v59 = vld [vmem:[#allocation167_spill] sm:$0xff] }
 0x279   : > { %v1271_v2 = vsel %vm1207_vm6, %v789_v25, 0.0  ;;  %v8345_v25 = vld [vmem:[#allocation198_spill] sm:$0xff]  ;;  %v2579_v1 = vsel %vm2515_vm14, %v8348_v59, %v8347_v41  ;;  %vm2524_vm14 = vcmp.eq.s32.totalorder %v7010_v29, 1 }
 0x27a   : > { %v1933_v52 = vsel %vm1869_vm8, %v1451_v61, %v1271_v2  ;;  %v2751_v19 = vsel %vm438_vm0, %v2637_v50, 0.0  ;;  %v2739_v34 = vsel %vm438_vm0, %v2633_v26, 0.0  ;;  %vm2511_vm15 = vcmp.eq.s32.totalorder %v8345_v25, 1  ;;  %v8349_v2 = vld [vmem:[#allocation58_spill] sm:$0xff] }
 0x27b   : > { %v2595_v24 = vsel %vm2531_vm7, %v2113_v15, %v1933_v52  ;;  %v8350_v61 = vld [vmem:[#allocation154_spill] sm:$0xff]  ;;  %v8351_v15 = vld [vmem:[#allocation96_spill] sm:$0xff]  ;;  %v2643_v51 = vmul.f32 %v2579_v1, %v337_v45 }
 0x27c   : > { %v2659_v18 = vmul.f32 %v2595_v24, %v353_v43  ;;  %v2453_v37 = vpop.permute.xlu1 %2452  ;;  %v2575_v5 = vsel %vm2511_vm15, %v8350_v61, %v8349_v2  ;;  %v333_v50 = vld [vmem:[%s6862_s28 + $0xd8] sm:$0xff]  ;;  %vm1213_vm1 = vcmp.eq.s32.totalorder %v8351_v15, 1  ;;  %v8354_v24 = vld [vmem:[#allocation56_spill] sm:$0xff]  ;;  %v8366_v2 = vld [vmem:[#allocation189_spill] sm:$0xff] }
 0x27d   : > { %vm2537_vm3 = vcmp.eq.s32.totalorder %v2453_v37, 1  ;;  %v2639_v52 = vmul.f32 %v2575_v5, %v333_v50  ;;  %v2769_v28 = vsel %vm438_vm0, %v2643_v51, 0.0  ;;  %v8361_v37 = vld [vmem:[#allocation180_spill] sm:$0xff]  ;;  %v8365_v45 = vld [vmem:[#allocation174_spill] sm:$0xff]  ;;  %v8368_v15 = vld [vmem:[#allocation175_spill] sm:$0xff] }
 0x27e   : > { %2800 = vadd.xlane.f32.xlu2 %v2799_v36  ;;  %v8342_v36 = vld [vmem:[#allocation172_spill] sm:$0xff]  ;;  %v2817_v31 = vsel %vm438_vm0, %v2659_v18, 0.0  ;;  %v8358_v18 = vld [vmem:[#allocation151_spill] sm:$0xff]  ;;  %vm1878_vm7 = vcmp.eq.s32.totalorder %v8361_v37, 1  ;;  %v2585_v61 = vsel %vm2521_vm9, %v8366_v2, %v8365_v45 }
 0x27f   : > { %2743 = vadd.xlane.f32.xlu1 %v2742_v63  ;;  %vm1872_vm12 = vcmp.eq.s32.totalorder %v8342_v36, 1  ;;  %v1274_v63 = vsel %vm1210_vm11, %v8343_v38, 0.0  ;;  %v2757_v56 = vsel %vm438_vm0, %v2639_v52, 0.0  ;;  %v8359_v36 = vld [vmem:[#allocation164_spill] sm:$0xff]  ;;  %v336_v38 = vld [vmem:[%s6862_s28 + $0xf0] sm:$0xff]  ;;  %v8369_v52 = vld [vmem:[#allocation106_spill] sm:$0xff] }
 0x280   : > { %2731 = vadd.xlane.f32.xlu0 %v2730_v10  ;;  %v1936_v13 = vsel %vm1872_vm12, %v8344_v40, %v1274_v63  ;;  %v7208_v10 = vpop.permute.xlu0 %2449  ;;  %v2578_v48 = vsel %vm2514_vm5, %v8359_v36, %v8358_v18  ;;  %v2646_v40 = vmul.f32 %v2582_v53, %v340_v23  ;;  %v343_v50 = vld [vmem:[%s6862_s28 + $0x128] sm:$0xff]  ;;  %vm1219_vm11 = vcmp.eq.s32.totalorder %v8369_v52, 1  ;;  %v8374_v18 = vld [vmem:[#allocation197_spill] sm:$0xff]  ;;  %v8377_v52 = vld [vmem:[#allocation155_spill] sm:$0xff] }
 0x281   : > { %v2598_v21 = vsel %vm2534_vm13, %v8346_v22, %v1936_v13  ;;  %v7240_v13 = vpop.f32.mrf.mxu3  ;;  %v2642_v25 = vmul.f32 %v2578_v48, %v336_v38  ;;  %v339_v51 = vld [vmem:[%s6862_s28 + $0x108] sm:$0xff]  ;;  %v346_v38 = vld [vmem:[%s6862_s28 + $0x140] sm:$0xff]  ;;  %vm2533_vm5 = vcmp.eq.s32.totalorder %v7187_v12, 1 }
 0x282   : > { %v2662_v26 = vmul.f32 %v2598_v21, %v356_v17  ;;  %v8363_v21 = vld [vmem:[#allocation152_spill] sm:$0xff]  ;;  %v8364_v17 = vld [vmem:[#allocation205_spill] sm:$0xff]  ;;  %v2778_v1 = vsel %vm438_vm0, %v2646_v40, 0.0 }
 0x283   : > { %vm2517_vm10 = vcmp.eq.s32.totalorder %v8364_v17, 1  ;;  %v2766_v5 = vsel %vm438_vm0, %v2642_v25, 0.0  ;;  %v8373_v23 = vld [vmem:[#allocation184_spill] sm:$0xff] }
 0x284   : > { %v2826_v49 = vsel %vm438_vm0, %v2662_v26, 0.0  ;;  %v2581_v26 = vsel %vm2517_vm10, %v8368_v15, %v8367_v35  ;;  %v2588_v36 = vsel %vm2524_vm14, %v8374_v18, %v8373_v23  ;;  %v8376_v35 = vld [vmem:[#allocation101_spill] sm:$0xff]  ;;  %v8381_v18 = vld [vmem:[#allocation18_spill] sm:$0xff]  ;;  %v351_v12 = vld [vmem:[%s6862_s28 + $0x168] sm:$0xff]  ;;  %vm2536_vm10 = vcmp.eq.s32.totalorder %v7208_v10, 1 }
 0x285   : > { %v2645_v46 = vmul.f32 %v2581_v26, %v339_v51  ;;  %vm1206_vm15 = vcmp.eq.s32.totalorder %v8376_v35, 1  ;;  %v8391_v10 = vld [vmem:[#allocation195_spill] sm:$0xff] }
 0x286   : > { %2809 = vadd.xlane.f32.xlu2 %v2808_v6  ;;  %v8353_v6 = vld [vmem:[#allocation73_spill] sm:$0xff]  ;;  %v1270_v26 = vsel %vm1206_vm15, %v7143_v14, 0.0  ;;  %vm2535_vm15 = vcmp.eq.s32.totalorder %v7005_v8, 1  ;;  %v361_v8 = vld [vmem:[%s6862_s28 + $0x1b8] sm:$0xff] }
 0x287   : > { %2752 = vadd.xlane.f32.xlu1 %v2751_v19  ;;  %v1277_v43 = vsel %vm1213_vm1, %v8353_v6, 0.0  ;;  %v2775_v48 = vsel %vm438_vm0, %v2645_v46, 0.0  ;;  %vm2530_vm1 = vcmp.eq.s32.totalorder %v7163_v30, 1 }
 0x288   : > { %2740 = vadd.xlane.f32.xlu0 %v2739_v34  ;;  %v1939_v19 = vsel %vm1875_vm2, %v8354_v24, %v1277_v43  ;;  %v2462_v34 = vpop.permute.xlu1 %2461  ;;  %v7235_v60 = vpop.permute.xlu0 %2458  ;;  %v8370_v43 = vld [vmem:[#allocation182_spill] sm:$0xff]  ;;  %vm1868_vm2 = vcmp.eq.s32.totalorder %v8377_v52, 1 }
 0x289   : > { %v2601_v27 = vsel %vm2537_vm3, %v6910_v44, %v1939_v19  ;;  %v8360_v44 = vld [vmem:[#allocation100_spill] sm:$0xff]  ;;  %vm2540_vm8 = vcmp.eq.s32.totalorder %v2462_v34, 1  ;;  %vm1881_vm12 = vcmp.eq.s32.totalorder %v8370_v43, 1  ;;  %v2649_v19 = vmul.f32 %v2585_v61, %v343_v50  ;;  %v8372_v34 = vld [vmem:[#allocation163_spill] sm:$0xff]  ;;  %v345_v50 = vld [vmem:[%s6862_s28 + $0x138] sm:$0xff] }
 0x28a   : > { %vm1216_vm6 = vcmp.eq.s32.totalorder %v8360_v44, 1  ;;  %v2665_v63 = vmul.f32 %v2601_v27, %v359_v55  ;;  %v2149_v55 = vpop.f32.mrf.mxu3  ;;  %v342_v44 = vld [vmem:[%s6862_s28 + $0x120] sm:$0xff]  ;;  %vm2539_vm14 = vcmp.eq.s32.totalorder %v7235_v60, 1 }
 0x28b   : > { %v2787_v53 = vsel %vm438_vm0, %v2649_v19, 0.0 }
 0x28c   : > { %v2835_v41 = vsel %vm438_vm0, %v2665_v63, 0.0 }
 0x28e   : > { %2818 = vadd.xlane.f32.xlu2 %v2817_v31  ;;  %v8362_v31 = vld [vmem:[#allocation86_spill] sm:$0xff] }
 0x28f   : > { %2761 = vadd.xlane.f32.xlu1 %v2760_v16  ;;  %v1280_v22 = vsel %vm1216_vm6, %v8362_v31, 0.0  ;;  %v2652_v31 = vmul.f32 %v2588_v36, %v346_v38 }
 0x290   : > { %2749 = vadd.xlane.f32.xlu0 %v2748_v11  ;;  %v1942_v16 = vsel %vm1878_vm7, %v8363_v21, %v1280_v22  ;;  %v362_v11 = vld [vmem:[%s6862_s28 + $0x1c0] sm:$0xff]  ;;  %v2471_v20 = vpop.permute.xlu1 %2470  ;;  %v7261_v24 = vpop.permute.xlu0 %2467 }
 0x291   : > { %v2604_v59 = vsel %vm2540_vm8, %v7028_v57, %v1942_v16  ;;  %v7258_v57 = vpop.permute.xlu2 %2473  ;;  %vm2543_vm13 = vcmp.eq.s32.totalorder %v2471_v20, 1  ;;  %v8375_v21 = vld [vmem:[#allocation23_spill] sm:$0xff]  ;;  %v2796_v45 = vsel %vm438_vm0, %v2652_v31, 0.0  ;;  %v2651_v20 = vmul.f32 %v6882_v3, %v345_v50  ;;  %v8385_v31 = vld [vmem:[#allocation160_spill] sm:$0xff] }
 0x292   : > { %v2668_v6 = vmul.f32 %v2604_v59, %v362_v11  ;;  %v2648_v16 = vmul.f32 %v8375_v21, %v342_v44  ;;  %v8382_v44 = vld [vmem:[#allocation200_spill] sm:$0xff]  ;;  %vm1874_vm8 = vcmp.eq.s32.totalorder %v8385_v31, 1 }
 0x293   : > { %v8386_v21 = vld [vmem:[#allocation168_spill] sm:$0xff] }
 0x294   : > { %v2844_v39 = vsel %vm438_vm0, %v2668_v6, 0.0  ;;  %v2784_v61 = vsel %vm438_vm0, %v2648_v16, 0.0  ;;  %v1932_v6 = vsel %vm1868_vm2, %v7156_v47, %v1270_v26  ;;  %v8379_v47 = vld [vmem:[#allocation157_spill] sm:$0xff]  ;;  %vm1870_vm9 = vcmp.eq.s32.totalorder %v8386_v21, 1  ;;  %v8387_v16 = vld [vmem:[#allocation68_spill] sm:$0xff] }
 0x295   : > { %v2594_v19 = vsel %vm2530_vm1, %v7160_v4, %v1932_v6  ;;  %vm1871_vm4 = vcmp.eq.s32.totalorder %v8379_v47, 1  ;;  %vm2542_vm1 = vcmp.eq.s32.totalorder %v7261_v24, 1 }
 0x296   : > { %2827 = vadd.xlane.f32.xlu2 %v2826_v49  ;;  %v8371_v49 = vld [vmem:[#allocation104_spill] sm:$0xff] }
 0x297   : > { %2770 = vadd.xlane.f32.xlu1 %v2769_v28  ;;  %v1283_v27 = vsel %vm1219_vm11, %v8371_v49, 0.0  ;;  %v352_v49 = vld [vmem:[%s6862_s28 + $0x170] sm:$0xff]  ;;  %vm2532_vm11 = vcmp.eq.s32.totalorder %v6978_v32, 1  ;;  %v354_v32 = vld [vmem:[%s6862_s28 + $0x180] sm:$0xff] }
 0x298   : > { %2758 = vadd.xlane.f32.xlu0 %v2757_v56  ;;  %v1945_v28 = vsel %vm1881_vm12, %v8372_v34, %v1283_v27  ;;  %v365_v56 = vld [vmem:[%s6862_s28 + $0x1d8] sm:$0xff]  ;;  %v7275_v17 = vpop.permute.xlu0 %2476  ;;  %v348_v27 = vld [vmem:[%s6862_s28 + $0x150] sm:$0xff]  ;;  %v8378_v34 = vld [vmem:[#allocation107_spill] sm:$0xff] }
 0x299   : > { %v2607_v33 = vsel %vm2543_vm13, %v2149_v55, %v1945_v28  ;;  %vm1209_vm3 = vcmp.eq.s32.totalorder %v8378_v34, 1  ;;  %v2658_v55 = vmul.f32 %v2594_v19, %v352_v49  ;;  %v2654_v4 = vmul.f32 %v6917_v42, %v348_v27  ;;  %v8392_v19 = vld [vmem:[#allocation114_spill] sm:$0xff]  ;;  %v8394_v27 = vld [vmem:[#allocation63_spill] sm:$0xff] }
 0x29a   : > { %v2671_v63 = vmul.f32 %v2607_v33, %v365_v56  ;;  %vm1211_vm12 = vcmp.eq.s32.totalorder %v8392_v19, 1  ;;  %vm2545_vm2 = vcmp.eq.s32.totalorder %v7275_v17, 1 }
 0x29b   : > { %v2814_v38 = vsel %vm438_vm0, %v2658_v55, 0.0  ;;  %v2802_v42 = vsel %vm438_vm0, %v2654_v4, 0.0  ;;  %v8395_v55 = vld [vmem:[#allocation135_spill] sm:$0xff] }
 0x29e   : > { %2836 = vadd.xlane.f32.xlu2 %v2835_v41 }
 0x29f   : > { %2779 = vadd.xlane.f32.xlu1 %v2778_v1  ;;  %v2853_v1 = vsel %vm438_vm0, %v2671_v63, 0.0  ;;  %v355_v63 = vld [vmem:[%s6862_s28 + $0x188] sm:$0xff] }
 0x2a0   : > { %2767 = vadd.xlane.f32.xlu0 %v2766_v5  ;;  %v349_v5 = vld [vmem:[%s6862_s28 + $0x158] sm:$0xff] }
 0x2a1   : > { %v2655_v15 = vmul.f32 %v7051_v7, %v349_v5  ;;  %v2793_v7 = vsel %vm438_vm0, %v2651_v20, 0.0  ;;  %v8390_v5 = vld [vmem:[#allocation14_spill] sm:$0xff] }
 0x2a3   : > { %v2805_v43 = vsel %vm438_vm0, %v2655_v15, 0.0  ;;  %v358_v15 = vld [vmem:[%s6862_s28 + $0x1a0] sm:$0xff] }
 0x2a6   : > { %2845 = vadd.xlane.f32.xlu2 %v2844_v39 }
 0x2a7   : > { %2788 = vadd.xlane.f32.xlu1 %v2787_v53  ;;  %v8380_v53 = vld [vmem:[#allocation47_spill] sm:$0xff] }
 0x2a8   : > { %2776 = vadd.xlane.f32.xlu0 %v2775_v48  ;;  %v1273_v56 = vsel %vm1209_vm3, %v8380_v53, 0.0  ;;  %v8397_v53 = vld [vmem:[#allocation207_spill] sm:$0xff]  ;;  %vm2544_vm3 = vcmp.eq.s32.totalorder %v7258_v57, 1 }
 0x2a9   : > { %v2678_v29 = vpop.xlane.xlu2 %2677  ;;  %v1935_v36 = vsel %vm1871_vm4, %v8381_v18, %v1273_v56 }
 0x2aa   : > { %v2932_v37 = vperm.slane %v2678_v29, 0  ;;  %v2933_v40 = vperm.slane %v2678_v29, 1  ;;  %v2934_v25 = vperm.slane %v2678_v29, 2  ;;  %v2935_v22 = vperm.slane %v2678_v29, 3 }
 0x2ab   : > { %v2936_v41 = vperm.slane %v2678_v29, 4  ;;  %v2937_v59 = vperm.slane %v2678_v29, 5  ;;  %v2938_v11 = vperm.slane %v2678_v29, 6  ;;  %v2939_v2 = vperm.slane %v2678_v29, 7 }
 0x2ac   : > { %3444 = vst [vmem:[#allocation1] ss:$9 sm:$0xff] %v2932_v37  ;;  %v2597_v29 = vsel %vm2533_vm5, %v8382_v44, %v1935_v36  ;;  %v8383_v37 = vld [vmem:[#allocation113_spill] sm:$0xff]  ;;  %v8398_v44 = vld [vmem:[#allocation170_spill] sm:$0xff] }
 0x2ad   : > { %3446 = vst [vmem:[#allocation1 + $0x1] ss:$9 sm:$0xff] %v2933_v40  ;;  %vm1212_vm6 = vcmp.eq.s32.totalorder %v8383_v37, 1  ;;  %v2661_v40 = vmul.f32 %v2597_v29, %v355_v63  ;;  %v2606_v29 = vsel %vm2542_vm1, %v7240_v13, %v8398_v44  ;;  %vm4252_vm1 = vcmask 589312  }
 0x2ae   : > { %3448 = vst [vmem:[#allocation1 + $0x2] ss:$9 sm:$0xff] %v2934_v25  ;;  %2854 = vadd.xlane.f32.xlu2 %v2853_v1  ;;  %v8384_v25 = vld [vmem:[#allocation108_spill] sm:$0xff]  ;;  %v8388_v1 = vld [vmem:[#allocation39_spill] sm:$0xff] }
 0x2af   : > { %3450 = vst [vmem:[#allocation1 + $0x3] ss:$9 sm:$0xff] %v2935_v22  ;;  %2797 = vadd.xlane.f32.xlu1 %v2796_v45  ;;  %vm1208_vm7 = vcmp.eq.s32.totalorder %v8384_v25, 1  ;;  %v2657_v22 = vmul.f32 %v6952_v62, %v351_v12  ;;  %v8389_v45 = vld [vmem:[#allocation138_spill] sm:$0xff]  ;;  %v364_v12 = vld [vmem:[%s6862_s28 + $0x1d0] sm:$0xff] }
 0x2b0   : > { %3452 = vst [vmem:[#allocation1 + $0x4] ss:$9 sm:$0xff] %v2936_v41  ;;  %2785 = vadd.xlane.f32.xlu0 %v2784_v61  ;;  %v1276_v41 = vsel %vm1212_vm6, %v8387_v16, 0.0  ;;  %v2823_v61 = vsel %vm438_vm0, %v2661_v40, 0.0  ;;  %v360_v25 = vld [vmem:[%s6862_s28 + $0x1b0] sm:$0xff] }
 0x2b1   : > { %3454 = vst [vmem:[#allocation1 + $0x5] ss:$9 sm:$0xff] %v2937_v59  ;;  %v2684_v59 = vpop.xlane.xlu1 %2683  ;;  %v2811_v35 = vsel %vm438_vm0, %v2657_v22, 0.0  ;;  %v2670_v22 = vmul.f32 %v2606_v29, %v364_v12  ;;  %v2666_v13 = vmul.f32 %v7045_v54, %v360_v25  ;;  %v363_v54 = vld [vmem:[%s6862_s28 + $0x1c8] sm:$0xff]  ;;  %v2699_v44 = vpop.xlane.xlu2 %2698 }
 0x2b2   : > { %3456 = vst [vmem:[#allocation1 + $0x6] ss:$9 sm:$0xff] %v2938_v11  ;;  %v1272_v11 = vsel %vm1208_vm7, %v8388_v1, 0.0  ;;  %v2948_v20 = vperm.slane %v2684_v59, 0  ;;  %v2950_v6 = vperm.slane %v2684_v59, 2  ;;  %v2952_v49 = vperm.slane %v2684_v59, 4 }
 0x2b3   : > { %3458 = vst [vmem:[#allocation1 + $0x7] ss:$9 sm:$0xff] %v2939_v2  ;;  %v2681_v51 = vpop.xlane.xlu0 %2680  ;;  %v1938_v2 = vsel %vm1874_vm8, %v8389_v45, %v1276_v41  ;;  %v1934_v50 = vsel %vm1870_vm9, %v8390_v5, %v1272_v11  ;;  %v2954_v34 = vperm.slane %v2684_v59, 6  ;;  %v2955_v60 = vperm.slane %v2684_v59, 7  ;;  %v367_v45 = vld [vmem:[%s6862_s28 + $0x1e8] sm:$0xff] }
 0x2b4   : > { %v2940_v46 = vperm.slane %v2681_v51, 0  ;;  %v2941_v14 = vperm.slane %v2681_v51, 1  ;;  %v2942_v3 = vperm.slane %v2681_v51, 2  ;;  %v2943_v28 = vperm.slane %v2681_v51, 3 }
 0x2b5   : > { %v2944_v39 = vperm.slane %v2681_v51, 4  ;;  %v2945_v33 = vperm.slane %v2681_v51, 5  ;;  %v2946_v23 = vperm.slane %v2681_v51, 6  ;;  %v2947_v48 = vperm.slane %v2681_v51, 7 }
 0x2b6   : > { %v2600_v62 = vsel %vm2536_vm10, %v6871_v0, %v1938_v2  ;;  %v2596_v26 = vsel %vm2532_vm11, %v8391_v10, %v1934_v50  ;;  %v2949_v51 = vperm.slane %v2684_v59, 1  ;;  %v2850_v11 = vsel %vm438_vm0, %v2670_v22, 0.0  ;;  %v8399_v2 = vld [vmem:[#allocation173_spill] sm:$0xff] }
 0x2b7   : > { %2806 = vadd.xlane.f32.xlu1 %v2805_v43  ;;  %v2664_v43 = vmul.f32 %v2600_v62, %v358_v15  ;;  %v2660_v0 = vmul.f32 %v2596_v26, %v354_v32  ;;  %v2838_v5 = vsel %vm438_vm0, %v2666_v13, 0.0  ;;  %v2669_v62 = vmul.f32 %v7082_v58, %v363_v54  ;;  %v366_v32 = vld [vmem:[%s6862_s28 + $0x1e0] sm:$0xff] }
 0x2b8   : > { %2794 = vadd.xlane.f32.xlu0 %v2793_v7  ;;  %v8393_v7 = vld [vmem:[#allocation171_spill] sm:$0xff]  ;;  %v2988_v29 = vperm.slane %v2699_v44, 0  ;;  %v2990_v12 = vperm.slane %v2699_v44, 2  ;;  %v2992_v25 = vperm.slane %v2699_v44, 4  ;;  %v2995_v22 = vperm.slane %v2699_v44, 7 }
 0x2b9   : > { %vm1873_vm13 = vcmp.eq.s32.totalorder %v8393_v7, 1  ;;  %v2690_v50 = vpop.xlane.xlu1 %2689  ;;  %vm4224_vm10 = vcmask 130112   ;;  %vm4232_vm11 = vcmask 261312  }
 0x2ba   : > { %v7295_v30 = vld [vmem:[#allocation1] sm:$0xff]  ;;  %v2965_v10 = vperm.slane %v2690_v50, 1  ;;  %v2967_v19 = vperm.slane %v2690_v50, 3  ;;  %v2968_v58 = vperm.slane %v2690_v50, 4  ;;  %v2971_v7 = vperm.slane %v2690_v50, 7 }
 0x2bb   : > { %3460 = vst [vmem:[#allocation1] ss:$9 sm:$0xff] %v2940_v46  ;;  %v2951_v46 = vperm.slane %v2684_v59, 3 }
 0x2bc   : > { %3461 = vst [vmem:[#allocation1 + $0x1] ss:$9 sm:$0xff] %v2941_v14  ;;  %v2953_v14 = vperm.slane %v2684_v59, 5 }
 0x2bd   : > { %3462 = vst [vmem:[#allocation1 + $0x2] ss:$9 sm:$0xff] %v2942_v3  ;;  %v1275_v3 = vsel %vm1211_vm12, %v8394_v27, 0.0  ;;  %vm4236_vm12 = vcmask 326912  }
 0x2be   : > { %3463 = vst [vmem:[#allocation1 + $0x3] ss:$9 sm:$0xff] %v2943_v28  ;;  %v2832_v28 = vsel %vm438_vm0, %v2664_v43, 0.0  ;;  %v1937_v47 = vsel %vm1873_vm13, %v8395_v55, %v1275_v3  ;;  %v2966_v43 = vperm.slane %v2690_v50, 2  ;;  %vm4240_vm13 = vcmask 392512  }
 0x2bf   : > { %3464 = vst [vmem:[#allocation1 + $0x4] ss:$9 sm:$0xff] %v2944_v39  ;;  %2815 = vadd.xlane.f32.xlu1 %v2814_v38  ;;  %v8396_v39 = vld [vmem:[#allocation166_spill] sm:$0xff]  ;;  %v2599_v56 = vsel %vm2535_vm15, %v8397_v53, %v1937_v47  ;;  %vm4248_vm15 = vcmask 523712  }
 0x2c0   : > { %3465 = vst [vmem:[#allocation1 + $0x5] ss:$9 sm:$0xff] %v2945_v33  ;;  %2803 = vadd.xlane.f32.xlu0 %v2802_v42  ;;  %v2603_v4 = vsel %vm2539_vm14, %v6991_v9, %v8396_v39  ;;  %v2820_v33 = vsel %vm438_vm0, %v2660_v0, 0.0  ;;  %v2687_v9 = vpop.xlane.xlu0 %2686  ;;  %v2970_v0 = vperm.slane %v2690_v50, 6  ;;  %vm4244_vm14 = vcmask 458112  }
 0x2c1   : > { %3466 = vst [vmem:[#allocation1 + $0x6] ss:$9 sm:$0xff] %v2946_v23  ;;  %v357_v23 = vld [vmem:[%s6862_s28 + $0x198] sm:$0xff]  ;;  %v2667_v18 = vmul.f32 %v2603_v4, %v361_v8  ;;  %v2956_v42 = vperm.slane %v2687_v9, 0  ;;  %v2957_v40 = vperm.slane %v2687_v9, 1  ;;  %v2958_v31 = vperm.slane %v2687_v9, 2 }
 0x2c2   : > { %3467 = vst [vmem:[#allocation1 + $0x7] ss:$9 sm:$0xff] %v2947_v48  ;;  %v2663_v36 = vmul.f32 %v2599_v56, %v357_v23  ;;  %v2152_v48 = vpop.f32.mrf.mxu3  ;;  %v2959_v24 = vperm.slane %v2687_v9, 3  ;;  %v2960_v21 = vperm.slane %v2687_v9, 4  ;;  %v2961_v41 = vperm.slane %v2687_v9, 5 }
 0x2c3   : > { %v2841_v38 = vsel %vm438_vm0, %v2667_v18, 0.0  ;;  %v2962_v59 = vperm.slane %v2687_v9, 6  ;;  %v2963_v1 = vperm.slane %v2687_v9, 7 }
 0x2c4   : > { %v2829_v63 = vsel %vm438_vm0, %v2663_v36, 0.0 }
 0x2c7   : > { %2824 = vadd.xlane.f32.xlu1 %v2823_v61 }
 0x2c8   : > { %2812 = vadd.xlane.f32.xlu0 %v2811_v35  ;;  %v2964_v35 = vperm.slane %v2690_v50, 0 }
 0x2c9   : > { %v7324_v52 = vld [vmem:[#allocation1] sm:$0xff] }
 0x2ca   : > { %3469 = vst [vmem:[#allocation1] ss:$9 sm:$0xff] %v2948_v20  ;;  %v2155_v16 = vpop.f32.mrf.mxu3  ;;  %v2847_v20 = vsel %vm438_vm0, %v2669_v62, 0.0 }
 0x2cb   : > { %3470 = vst [vmem:[#allocation1 + $0x1] ss:$9 sm:$0xff] %v2949_v51  ;;  %v2609_v61 = vsel %vm2545_vm2, %v2155_v16, %v8399_v2  ;;  %v8400_v51 = vld [vmem:[#allocation183_spill] sm:$0xff]  ;;  %vm4256_vm2 = vcmask 654912  }
 0x2cc   : > { %3471 = vst [vmem:[#allocation1 + $0x2] ss:$9 sm:$0xff] %v2950_v6  ;;  %v2673_v17 = vmul.f32 %v2609_v61, %v367_v45  ;;  %v2608_v6 = vsel %vm2544_vm3, %v2152_v48, %v8400_v51  ;;  %vm4260_vm3 = vcmask 720512  }
 0x2cd   : > { %3472 = vst [vmem:[#allocation1 + $0x3] ss:$9 sm:$0xff] %v2951_v46  ;;  %v2672_v57 = vmul.f32 %v2608_v6, %v366_v32  ;;  %v2969_v46 = vperm.slane %v2690_v50, 5 }
 0x2ce   : > { %3473 = vst [vmem:[#allocation1 + $0x4] ss:$9 sm:$0xff] %v2952_v49  ;;  %v2859_v15 = vsel %vm438_vm0, %v2673_v17, 0.0 }
 0x2cf   : > { %3474 = vst [vmem:[#allocation1 + $0x5] ss:$9 sm:$0xff] %v2953_v14  ;;  %2833 = vadd.xlane.f32.xlu1 %v2832_v28  ;;  %v2856_v49 = vsel %vm438_vm0, %v2672_v57, 0.0  ;;  %v2693_v14 = vpop.xlane.xlu0 %2692 }
 0x2d0   : > { %3475 = vst [vmem:[#allocation1 + $0x6] ss:$9 sm:$0xff] %v2954_v34  ;;  %2821 = vadd.xlane.f32.xlu0 %v2820_v33  ;;  %v2972_v27 = vperm.slane %v2693_v14, 0  ;;  %v2973_v34 = vperm.slane %v2693_v14, 1  ;;  %v2974_v28 = vperm.slane %v2693_v14, 2  ;;  %v2975_v55 = vperm.slane %v2693_v14, 3  ;;  %v2696_v33 = vpop.xlane.xlu1 %2695 }
 0x2d1   : > { %3476 = vst [vmem:[#allocation1 + $0x7] ss:$9 sm:$0xff] %v2955_v60  ;;  %v2976_v47 = vperm.slane %v2693_v14, 4  ;;  %v2977_v39 = vperm.slane %v2693_v14, 5  ;;  %v2978_v4 = vperm.slane %v2693_v14, 6  ;;  %v2979_v60 = vperm.slane %v2693_v14, 7 }
 0x2d2   : > { %v2980_v8 = vperm.slane %v2696_v33, 0  ;;  %v2981_v53 = vperm.slane %v2696_v33, 1  ;;  %v2982_v23 = vperm.slane %v2696_v33, 2  ;;  %v2983_v18 = vperm.slane %v2696_v33, 3 }
 0x2d3   : > { %v2984_v36 = vperm.slane %v2696_v33, 4  ;;  %v2985_v48 = vperm.slane %v2696_v33, 5  ;;  %v2986_v9 = vperm.slane %v2696_v33, 6 }
 0x2d7   : > { %2842 = vadd.xlane.f32.xlu1 %v2841_v38  ;;  %v2987_v38 = vperm.slane %v2696_v33, 7 }
 0x2d8   : > { %v7345_v37 = vld [vmem:[#allocation1] sm:$0xff]  ;;  %2830 = vadd.xlane.f32.xlu0 %v2829_v63 }
 0x2d9   : > { %3478 = vst [vmem:[#allocation1] ss:$9 sm:$0xff] %v2956_v42  ;;  %v2989_v42 = vperm.slane %v2699_v44, 1 }
 0x2da   : > { %3479 = vst [vmem:[#allocation1 + $0x1] ss:$9 sm:$0xff] %v2957_v40  ;;  %v2991_v40 = vperm.slane %v2699_v44, 3 }
 0x2db   : > { %3480 = vst [vmem:[#allocation1 + $0x2] ss:$9 sm:$0xff] %v2958_v31  ;;  %v2993_v31 = vperm.slane %v2699_v44, 5 }
 0x2dc   : > { %3481 = vst [vmem:[#allocation1 + $0x3] ss:$9 sm:$0xff] %v2959_v24  ;;  %v2994_v24 = vperm.slane %v2699_v44, 6 }
 0x2dd   : > { %3482 = vst [vmem:[#allocation1 + $0x4] ss:$9 sm:$0xff] %v2960_v21  ;;  %v2702_v21 = vpop.xlane.xlu0 %2701 }
 0x2de   : > { %3483 = vst [vmem:[#allocation1 + $0x5] ss:$9 sm:$0xff] %v2961_v41  ;;  %v2996_v13 = vperm.slane %v2702_v21, 0  ;;  %v2997_v41 = vperm.slane %v2702_v21, 1  ;;  %v3001_v45 = vperm.slane %v2702_v21, 5  ;;  %v3002_v2 = vperm.slane %v2702_v21, 6 }
 0x2df   : > { %3484 = vst [vmem:[#allocation1 + $0x6] ss:$9 sm:$0xff] %v2962_v59  ;;  %2851 = vadd.xlane.f32.xlu1 %v2850_v11  ;;  %v2998_v59 = vperm.slane %v2702_v21, 2  ;;  %v3000_v11 = vperm.slane %v2702_v21, 4  ;;  %v3003_v61 = vperm.slane %v2702_v21, 7 }
 0x2e0   : > { %3485 = vst [vmem:[#allocation1 + $0x7] ss:$9 sm:$0xff] %v2963_v1  ;;  %2839 = vadd.xlane.f32.xlu0 %v2838_v5  ;;  %v2999_v1 = vperm.slane %v2702_v21, 3  ;;  %v2705_v5 = vpop.xlane.xlu1 %2704 }
 0x2e1   : > { %v3004_v54 = vperm.slane %v2705_v5, 0  ;;  %v3005_v17 = vperm.slane %v2705_v5, 1  ;;  %v3006_v62 = vperm.slane %v2705_v5, 2  ;;  %v3011_v32 = vperm.slane %v2705_v5, 7 }
 0x2e5   : > { %v2708_v51 = vpop.xlane.xlu0 %2707 }
 0x2e6   : > { %v3012_v6 = vperm.slane %v2708_v51, 0  ;;  %v3015_v57 = vperm.slane %v2708_v51, 3 }
 0x2e7   : > { %v7358_v26 = vld [vmem:[#allocation1] sm:$0xff]  ;;  %2860 = vadd.xlane.f32.xlu1 %v2859_v15  ;;  %v3008_v15 = vperm.slane %v2705_v5, 4 }
 0x2e8   : > { %3487 = vst [vmem:[#allocation1] ss:$9 sm:$0xff] %v2964_v35  ;;  %2848 = vadd.xlane.f32.xlu0 %v2847_v20  ;;  %v3007_v35 = vperm.slane %v2705_v5, 3  ;;  %v3010_v20 = vperm.slane %v2705_v5, 6  ;;  %v2711_v14 = vpop.xlane.xlu1 %2710 }
 0x2e9   : > { %3488 = vst [vmem:[#allocation1 + $0x1] ss:$9 sm:$0xff] %v2965_v10  ;;  %v3009_v10 = vperm.slane %v2705_v5, 5  ;;  %v3027_v33 = vperm.slane %v2711_v14, 7 }
 0x2ea   : > { %3489 = vst [vmem:[#allocation1 + $0x2] ss:$9 sm:$0xff] %v2966_v43 }
 0x2eb   : > { %3490 = vst [vmem:[#allocation1 + $0x3] ss:$9 sm:$0xff] %v2967_v19  ;;  %v3013_v19 = vperm.slane %v2708_v51, 1 }
 0x2ec   : > { %3491 = vst [vmem:[#allocation1 + $0x4] ss:$9 sm:$0xff] %v2968_v58  ;;  %v3014_v58 = vperm.slane %v2708_v51, 2 }
 0x2ed   : > { %3492 = vst [vmem:[#allocation1 + $0x5] ss:$9 sm:$0xff] %v2969_v46  ;;  %v3016_v46 = vperm.slane %v2708_v51, 4 }
 0x2ee   : > { %3493 = vst [vmem:[#allocation1 + $0x6] ss:$9 sm:$0xff] %v2970_v0  ;;  %v3017_v0 = vperm.slane %v2708_v51, 5 }
 0x2ef   : > { %3494 = vst [vmem:[#allocation1 + $0x7] ss:$9 sm:$0xff] %v2971_v7  ;;  %v3018_v7 = vperm.slane %v2708_v51, 6 }
 0x2f0   : > { %2857 = vadd.xlane.f32.xlu0 %v2856_v49  ;;  %v3019_v49 = vperm.slane %v2708_v51, 7 }
 0x2f6   : > { %v7364_v3 = vld [vmem:[#allocation1] sm:$0xff] }
 0x2f7   : > { %3496 = vst [vmem:[#allocation1] ss:$9 sm:$0xff] %v2972_v27  ;;  %v3020_v27 = vperm.slane %v2711_v14, 0 }
 0x2f8   : > { %3497 = vst [vmem:[#allocation1 + $0x1] ss:$9 sm:$0xff] %v2973_v34  ;;  %v3021_v34 = vperm.slane %v2711_v14, 1 }
 0x2f9   : > { %3498 = vst [vmem:[#allocation1 + $0x2] ss:$9 sm:$0xff] %v2974_v28 }
 0x2fa   : > { %3499 = vst [vmem:[#allocation1 + $0x3] ss:$9 sm:$0xff] %v2975_v55  ;;  %v3022_v55 = vperm.slane %v2711_v14, 2 }
 0x2fb   : > { %3500 = vst [vmem:[#allocation1 + $0x4] ss:$9 sm:$0xff] %v2976_v47  ;;  %v3023_v47 = vperm.slane %v2711_v14, 3 }
 0x2fc   : > { %3501 = vst [vmem:[#allocation1 + $0x5] ss:$9 sm:$0xff] %v2977_v39  ;;  %v3024_v39 = vperm.slane %v2711_v14, 4 }
 0x2fd   : > { %3502 = vst [vmem:[#allocation1 + $0x6] ss:$9 sm:$0xff] %v2978_v4  ;;  %v3025_v4 = vperm.slane %v2711_v14, 5 }
 0x2fe   : > { %3503 = vst [vmem:[#allocation1 + $0x7] ss:$9 sm:$0xff] %v2979_v60  ;;  %v3026_v60 = vperm.slane %v2711_v14, 6 }
 0x305   : > { %v7366_v56 = vld [vmem:[#allocation1] sm:$0xff] }
 0x306   : > { %3505 = vst [vmem:[#allocation1] ss:$9 sm:$0xff] %v2980_v8  ;;  %v2714_v8 = vpop.xlane.xlu0 %2713 }
 0x307   : > { %3506 = vst [vmem:[#allocation1 + $0x1] ss:$9 sm:$0xff] %v2981_v53  ;;  %v3028_v53 = vperm.slane %v2714_v8, 0  ;;  %v3034_v44 = vperm.slane %v2714_v8, 6 }
 0x308   : > { %3507 = vst [vmem:[#allocation1 + $0x2] ss:$9 sm:$0xff] %v2982_v23 }
 0x309   : > { %3508 = vst [vmem:[#allocation1 + $0x3] ss:$9 sm:$0xff] %v2983_v18  ;;  %v3029_v18 = vperm.slane %v2714_v8, 1 }
 0x30a   : > { %3509 = vst [vmem:[#allocation1 + $0x4] ss:$9 sm:$0xff] %v2984_v36  ;;  %v3030_v36 = vperm.slane %v2714_v8, 2 }
 0x30b   : > { %3510 = vst [vmem:[#allocation1 + $0x5] ss:$9 sm:$0xff] %v2985_v48  ;;  %v3031_v48 = vperm.slane %v2714_v8, 3 }
 0x30c   : > { %3511 = vst [vmem:[#allocation1 + $0x6] ss:$9 sm:$0xff] %v2986_v9  ;;  %v3032_v9 = vperm.slane %v2714_v8, 4 }
 0x30d   : > { %3512 = vst [vmem:[#allocation1 + $0x7] ss:$9 sm:$0xff] %v2987_v38  ;;  %v3033_v38 = vperm.slane %v2714_v8, 5 }
 0x314   : > { %v7368_v63 = vld [vmem:[#allocation1] sm:$0xff] }
 0x315   : > { %3514 = vst [vmem:[#allocation1] ss:$9 sm:$0xff] %v2988_v29  ;;  %v3035_v29 = vperm.slane %v2714_v8, 7 }
 0x316   : > { %3515 = vst [vmem:[#allocation1 + $0x1] ss:$9 sm:$0xff] %v2989_v42  ;;  %v2717_v42 = vpop.xlane.xlu1 %2716 }
 0x317   : > { %3516 = vst [vmem:[#allocation1 + $0x2] ss:$9 sm:$0xff] %v2990_v12  ;;  %v3036_v12 = vperm.slane %v2717_v42, 0  ;;  %v3041_v21 = vperm.slane %v2717_v42, 5 }
 0x318   : > { %3517 = vst [vmem:[#allocation1 + $0x3] ss:$9 sm:$0xff] %v2991_v40  ;;  %v3037_v40 = vperm.slane %v2717_v42, 1 }
 0x319   : > { %3518 = vst [vmem:[#allocation1 + $0x4] ss:$9 sm:$0xff] %v2992_v25 }
 0x31a   : > { %3519 = vst [vmem:[#allocation1 + $0x5] ss:$9 sm:$0xff] %v2993_v31  ;;  %v3038_v31 = vperm.slane %v2717_v42, 2 }
 0x31b   : > { %3520 = vst [vmem:[#allocation1 + $0x6] ss:$9 sm:$0xff] %v2994_v24  ;;  %v3039_v24 = vperm.slane %v2717_v42, 3 }
 0x31c   : > { %3521 = vst [vmem:[#allocation1 + $0x7] ss:$9 sm:$0xff] %v2995_v22  ;;  %v3040_v22 = vperm.slane %v2717_v42, 4 }
 0x323   : > { %v7370_v16 = vld [vmem:[#allocation1] sm:$0xff] }
 0x324   : > { %3523 = vst [vmem:[#allocation1] ss:$9 sm:$0xff] %v2996_v13  ;;  %v3042_v13 = vperm.slane %v2717_v42, 6 }
 0x325   : > { %3524 = vst [vmem:[#allocation1 + $0x1] ss:$9 sm:$0xff] %v2997_v41  ;;  %v3043_v41 = vperm.slane %v2717_v42, 7 }
 0x326   : > { %3525 = vst [vmem:[#allocation1 + $0x2] ss:$9 sm:$0xff] %v2998_v59  ;;  %v2720_v59 = vpop.xlane.xlu0 %2719 }
 0x327   : > { %3526 = vst [vmem:[#allocation1 + $0x3] ss:$9 sm:$0xff] %v2999_v1  ;;  %v3044_v1 = vperm.slane %v2720_v59, 0  ;;  %v3048_v5 = vperm.slane %v2720_v59, 4 }
 0x328   : > { %3527 = vst [vmem:[#allocation1 + $0x4] ss:$9 sm:$0xff] %v3000_v11 }
 0x329   : > { %3528 = vst [vmem:[#allocation1 + $0x5] ss:$9 sm:$0xff] %v3001_v45  ;;  %v3045_v45 = vperm.slane %v2720_v59, 1 }
 0x32a   : > { %3529 = vst [vmem:[#allocation1 + $0x6] ss:$9 sm:$0xff] %v3002_v2  ;;  %v3046_v2 = vperm.slane %v2720_v59, 2 }
 0x32b   : > { %3530 = vst [vmem:[#allocation1 + $0x7] ss:$9 sm:$0xff] %v3003_v61  ;;  %v3047_v61 = vperm.slane %v2720_v59, 3 }
 0x332   : > { %v7372_v50 = vld [vmem:[#allocation1] sm:$0xff] }
 0x333   : > { %3532 = vst [vmem:[#allocation1] ss:$9 sm:$0xff] %v3004_v54  ;;  %v3049_v54 = vperm.slane %v2720_v59, 5 }
 0x334   : > { %3533 = vst [vmem:[#allocation1 + $0x1] ss:$9 sm:$0xff] %v3005_v17  ;;  %v3050_v17 = vperm.slane %v2720_v59, 6 }
 0x335   : > { %3534 = vst [vmem:[#allocation1 + $0x2] ss:$9 sm:$0xff] %v3006_v62  ;;  %v3051_v62 = vperm.slane %v2720_v59, 7 }
 0x336   : > { %3535 = vst [vmem:[#allocation1 + $0x3] ss:$9 sm:$0xff] %v3007_v35  ;;  %v4837_v35 = vld [vmem:[%s5017_s8 + $0x1f0] sm:$0xff] }
 0x337   : > { %3536 = vst [vmem:[#allocation1 + $0x4] ss:$9 sm:$0xff] %v3008_v15  ;;  %vm2226_vm4 = vcmp.eq.s32.totalorder %v4837_v35, 2  ;;  %v8401_v15 = vmov 0  }
 0x338   : > { %3537 = vst [vmem:[#allocation1 + $0x5] ss:$9 sm:$0xff] %v3009_v10  ;;  %v2290_v10 = vsel %vm2226_vm4, 1, %v8401_v15  ;;  %vm4264_vm4 = vcmask 786112  }
 0x339   : > { %3538 = vst [vmem:[#allocation1 + $0x6] ss:$9 sm:$0xff] %v3010_v20  ;;  %2479 = vperm.xlu1 %4757, %v2290_v10   ;;  %v2723_v20 = vpop.xlane.xlu1 %2722 }
 0x33a   : > { %3539 = vst [vmem:[#allocation1 + $0x7] ss:$9 sm:$0xff] %v3011_v32  ;;  %v3052_v32 = vperm.slane %v2723_v20, 0  ;;  %v3053_v51 = vperm.slane %v2723_v20, 1 }
 0x341   : > { %v7374_v43 = vld [vmem:[#allocation1] sm:$0xff]  ;;  %4028 = vperm.xlu1 %4757, %v7295_v30  }
 0x342   : > { %3541 = vst [vmem:[#allocation1] ss:$9 sm:$0xff] %v3012_v6 }
 0x343   : > { %3542 = vst [vmem:[#allocation1 + $0x1] ss:$9 sm:$0xff] %v3013_v19  ;;  %v3054_v19 = vperm.slane %v2723_v20, 2 }
 0x344   : > { %3543 = vst [vmem:[#allocation1 + $0x2] ss:$9 sm:$0xff] %v3014_v58  ;;  %v3055_v58 = vperm.slane %v2723_v20, 3 }
 0x345   : > { %3544 = vst [vmem:[#allocation1 + $0x3] ss:$9 sm:$0xff] %v3015_v57  ;;  %v3056_v57 = vperm.slane %v2723_v20, 4 }
 0x346   : > { %3545 = vst [vmem:[#allocation1 + $0x4] ss:$9 sm:$0xff] %v3016_v46  ;;  %v3057_v46 = vperm.slane %v2723_v20, 5 }
 0x347   : > { %3546 = vst [vmem:[#allocation1 + $0x5] ss:$9 sm:$0xff] %v3017_v0  ;;  %v3058_v0 = vperm.slane %v2723_v20, 6 }
 0x348   : > { %3547 = vst [vmem:[#allocation1 + $0x6] ss:$9 sm:$0xff] %v3018_v7  ;;  %v3059_v7 = vperm.slane %v2723_v20, 7 }
 0x349   : > { %3548 = vst [vmem:[#allocation1 + $0x7] ss:$9 sm:$0xff] %v3019_v49  ;;  %v2726_v49 = vpop.xlane.xlu0 %2725  ;;  %4040 = vperm.xlu1 %4757, %v7364_v3   ;;  %v2729_v3 = vpop.xlane.xlu1 %2728 }
 0x34a   : > { %v3060_v14 = vperm.slane %v2726_v49, 0  ;;  %v3064_v30 = vperm.slane %v2726_v49, 4  ;;  %v3069_v8 = vperm.slane %v2729_v3, 1 }
 0x350   : > { %v7376_v28 = vld [vmem:[#allocation1] sm:$0xff] }
 0x351   : > { %3550 = vst [vmem:[#allocation1] ss:$9 sm:$0xff] %v3020_v27  ;;  %4049 = vperm.xlu1 %4757, %v7370_v16   ;;  %v3074_v16 = vperm.slane %v2729_v3, 6 }
 0x352   : > { %3551 = vst [vmem:[#allocation1 + $0x1] ss:$9 sm:$0xff] %v3021_v34  ;;  %v3061_v34 = vperm.slane %v2726_v49, 1 }
 0x353   : > { %3552 = vst [vmem:[#allocation1 + $0x2] ss:$9 sm:$0xff] %v3022_v55  ;;  %v3062_v55 = vperm.slane %v2726_v49, 2 }
 0x354   : > { %3553 = vst [vmem:[#allocation1 + $0x3] ss:$9 sm:$0xff] %v3023_v47  ;;  %v3063_v47 = vperm.slane %v2726_v49, 3 }
 0x355   : > { %3554 = vst [vmem:[#allocation1 + $0x4] ss:$9 sm:$0xff] %v3024_v39  ;;  %v3065_v39 = vperm.slane %v2726_v49, 5 }
 0x356   : > { %3555 = vst [vmem:[#allocation1 + $0x5] ss:$9 sm:$0xff] %v3025_v4  ;;  %v3066_v4 = vperm.slane %v2726_v49, 6 }
 0x357   : > { %3556 = vst [vmem:[#allocation1 + $0x6] ss:$9 sm:$0xff] %v3026_v60  ;;  %v3067_v60 = vperm.slane %v2726_v49, 7 }
 0x358   : > { %3557 = vst [vmem:[#allocation1 + $0x7] ss:$9 sm:$0xff] %v3027_v33  ;;  %v3068_v33 = vperm.slane %v2729_v3, 0 }
 0x359   : > { %4058 = vperm.xlu1 %4757, %v7376_v28   ;;  %v2732_v28 = vpop.xlane.xlu0 %2731 }
 0x35a   : > { %v3077_v42 = vperm.slane %v2732_v28, 1 }
 0x35f   : > { %v7378_v23 = vld [vmem:[#allocation1] sm:$0xff] }
 0x360   : > { %3559 = vst [vmem:[#allocation1] ss:$9 sm:$0xff] %v3028_v53 }
 0x361   : > { %3560 = vst [vmem:[#allocation1 + $0x1] ss:$9 sm:$0xff] %v3029_v18  ;;  %v3070_v18 = vperm.slane %v2729_v3, 2 }
 0x362   : > { %3561 = vst [vmem:[#allocation1 + $0x2] ss:$9 sm:$0xff] %v3030_v36  ;;  %v3071_v36 = vperm.slane %v2729_v3, 3 }
 0x363   : > { %3562 = vst [vmem:[#allocation1 + $0x3] ss:$9 sm:$0xff] %v3031_v48  ;;  %v3072_v48 = vperm.slane %v2729_v3, 4 }
 0x364   : > { %3563 = vst [vmem:[#allocation1 + $0x4] ss:$9 sm:$0xff] %v3032_v9  ;;  %v3073_v9 = vperm.slane %v2729_v3, 5 }
 0x365   : > { %3564 = vst [vmem:[#allocation1 + $0x5] ss:$9 sm:$0xff] %v3033_v38  ;;  %v3075_v38 = vperm.slane %v2729_v3, 7 }
 0x366   : > { %3565 = vst [vmem:[#allocation1 + $0x6] ss:$9 sm:$0xff] %v3034_v44  ;;  %v3076_v44 = vperm.slane %v2732_v28, 0 }
 0x367   : > { %3566 = vst [vmem:[#allocation1 + $0x7] ss:$9 sm:$0xff] %v3035_v29 }
 0x36e   : > { %v7380_v25 = vld [vmem:[#allocation1] sm:$0xff] }
 0x36f   : > { %3568 = vst [vmem:[#allocation1] ss:$9 sm:$0xff] %v3036_v12  ;;  %v3078_v12 = vperm.slane %v2732_v28, 2 }
 0x370   : > { %3569 = vst [vmem:[#allocation1 + $0x1] ss:$9 sm:$0xff] %v3037_v40  ;;  %v3079_v40 = vperm.slane %v2732_v28, 3 }
 0x371   : > { %3570 = vst [vmem:[#allocation1 + $0x2] ss:$9 sm:$0xff] %v3038_v31  ;;  %v3080_v31 = vperm.slane %v2732_v28, 4 }
 0x372   : > { %3571 = vst [vmem:[#allocation1 + $0x3] ss:$9 sm:$0xff] %v3039_v24  ;;  %v3081_v24 = vperm.slane %v2732_v28, 5 }
 0x373   : > { %3572 = vst [vmem:[#allocation1 + $0x4] ss:$9 sm:$0xff] %v3040_v22  ;;  %v3082_v22 = vperm.slane %v2732_v28, 6 }
 0x374   : > { %3573 = vst [vmem:[#allocation1 + $0x5] ss:$9 sm:$0xff] %v3041_v21  ;;  %v3083_v21 = vperm.slane %v2732_v28, 7 }
 0x375   : > { %3574 = vst [vmem:[#allocation1 + $0x6] ss:$9 sm:$0xff] %v3042_v13  ;;  %v2735_v13 = vpop.xlane.xlu1 %2734 }
 0x376   : > { %3575 = vst [vmem:[#allocation1 + $0x7] ss:$9 sm:$0xff] %v3043_v41  ;;  %v3084_v41 = vperm.slane %v2735_v13, 0  ;;  %v3085_v59 = vperm.slane %v2735_v13, 1 }
 0x37d   : > { %v7382_v11 = vld [vmem:[#allocation1] sm:$0xff] }
 0x37e   : > { %3577 = vst [vmem:[#allocation1] ss:$9 sm:$0xff] %v3044_v1  ;;  %4067 = vperm.xlu1 %4757, %v7382_v11   ;;  %v3086_v11 = vperm.slane %v2735_v13, 2 }
 0x37f   : > { %3578 = vst [vmem:[#allocation1 + $0x1] ss:$9 sm:$0xff] %v3045_v45  ;;  %v3087_v45 = vperm.slane %v2735_v13, 3 }
 0x380   : > { %3579 = vst [vmem:[#allocation1 + $0x2] ss:$9 sm:$0xff] %v3046_v2  ;;  %v3088_v2 = vperm.slane %v2735_v13, 4 }
 0x381   : > { %3580 = vst [vmem:[#allocation1 + $0x3] ss:$9 sm:$0xff] %v3047_v61  ;;  %v3089_v61 = vperm.slane %v2735_v13, 5 }
 0x382   : > { %3581 = vst [vmem:[#allocation1 + $0x4] ss:$9 sm:$0xff] %v3048_v5  ;;  %v3090_v5 = vperm.slane %v2735_v13, 6 }
 0x383   : > { %3582 = vst [vmem:[#allocation1 + $0x5] ss:$9 sm:$0xff] %v3049_v54  ;;  %v3091_v54 = vperm.slane %v2735_v13, 7 }
 0x384   : > { %3583 = vst [vmem:[#allocation1 + $0x6] ss:$9 sm:$0xff] %v3050_v17  ;;  %v2738_v17 = vpop.xlane.xlu2 %2737 }
 0x385   : > { %3584 = vst [vmem:[#allocation1 + $0x7] ss:$9 sm:$0xff] %v3051_v62  ;;  %v3092_v62 = vperm.slane %v2738_v17, 0  ;;  %v3093_v35 = vperm.slane %v2738_v17, 1  ;;  %v3094_v20 = vperm.slane %v2738_v17, 2 }
 0x38c   : > { %v7386_v6 = vld [vmem:[#allocation1] sm:$0xff] }
 0x38d   : > { %3586 = vst [vmem:[#allocation1] ss:$9 sm:$0xff] %v3052_v32  ;;  %v3095_v32 = vperm.slane %v2738_v17, 3 }
 0x38e   : > { %3587 = vst [vmem:[#allocation1 + $0x1] ss:$9 sm:$0xff] %v3053_v51  ;;  %v3096_v51 = vperm.slane %v2738_v17, 4 }
 0x38f   : > { %3588 = vst [vmem:[#allocation1 + $0x2] ss:$9 sm:$0xff] %v3054_v19  ;;  %v3097_v19 = vperm.slane %v2738_v17, 5 }
 0x390   : > { %3589 = vst [vmem:[#allocation1 + $0x3] ss:$9 sm:$0xff] %v3055_v58  ;;  %v3098_v58 = vperm.slane %v2738_v17, 6 }
 0x391   : > { %3590 = vst [vmem:[#allocation1 + $0x4] ss:$9 sm:$0xff] %v3056_v57  ;;  %v3099_v57 = vperm.slane %v2738_v17, 7 }
 0x392   : > { %3591 = vst [vmem:[#allocation1 + $0x5] ss:$9 sm:$0xff] %v3057_v46  ;;  %v2741_v46 = vpop.xlane.xlu0 %2740 }
 0x393   : > { %3592 = vst [vmem:[#allocation1 + $0x6] ss:$9 sm:$0xff] %v3058_v0  ;;  %v3100_v0 = vperm.slane %v2741_v46, 0  ;;  %v3101_v49 = vperm.slane %v2741_v46, 1 }
 0x394   : > { %3593 = vst [vmem:[#allocation1 + $0x7] ss:$9 sm:$0xff] %v3059_v7 }
 0x39b   : > { %v7390_v27 = vld [vmem:[#allocation1] sm:$0xff] }
 0x39c   : > { %3595 = vst [vmem:[#allocation1] ss:$9 sm:$0xff] %v3060_v14  ;;  %v3102_v14 = vperm.slane %v2741_v46, 2 }
 0x39d   : > { %3596 = vst [vmem:[#allocation1 + $0x1] ss:$9 sm:$0xff] %v3061_v34  ;;  %v3103_v34 = vperm.slane %v2741_v46, 3 }
 0x39e   : > { %3597 = vst [vmem:[#allocation1 + $0x2] ss:$9 sm:$0xff] %v3062_v55  ;;  %v3104_v55 = vperm.slane %v2741_v46, 4 }
 0x39f   : > { %3598 = vst [vmem:[#allocation1 + $0x3] ss:$9 sm:$0xff] %v3063_v47  ;;  %v3105_v47 = vperm.slane %v2741_v46, 5 }
 0x3a0   : > { %3599 = vst [vmem:[#allocation1 + $0x4] ss:$9 sm:$0xff] %v3064_v30  ;;  %v3106_v30 = vperm.slane %v2741_v46, 6 }
 0x3a1   : > { %3600 = vst [vmem:[#allocation1 + $0x5] ss:$9 sm:$0xff] %v3065_v39  ;;  %v3107_v39 = vperm.slane %v2741_v46, 7 }
 0x3a2   : > { %3601 = vst [vmem:[#allocation1 + $0x6] ss:$9 sm:$0xff] %v3066_v4  ;;  %v2744_v4 = vpop.xlane.xlu1 %2743 }
 0x3a3   : > { %3602 = vst [vmem:[#allocation1 + $0x7] ss:$9 sm:$0xff] %v3067_v60  ;;  %v3108_v60 = vperm.slane %v2744_v4, 0  ;;  %v3109_v3 = vperm.slane %v2744_v4, 1 }
 0x3aa   : > { %v3603_v53 = vld [vmem:[#allocation1] sm:$0xff]  ;;  %v2753_v17 = vpop.xlane.xlu1 %2752 }
 0x3ab   : > { %3604 = vst [vmem:[#allocation1] ss:$9 sm:$0xff] %v3068_v33  ;;  %4076 = vperm.xlu1 %4757, %v3603_v53   ;;  %v3111_v53 = vperm.slane %v2744_v4, 3 }
 0x3ac   : > { %3605 = vst [vmem:[#allocation1 + $0x1] ss:$9 sm:$0xff] %v3069_v8  ;;  %v3110_v8 = vperm.slane %v2744_v4, 2 }
 0x3ad   : > { %3606 = vst [vmem:[#allocation1 + $0x2] ss:$9 sm:$0xff] %v3070_v18  ;;  %v3112_v18 = vperm.slane %v2744_v4, 4 }
 0x3ae   : > { %3607 = vst [vmem:[#allocation1 + $0x3] ss:$9 sm:$0xff] %v3071_v36  ;;  %v3113_v36 = vperm.slane %v2744_v4, 5 }
 0x3af   : > { %3608 = vst [vmem:[#allocation1 + $0x4] ss:$9 sm:$0xff] %v3072_v48  ;;  %v3114_v48 = vperm.slane %v2744_v4, 6 }
 0x3b0   : > { %3609 = vst [vmem:[#allocation1 + $0x5] ss:$9 sm:$0xff] %v3073_v9  ;;  %v3115_v9 = vperm.slane %v2744_v4, 7 }
 0x3b1   : > { %3610 = vst [vmem:[#allocation1 + $0x6] ss:$9 sm:$0xff] %v3074_v16  ;;  %v2747_v16 = vpop.xlane.xlu2 %2746 }
 0x3b2   : > { %3611 = vst [vmem:[#allocation1 + $0x7] ss:$9 sm:$0xff] %v3075_v38  ;;  %v3116_v38 = vperm.slane %v2747_v16, 0  ;;  %v3117_v28 = vperm.slane %v2747_v16, 1 }
 0x3b9   : > { %v7395_v29 = vld [vmem:[#allocation1] sm:$0xff]  ;;  %v2756_v46 = vpop.xlane.xlu2 %2755 }
 0x3ba   : > { %3613 = vst [vmem:[#allocation1] ss:$9 sm:$0xff] %v3076_v44  ;;  %v3147_v4 = vperm.slane %v2756_v46, 7 }
 0x3bb   : > { %3614 = vst [vmem:[#allocation1 + $0x1] ss:$9 sm:$0xff] %v3077_v42  ;;  %v3118_v42 = vperm.slane %v2747_v16, 2 }
 0x3bc   : > { %3615 = vst [vmem:[#allocation1 + $0x2] ss:$9 sm:$0xff] %v3078_v12  ;;  %v3119_v12 = vperm.slane %v2747_v16, 3 }
 0x3bd   : > { %3616 = vst [vmem:[#allocation1 + $0x3] ss:$9 sm:$0xff] %v3079_v40  ;;  %v3120_v40 = vperm.slane %v2747_v16, 4 }
 0x3be   : > { %3617 = vst [vmem:[#allocation1 + $0x4] ss:$9 sm:$0xff] %v3080_v31  ;;  %v3121_v31 = vperm.slane %v2747_v16, 5 }
 0x3bf   : > { %3618 = vst [vmem:[#allocation1 + $0x5] ss:$9 sm:$0xff] %v3081_v24  ;;  %v3122_v24 = vperm.slane %v2747_v16, 6 }
 0x3c0   : > { %3619 = vst [vmem:[#allocation1 + $0x6] ss:$9 sm:$0xff] %v3082_v22  ;;  %v3123_v22 = vperm.slane %v2747_v16, 7 }
 0x3c1   : > { %3620 = vst [vmem:[#allocation1 + $0x7] ss:$9 sm:$0xff] %v3083_v21  ;;  %v2750_v21 = vpop.xlane.xlu0 %2749 }
 0x3c2   : > { %v3124_v13 = vperm.slane %v2750_v21, 0 }
 0x3c8   : > { %v7397_v1 = vld [vmem:[#allocation1] sm:$0xff] }
 0x3c9   : > { %3622 = vst [vmem:[#allocation1] ss:$9 sm:$0xff] %v3084_v41 }
 0x3ca   : > { %3623 = vst [vmem:[#allocation1 + $0x1] ss:$9 sm:$0xff] %v3085_v59  ;;  %v3125_v59 = vperm.slane %v2750_v21, 1 }
 0x3cb   : > { %3624 = vst [vmem:[#allocation1 + $0x2] ss:$9 sm:$0xff] %v3086_v11  ;;  %v3126_v11 = vperm.slane %v2750_v21, 2 }
 0x3cc   : > { %3625 = vst [vmem:[#allocation1 + $0x3] ss:$9 sm:$0xff] %v3087_v45  ;;  %v3127_v45 = vperm.slane %v2750_v21, 3 }
 0x3cd   : > { %3626 = vst [vmem:[#allocation1 + $0x4] ss:$9 sm:$0xff] %v3088_v2  ;;  %v3128_v2 = vperm.slane %v2750_v21, 4 }
 0x3ce   : > { %3627 = vst [vmem:[#allocation1 + $0x5] ss:$9 sm:$0xff] %v3089_v61  ;;  %v3129_v61 = vperm.slane %v2750_v21, 5 }
 0x3cf   : > { %3628 = vst [vmem:[#allocation1 + $0x6] ss:$9 sm:$0xff] %v3090_v5  ;;  %v3130_v5 = vperm.slane %v2750_v21, 6 }
 0x3d0   : > { %3629 = vst [vmem:[#allocation1 + $0x7] ss:$9 sm:$0xff] %v3091_v54  ;;  %v3131_v54 = vperm.slane %v2750_v21, 7 }
 0x3d7   : > { %v3630_v10 = vld [vmem:[#allocation1] sm:$0xff] }
 0x3d8   : > { %3631 = vst [vmem:[#allocation1] ss:$9 sm:$0xff] %v3092_v62  ;;  %4085 = vperm.xlu1 %4757, %v3630_v10   ;;  %v3132_v62 = vperm.slane %v2753_v17, 0 }
 0x3d9   : > { %3632 = vst [vmem:[#allocation1 + $0x1] ss:$9 sm:$0xff] %v3093_v35  ;;  %v3133_v35 = vperm.slane %v2753_v17, 1 }
 0x3da   : > { %3633 = vst [vmem:[#allocation1 + $0x2] ss:$9 sm:$0xff] %v3094_v20  ;;  %v3134_v20 = vperm.slane %v2753_v17, 2 }
 0x3db   : > { %3634 = vst [vmem:[#allocation1 + $0x3] ss:$9 sm:$0xff] %v3095_v32  ;;  %v3135_v32 = vperm.slane %v2753_v17, 3 }
 0x3dc   : > { %3635 = vst [vmem:[#allocation1 + $0x4] ss:$9 sm:$0xff] %v3096_v51  ;;  %v3136_v51 = vperm.slane %v2753_v17, 4 }
 0x3dd   : > { %3636 = vst [vmem:[#allocation1 + $0x5] ss:$9 sm:$0xff] %v3097_v19  ;;  %v3137_v19 = vperm.slane %v2753_v17, 5 }
 0x3de   : > { %3637 = vst [vmem:[#allocation1 + $0x6] ss:$9 sm:$0xff] %v3098_v58  ;;  %v3138_v58 = vperm.slane %v2753_v17, 6 }
 0x3df   : > { %3638 = vst [vmem:[#allocation1 + $0x7] ss:$9 sm:$0xff] %v3099_v57  ;;  %v3139_v57 = vperm.slane %v2753_v17, 7 }
 0x3e6   : > { %v7399_v7 = vld [vmem:[#allocation1] sm:$0xff] }
 0x3e7   : > { %3640 = vst [vmem:[#allocation1] ss:$9 sm:$0xff] %v3100_v0  ;;  %v3140_v0 = vperm.slane %v2756_v46, 0 }
 0x3e8   : > { %3641 = vst [vmem:[#allocation1 + $0x1] ss:$9 sm:$0xff] %v3101_v49  ;;  %v3141_v49 = vperm.slane %v2756_v46, 1 }
 0x3e9   : > { %3642 = vst [vmem:[#allocation1 + $0x2] ss:$9 sm:$0xff] %v3102_v14 }
 0x3ea   : > { %3643 = vst [vmem:[#allocation1 + $0x3] ss:$9 sm:$0xff] %v3103_v34  ;;  %v3142_v34 = vperm.slane %v2756_v46, 2 }
 0x3eb   : > { %3644 = vst [vmem:[#allocation1 + $0x4] ss:$9 sm:$0xff] %v3104_v55  ;;  %v3143_v55 = vperm.slane %v2756_v46, 3 }
 0x3ec   : > { %3645 = vst [vmem:[#allocation1 + $0x5] ss:$9 sm:$0xff] %v3105_v47  ;;  %v3144_v47 = vperm.slane %v2756_v46, 4 }
 0x3ed   : > { %3646 = vst [vmem:[#allocation1 + $0x6] ss:$9 sm:$0xff] %v3106_v30  ;;  %v3145_v30 = vperm.slane %v2756_v46, 5 }
 0x3ee   : > { %3647 = vst [vmem:[#allocation1 + $0x7] ss:$9 sm:$0xff] %v3107_v39  ;;  %v3146_v39 = vperm.slane %v2756_v46, 6 }
 0x3f5   : > { %v7401_v33 = vld [vmem:[#allocation1] sm:$0xff] }
 0x3f6   : > { %3649 = vst [vmem:[#allocation1] ss:$9 sm:$0xff] %v3108_v60  ;;  %v2759_v60 = vpop.xlane.xlu0 %2758 }
 0x3f7   : > { %3650 = vst [vmem:[#allocation1 + $0x1] ss:$9 sm:$0xff] %v3109_v3  ;;  %v3148_v3 = vperm.slane %v2759_v60, 0  ;;  %v3154_v16 = vperm.slane %v2759_v60, 6 }
 0x3f8   : > { %3651 = vst [vmem:[#allocation1 + $0x2] ss:$9 sm:$0xff] %v3110_v8 }
 0x3f9   : > { %3652 = vst [vmem:[#allocation1 + $0x3] ss:$9 sm:$0xff] %v3111_v53  ;;  %v3149_v53 = vperm.slane %v2759_v60, 1 }
 0x3fa   : > { %3653 = vst [vmem:[#allocation1 + $0x4] ss:$9 sm:$0xff] %v3112_v18  ;;  %v3150_v18 = vperm.slane %v2759_v60, 2 }
 0x3fb   : > { %3654 = vst [vmem:[#allocation1 + $0x5] ss:$9 sm:$0xff] %v3113_v36  ;;  %v3151_v36 = vperm.slane %v2759_v60, 3 }
 0x3fc   : > { %3655 = vst [vmem:[#allocation1 + $0x6] ss:$9 sm:$0xff] %v3114_v48  ;;  %v3152_v48 = vperm.slane %v2759_v60, 4 }
 0x3fd   : > { %3656 = vst [vmem:[#allocation1 + $0x7] ss:$9 sm:$0xff] %v3115_v9  ;;  %v3153_v9 = vperm.slane %v2759_v60, 5 }
 0x404   : > { %v3657_v44 = vld [vmem:[#allocation1] sm:$0xff] }
 0x405   : > { %3658 = vst [vmem:[#allocation1] ss:$9 sm:$0xff] %v3116_v38  ;;  %4094 = vperm.xlu1 %4757, %v3657_v44   ;;  %v3155_v38 = vperm.slane %v2759_v60, 7 }
 0x406   : > { %3659 = vst [vmem:[#allocation1 + $0x1] ss:$9 sm:$0xff] %v3117_v28  ;;  %v2762_v28 = vpop.xlane.xlu1 %2761 }
 0x407   : > { %3660 = vst [vmem:[#allocation1 + $0x2] ss:$9 sm:$0xff] %v3118_v42  ;;  %v3156_v44 = vperm.slane %v2762_v28, 0  ;;  %v3157_v42 = vperm.slane %v2762_v28, 1  ;;  %v3162_v21 = vperm.slane %v2762_v28, 6 }
 0x408   : > { %3661 = vst [vmem:[#allocation1 + $0x3] ss:$9 sm:$0xff] %v3119_v12 }
 0x409   : > { %3662 = vst [vmem:[#allocation1 + $0x4] ss:$9 sm:$0xff] %v3120_v40  ;;  %v3158_v40 = vperm.slane %v2762_v28, 2 }
 0x40a   : > { %3663 = vst [vmem:[#allocation1 + $0x5] ss:$9 sm:$0xff] %v3121_v31  ;;  %v3159_v31 = vperm.slane %v2762_v28, 3 }
 0x40b   : > { %3664 = vst [vmem:[#allocation1 + $0x6] ss:$9 sm:$0xff] %v3122_v24  ;;  %v3160_v24 = vperm.slane %v2762_v28, 4 }
 0x40c   : > { %3665 = vst [vmem:[#allocation1 + $0x7] ss:$9 sm:$0xff] %v3123_v22  ;;  %v3161_v22 = vperm.slane %v2762_v28, 5 }
 0x413   : > { %v7403_v41 = vld [vmem:[#allocation1] sm:$0xff] }
 0x414   : > { %3667 = vst [vmem:[#allocation1] ss:$9 sm:$0xff] %v3124_v13  ;;  %v3163_v13 = vperm.slane %v2762_v28, 7 }
 0x415   : > { %3668 = vst [vmem:[#allocation1 + $0x1] ss:$9 sm:$0xff] %v3125_v59  ;;  %v2771_v59 = vpop.xlane.xlu1 %2770 }
 0x416   : > { %3669 = vst [vmem:[#allocation1 + $0x2] ss:$9 sm:$0xff] %v3126_v11  ;;  %v2765_v11 = vpop.xlane.xlu2 %2764 }
 0x417   : > { %3670 = vst [vmem:[#allocation1 + $0x3] ss:$9 sm:$0xff] %v3127_v45  ;;  %v3164_v45 = vperm.slane %v2765_v11, 0  ;;  %v3168_v17 = vperm.slane %v2765_v11, 4 }
 0x418   : > { %3671 = vst [vmem:[#allocation1 + $0x4] ss:$9 sm:$0xff] %v3128_v2  ;;  %v3165_v2 = vperm.slane %v2765_v11, 1 }
 0x419   : > { %3672 = vst [vmem:[#allocation1 + $0x5] ss:$9 sm:$0xff] %v3129_v61 }
 0x41a   : > { %3673 = vst [vmem:[#allocation1 + $0x6] ss:$9 sm:$0xff] %v3130_v5  ;;  %v3166_v5 = vperm.slane %v2765_v11, 2 }
 0x41b   : > { %3674 = vst [vmem:[#allocation1 + $0x7] ss:$9 sm:$0xff] %v3131_v54  ;;  %v3167_v54 = vperm.slane %v2765_v11, 3 }
 0x422   : > { %v7405_v10 = vld [vmem:[#allocation1] sm:$0xff] }
 0x423   : > { %3676 = vst [vmem:[#allocation1] ss:$9 sm:$0xff] %v3132_v62  ;;  %v3169_v62 = vperm.slane %v2765_v11, 5 }
 0x424   : > { %3677 = vst [vmem:[#allocation1 + $0x1] ss:$9 sm:$0xff] %v3133_v35  ;;  %v7411_v35 = vpop.xlane.xlu1 %2779 }
 0x425   : > { %3678 = vst [vmem:[#allocation1 + $0x2] ss:$9 sm:$0xff] %v3134_v20  ;;  %v3170_v20 = vperm.slane %v2765_v11, 6 }
 0x426   : > { %3679 = vst [vmem:[#allocation1 + $0x3] ss:$9 sm:$0xff] %v3135_v32  ;;  %v3171_v32 = vperm.slane %v2765_v11, 7 }
 0x427   : > { %3680 = vst [vmem:[#allocation1 + $0x4] ss:$9 sm:$0xff] %v3136_v51  ;;  %v2768_v51 = vpop.xlane.xlu0 %2767 }
 0x428   : > { %3681 = vst [vmem:[#allocation1 + $0x5] ss:$9 sm:$0xff] %v3137_v19  ;;  %v3172_v19 = vperm.slane %v2768_v51, 0  ;;  %v3173_v46 = vperm.slane %v2768_v51, 1 }
 0x429   : > { %3682 = vst [vmem:[#allocation1 + $0x6] ss:$9 sm:$0xff] %v3138_v58 }
 0x42a   : > { %3683 = vst [vmem:[#allocation1 + $0x7] ss:$9 sm:$0xff] %v3139_v57 }
 0x42c   : > { %v7413_v58 = vpop.xlane.xlu1 %2788 }
 0x431   : > { %v3684_v14 = vld [vmem:[#allocation1] sm:$0xff] }
 0x432   : > { %3685 = vst [vmem:[#allocation1] ss:$9 sm:$0xff] %v3140_v0  ;;  %4103 = vperm.xlu1 %4757, %v3684_v14   ;;  %v3174_v0 = vperm.slane %v2768_v51, 2  ;;  %v3176_v14 = vperm.slane %v2768_v51, 4 }
 0x433   : > { %3686 = vst [vmem:[#allocation1 + $0x1] ss:$9 sm:$0xff] %v3141_v49  ;;  %v3175_v49 = vperm.slane %v2768_v51, 3 }
 0x434   : > { %3687 = vst [vmem:[#allocation1 + $0x2] ss:$9 sm:$0xff] %v3142_v34  ;;  %v3177_v34 = vperm.slane %v2768_v51, 5 }
 0x435   : > { %3688 = vst [vmem:[#allocation1 + $0x3] ss:$9 sm:$0xff] %v3143_v55  ;;  %v3178_v55 = vperm.slane %v2768_v51, 6 }
 0x436   : > { %3689 = vst [vmem:[#allocation1 + $0x4] ss:$9 sm:$0xff] %v3144_v47  ;;  %v3179_v47 = vperm.slane %v2768_v51, 7 }
 0x437   : > { %3690 = vst [vmem:[#allocation1 + $0x5] ss:$9 sm:$0xff] %v3145_v30  ;;  %v7417_v30 = vpop.xlane.xlu1 %2797 }
 0x438   : > { %3691 = vst [vmem:[#allocation1 + $0x6] ss:$9 sm:$0xff] %v3146_v39  ;;  %v3180_v39 = vperm.slane %v2771_v59, 0 }
 0x439   : > { %3692 = vst [vmem:[#allocation1 + $0x7] ss:$9 sm:$0xff] %v3147_v4  ;;  %v3181_v4 = vperm.slane %v2771_v59, 1 }
 0x440   : > { %v7407_v8 = vld [vmem:[#allocation1] sm:$0xff] }
 0x441   : > { %3694 = vst [vmem:[#allocation1] ss:$9 sm:$0xff] %v3148_v3  ;;  %v3182_v3 = vperm.slane %v2771_v59, 2 }
 0x442   : > { %3695 = vst [vmem:[#allocation1 + $0x1] ss:$9 sm:$0xff] %v3149_v53  ;;  %v3183_v53 = vperm.slane %v2771_v59, 3 }
 0x443   : > { %3696 = vst [vmem:[#allocation1 + $0x2] ss:$9 sm:$0xff] %v3150_v18  ;;  %v3184_v18 = vperm.slane %v2771_v59, 4 }
 0x444   : > { %3697 = vst [vmem:[#allocation1 + $0x3] ss:$9 sm:$0xff] %v3151_v36  ;;  %v3185_v36 = vperm.slane %v2771_v59, 5 }
 0x445   : > { %3698 = vst [vmem:[#allocation1 + $0x4] ss:$9 sm:$0xff] %v3152_v48  ;;  %v7421_v48 = vpop.xlane.xlu1 %2806 }
 0x446   : > { %3699 = vst [vmem:[#allocation1 + $0x5] ss:$9 sm:$0xff] %v3153_v9  ;;  %v3186_v9 = vperm.slane %v2771_v59, 6 }
 0x447   : > { %3700 = vst [vmem:[#allocation1 + $0x6] ss:$9 sm:$0xff] %v3154_v16  ;;  %v3187_v16 = vperm.slane %v2771_v59, 7 }
 0x448   : > { %3701 = vst [vmem:[#allocation1 + $0x7] ss:$9 sm:$0xff] %v3155_v38  ;;  %v2774_v38 = vpop.xlane.xlu2 %2773 }
 0x449   : > { %v3188_v28 = vperm.slane %v2774_v38, 0  ;;  %v3195_v59 = vperm.slane %v2774_v38, 7 }
 0x44f   : > { %v7409_v12 = vld [vmem:[#allocation1] sm:$0xff] }
 0x450   : > { %3703 = vst [vmem:[#allocation1] ss:$9 sm:$0xff] %v3156_v44  ;;  %v7423_v44 = vpop.xlane.xlu1 %2815 }
 0x451   : > { %3704 = vst [vmem:[#allocation1 + $0x1] ss:$9 sm:$0xff] %v3157_v42  ;;  %v3189_v42 = vperm.slane %v2774_v38, 1 }
 0x452   : > { %3705 = vst [vmem:[#allocation1 + $0x2] ss:$9 sm:$0xff] %v3158_v40 }
 0x453   : > { %3706 = vst [vmem:[#allocation1 + $0x3] ss:$9 sm:$0xff] %v3159_v31  ;;  %v3190_v31 = vperm.slane %v2774_v38, 2 }
 0x454   : > { %3707 = vst [vmem:[#allocation1 + $0x4] ss:$9 sm:$0xff] %v3160_v24  ;;  %v3191_v24 = vperm.slane %v2774_v38, 3 }
 0x455   : > { %3708 = vst [vmem:[#allocation1 + $0x5] ss:$9 sm:$0xff] %v3161_v22  ;;  %v3192_v22 = vperm.slane %v2774_v38, 4 }
 0x456   : > { %3709 = vst [vmem:[#allocation1 + $0x6] ss:$9 sm:$0xff] %v3162_v21  ;;  %v3193_v21 = vperm.slane %v2774_v38, 5 }
 0x457   : > { %3710 = vst [vmem:[#allocation1 + $0x7] ss:$9 sm:$0xff] %v3163_v13  ;;  %v3194_v13 = vperm.slane %v2774_v38, 6 }
 0x458   : > { %v7425_v11 = vpop.xlane.xlu1 %2824 }
 0x45e   : > { %v3711_v61 = vld [vmem:[#allocation1] sm:$0xff] }
 0x45f   : > { %3712 = vst [vmem:[#allocation1] ss:$9 sm:$0xff] %v3164_v45  ;;  %4112 = vperm.xlu1 %4757, %v3711_v61   ;;  %v2777_v45 = vpop.xlane.xlu0 %2776 }
 0x460   : > { %3713 = vst [vmem:[#allocation1 + $0x1] ss:$9 sm:$0xff] %v3165_v2  ;;  %v3196_v2 = vperm.slane %v2777_v45, 0  ;;  %v3202_v51 = vperm.slane %v2777_v45, 6 }
 0x461   : > { %3714 = vst [vmem:[#allocation1 + $0x2] ss:$9 sm:$0xff] %v3166_v5  ;;  %v3197_v5 = vperm.slane %v2777_v45, 1 }
 0x462   : > { %3715 = vst [vmem:[#allocation1 + $0x3] ss:$9 sm:$0xff] %v3167_v54  ;;  %v3198_v54 = vperm.slane %v2777_v45, 2 }
 0x463   : > { %3716 = vst [vmem:[#allocation1 + $0x4] ss:$9 sm:$0xff] %v3168_v17  ;;  %v3199_v17 = vperm.slane %v2777_v45, 3 }
 0x464   : > { %3717 = vst [vmem:[#allocation1 + $0x5] ss:$9 sm:$0xff] %v3169_v62  ;;  %v3200_v62 = vperm.slane %v2777_v45, 4 }
 0x465   : > { %3718 = vst [vmem:[#allocation1 + $0x6] ss:$9 sm:$0xff] %v3170_v20  ;;  %v3201_v20 = vperm.slane %v2777_v45, 5 }
 0x466   : > { %3719 = vst [vmem:[#allocation1 + $0x7] ss:$9 sm:$0xff] %v3171_v32  ;;  %v7429_v32 = vpop.xlane.xlu1 %2833 }
 0x46d   : > { %v7415_v57 = vld [vmem:[#allocation1] sm:$0xff] }
 0x46e   : > { %3721 = vst [vmem:[#allocation1] ss:$9 sm:$0xff] %v3172_v19  ;;  %v3203_v19 = vperm.slane %v2777_v45, 7 }
 0x46f   : > { %3722 = vst [vmem:[#allocation1 + $0x1] ss:$9 sm:$0xff] %v3173_v46  ;;  %v3204_v46 = vperm.slane %v7411_v35, 0 }
 0x470   : > { %3723 = vst [vmem:[#allocation1 + $0x2] ss:$9 sm:$0xff] %v3174_v0  ;;  %v7432_v0 = vpop.xlane.xlu1 %2842 }
 0x471   : > { %3724 = vst [vmem:[#allocation1 + $0x3] ss:$9 sm:$0xff] %v3175_v49  ;;  %v3205_v49 = vperm.slane %v7411_v35, 1 }
 0x472   : > { %3725 = vst [vmem:[#allocation1 + $0x4] ss:$9 sm:$0xff] %v3176_v14 }
 0x473   : > { %3726 = vst [vmem:[#allocation1 + $0x5] ss:$9 sm:$0xff] %v3177_v34  ;;  %v3206_v34 = vperm.slane %v7411_v35, 2 }
 0x474   : > { %3727 = vst [vmem:[#allocation1 + $0x6] ss:$9 sm:$0xff] %v3178_v55  ;;  %v3207_v55 = vperm.slane %v7411_v35, 3 }
 0x475   : > { %3728 = vst [vmem:[#allocation1 + $0x7] ss:$9 sm:$0xff] %v3179_v47  ;;  %v3208_v47 = vperm.slane %v7411_v35, 4 }
 0x47c   : > { %v7419_v60 = vld [vmem:[#allocation1] sm:$0xff] }
 0x47d   : > { %3730 = vst [vmem:[#allocation1] ss:$9 sm:$0xff] %v3180_v39  ;;  %v3209_v39 = vperm.slane %v7411_v35, 5 }
 0x47e   : > { %3731 = vst [vmem:[#allocation1 + $0x1] ss:$9 sm:$0xff] %v3181_v4  ;;  %v3210_v4 = vperm.slane %v7411_v35, 6 }
 0x47f   : > { %3732 = vst [vmem:[#allocation1 + $0x2] ss:$9 sm:$0xff] %v3182_v3  ;;  %v3211_v3 = vperm.slane %v7411_v35, 7 }
 0x480   : > { %3733 = vst [vmem:[#allocation1 + $0x3] ss:$9 sm:$0xff] %v3183_v53  ;;  %v7443_v53 = vpop.xlane.xlu1 %2851 }
 0x481   : > { %3734 = vst [vmem:[#allocation1 + $0x4] ss:$9 sm:$0xff] %v3184_v18  ;;  %v2783_v18 = vpop.xlane.xlu2 %2782 }
 0x482   : > { %3735 = vst [vmem:[#allocation1 + $0x5] ss:$9 sm:$0xff] %v3185_v36  ;;  %v3212_v36 = vperm.slane %v2783_v18, 0  ;;  %v3214_v38 = vperm.slane %v2783_v18, 2  ;;  %v3218_v35 = vperm.slane %v2783_v18, 6 }
 0x483   : > { %3736 = vst [vmem:[#allocation1 + $0x6] ss:$9 sm:$0xff] %v3186_v9  ;;  %v3213_v9 = vperm.slane %v2783_v18, 1 }
 0x484   : > { %3737 = vst [vmem:[#allocation1 + $0x7] ss:$9 sm:$0xff] %v3187_v16 }
 0x48b   : > { %v3738_v40 = vld [vmem:[#allocation1] sm:$0xff] }
 0x48c   : > { %3739 = vst [vmem:[#allocation1] ss:$9 sm:$0xff] %v3188_v28  ;;  %4121 = vperm.xlu1 %4757, %v3738_v40   ;;  %v3215_v28 = vperm.slane %v2783_v18, 3  ;;  %v3217_v40 = vperm.slane %v2783_v18, 5 }
 0x48d   : > { %3740 = vst [vmem:[#allocation1 + $0x1] ss:$9 sm:$0xff] %v3189_v42  ;;  %v3216_v42 = vperm.slane %v2783_v18, 4 }
 0x48e   : > { %3741 = vst [vmem:[#allocation1 + $0x2] ss:$9 sm:$0xff] %v3190_v31  ;;  %v7445_v31 = vpop.xlane.xlu1 %2860 }
 0x48f   : > { %3742 = vst [vmem:[#allocation1 + $0x3] ss:$9 sm:$0xff] %v3191_v24  ;;  %v3219_v24 = vperm.slane %v2783_v18, 7 }
 0x490   : > { %3743 = vst [vmem:[#allocation1 + $0x4] ss:$9 sm:$0xff] %v3192_v22  ;;  %v8402_v22 = vld [vmem:[#allocation112_spill] sm:$0xff] }
 0x491   : > { %3744 = vst [vmem:[#allocation1 + $0x5] ss:$9 sm:$0xff] %v3193_v21  ;;  %vm1222_vm5 = vcmp.eq.s32.totalorder %v8402_v22, 1  ;;  %v8403_v21 = vld [vmem:[#allocation185_spill] sm:$0xff]  ;;  %v4838_v22 = vld [vmem:[%s5017_s8 + $0x1f8] sm:$0xff]  ;;  %s4401_s8 = scalar_lea.hbm %s7914_s4, %s4701_s30 }
 0x492   : > { %3745 = vst [vmem:[#allocation1 + $0x6] ss:$9 sm:$0xff] %v3194_v13  ;;  %vm1884_vm6 = vcmp.eq.s32.totalorder %v8403_v21, 1  ;;  %v2786_v13 = vpop.xlane.xlu0 %2785  ;;  %vm2227_vm8 = vcmp.eq.s32.totalorder %v4838_v22, 2  ;;  %v2792_v21 = vpop.xlane.xlu2 %2791  ;;  %s4405_s9 = sshll.u32 %s4401_s8, 4  ;;  %s4406_s9 = int_to_ptr.hbm [resolvable:$true] %s4405_s9 }
 0x493   : > { %3746 = vst [vmem:[#allocation1 + $0x7] ss:$9 sm:$0xff] %v3195_v59  ;;  %v8404_v59 = vld [vmem:[#allocation6_spill] sm:$0xff]  ;;  %v3227_v18 = vperm.slane %v2786_v13, 7  ;;  %s4853_s11 = sshra.s32 %s4406_s9, 4  ;;  %s4854_s11 = int_to_ptr.hbm [resolvable:$true] %s4853_s11 }
 0x494   : > { %v1286_v45 = vsel %vm1222_vm5, %v8404_v59, 0.0  ;;  %v3236_v59 = vperm.slane %v2792_v21, 0  ;;  %vm4268_vm5 = vcmask 851712   ;;  %s4855_s12 = scalar_lea.hbm %s4854_s11, 4  ;;  %p4860_p0 = scmp.lt.s32.totalorder %s4854_s11, %s7914_s4 }
 0x495   : > { %p4856_p11 = scmp.ne.s32.totalorder %s4854_s11, %s4855_s12  ;;  %p4861_p1 = scmp.lt.s32.totalorder %s4859_s20, %s4855_s12 }
 0x497   : > { %p4857_p12 = pnand %p4856_p11, %p4967_p5  ;;  %p4862_p2 = por %p4861_p1, %p4860_p0 }
 0x499   : > { %p4858_p13 = pneg %p4857_p12 }
 0x49a   : > { %v7427_v61 = vld [vmem:[#allocation1] sm:$0xff] }
 0x49b   : > { %3748 = vst [vmem:[#allocation1] ss:$9 sm:$0xff] %v3196_v2  ;;  %v2480_v2 = vpop.permute.xlu1 %2479  ;;  %p4863_p3 = pnand %p4862_p2, %p4858_p13 }
 0x49c   : > { %3749 = vst [vmem:[#allocation1 + $0x1] ss:$9 sm:$0xff] %v3197_v5  ;;  %vm2546_vm7 = vcmp.eq.s32.totalorder %v2480_v2, 1  ;;  %v8405_v5 = vld [vmem:[#allocation181_spill] sm:$0xff] }
 0x49d   : > { %3750 = vst [vmem:[#allocation1 + $0x2] ss:$9 sm:$0xff] %v3198_v54  ;;  %v1948_v54 = vsel %vm1884_vm6, %v8405_v5, %v1286_v45  ;;  %v3237_v45 = vperm.slane %v2792_v21, 1  ;;  %v3238_v5 = vperm.slane %v2792_v21, 2  ;;  %vm4272_vm6 = vcmask 917312  }
 0x49e   : > { %3751 = vst [vmem:[#allocation1 + $0x3] ss:$9 sm:$0xff] %v3199_v17  ;;  %v2158_v17 = vpop.f32.mrf.mxu3 }
 0x49f   : > { %3752 = vst [vmem:[#allocation1 + $0x4] ss:$9 sm:$0xff] %v3200_v62  ;;  %v3220_v62 = vperm.slane %v2786_v13, 0 }
 0x4a0   : > { %3753 = vst [vmem:[#allocation1 + $0x5] ss:$9 sm:$0xff] %v3201_v20  ;;  %v368_v20 = vld [vmem:[%s6862_s28 + $0x1f0] sm:$0xff] }
 0x4a1   : > { %3754 = vst [vmem:[#allocation1 + $0x6] ss:$9 sm:$0xff] %v3202_v51  ;;  %v2610_v51 = vsel %vm2546_vm7, %v2158_v17, %v1948_v54  ;;  %v3239_v54 = vperm.slane %v2792_v21, 3  ;;  %v3240_v17 = vperm.slane %v2792_v21, 4  ;;  %vm4276_vm7 = vcmask 982912  }
 0x4a2   : > { %3755 = vst [vmem:[#allocation1 + $0x7] ss:$9 sm:$0xff] %v3203_v19 }
 0x4a9   : > { %v7435_v14 = vld [vmem:[#allocation1] sm:$0xff] }
 0x4aa   : > { %3757 = vst [vmem:[#allocation1] ss:$9 sm:$0xff] %v3204_v46  ;;  %v3221_v46 = vperm.slane %v2786_v13, 1 }
 0x4ab   : > { %3758 = vst [vmem:[#allocation1 + $0x1] ss:$9 sm:$0xff] %v3205_v49  ;;  %v2674_v49 = vmul.f32 %v2610_v51, %v368_v20  ;;  %v3243_v20 = vperm.slane %v2792_v21, 7 }
 0x4ac   : > { %3759 = vst [vmem:[#allocation1 + $0x2] ss:$9 sm:$0xff] %v3206_v34  ;;  %v3222_v34 = vperm.slane %v2786_v13, 2 }
 0x4ad   : > { %3760 = vst [vmem:[#allocation1 + $0x3] ss:$9 sm:$0xff] %v3207_v55  ;;  %v3223_v55 = vperm.slane %v2786_v13, 3 }
 0x4ae   : > { %3761 = vst [vmem:[#allocation1 + $0x4] ss:$9 sm:$0xff] %v3208_v47  ;;  %v2862_v47 = vsel %vm438_vm0, %v2674_v49, 0.0 }
 0x4af   : > { %3762 = vst [vmem:[#allocation1 + $0x5] ss:$9 sm:$0xff] %v3209_v39  ;;  %v3224_v39 = vperm.slane %v2786_v13, 4  ;;  %2863 = vadd.xlane.f32.xlu2 %v2862_v47 }
 0x4b0   : > { %3763 = vst [vmem:[#allocation1 + $0x6] ss:$9 sm:$0xff] %v3210_v4  ;;  %v3225_v4 = vperm.slane %v2786_v13, 5 }
 0x4b1   : > { %3764 = vst [vmem:[#allocation1 + $0x7] ss:$9 sm:$0xff] %v3211_v3  ;;  %v3226_v3 = vperm.slane %v2786_v13, 6  ;;  %v2291_v13 = vsel %vm2227_vm8, 1, %v8401_v15  ;;  %v2795_v15 = vpop.xlane.xlu0 %2794  ;;  %vm4280_vm8 = vcmask 1048512  }
 0x4b2   : > { %v3244_v51 = vperm.slane %v2795_v15, 0  ;;  %v3245_v49 = vperm.slane %v2795_v15, 1  ;;  %v3248_v47 = vperm.slane %v2795_v15, 4 }
 0x4b8   : > { %v3765_v16 = vld [vmem:[#allocation1] sm:$0xff] }
 0x4b9   : > { %3766 = vst [vmem:[#allocation1] ss:$9 sm:$0xff] %v3212_v36  ;;  %4130 = vperm.xlu1 %4757, %v3765_v16   ;;  %v3228_v36 = vperm.slane %v7413_v58, 0 }
 0x4ba   : > { %3767 = vst [vmem:[#allocation1 + $0x1] ss:$9 sm:$0xff] %v3213_v9  ;;  %v3229_v9 = vperm.slane %v7413_v58, 1 }
 0x4bb   : > { %3768 = vst [vmem:[#allocation1 + $0x2] ss:$9 sm:$0xff] %v3214_v38  ;;  %v3230_v38 = vperm.slane %v7413_v58, 2 }
 0x4bc   : > { %3769 = vst [vmem:[#allocation1 + $0x3] ss:$9 sm:$0xff] %v3215_v28  ;;  %v3231_v28 = vperm.slane %v7413_v58, 3 }
 0x4bd   : > { %3770 = vst [vmem:[#allocation1 + $0x4] ss:$9 sm:$0xff] %v3216_v42  ;;  %v3232_v42 = vperm.slane %v7413_v58, 4 }
 0x4be   : > { %3771 = vst [vmem:[#allocation1 + $0x5] ss:$9 sm:$0xff] %v3217_v40  ;;  %v3233_v40 = vperm.slane %v7413_v58, 5 }
 0x4bf   : > { %3772 = vst [vmem:[#allocation1 + $0x6] ss:$9 sm:$0xff] %v3218_v35  ;;  %v3234_v35 = vperm.slane %v7413_v58, 6 }
 0x4c0   : > { %3773 = vst [vmem:[#allocation1 + $0x7] ss:$9 sm:$0xff] %v3219_v24  ;;  %v3235_v24 = vperm.slane %v7413_v58, 7  ;;  %v3241_v58 = vperm.slane %v2792_v21, 5 }
 0x4c7   : > { %v7452_v19 = vld [vmem:[#allocation1] sm:$0xff]  ;;  %2482 = vperm.xlu2 %4758, %v2291_v13  }
 0x4c8   : > { %3775 = vst [vmem:[#allocation1] ss:$9 sm:$0xff] %v3220_v62  ;;  %v3242_v62 = vperm.slane %v2792_v21, 6 }
 0x4c9   : > { %3776 = vst [vmem:[#allocation1 + $0x1] ss:$9 sm:$0xff] %v3221_v46 }
 0x4ca   : > { %3777 = vst [vmem:[#allocation1 + $0x2] ss:$9 sm:$0xff] %v3222_v34  ;;  %v3246_v34 = vperm.slane %v2795_v15, 2 }
 0x4cb   : > { %3778 = vst [vmem:[#allocation1 + $0x3] ss:$9 sm:$0xff] %v3223_v55  ;;  %v3247_v55 = vperm.slane %v2795_v15, 3 }
 0x4cc   : > { %3779 = vst [vmem:[#allocation1 + $0x4] ss:$9 sm:$0xff] %v3224_v39  ;;  %v3249_v39 = vperm.slane %v2795_v15, 5 }
 0x4cd   : > { %3780 = vst [vmem:[#allocation1 + $0x5] ss:$9 sm:$0xff] %v3225_v4  ;;  %v3250_v4 = vperm.slane %v2795_v15, 6 }
 0x4ce   : > { %3781 = vst [vmem:[#allocation1 + $0x6] ss:$9 sm:$0xff] %v3226_v3  ;;  %v3251_v3 = vperm.slane %v2795_v15, 7 }
 0x4cf   : > { %3782 = vst [vmem:[#allocation1 + $0x7] ss:$9 sm:$0xff] %v3227_v18  ;;  %4031 = vperm.xlu2 %4758, %v7324_v52   ;;  %v2801_v52 = vpop.xlane.xlu2 %2800 }
 0x4d0   : > { %v3261_v22 = vperm.slane %v2801_v52, 1  ;;  %v3262_v13 = vperm.slane %v2801_v52, 2 }
 0x4d6   : > { %v7457_v16 = vld [vmem:[#allocation1] sm:$0xff] }
 0x4d7   : > { %3784 = vst [vmem:[#allocation1] ss:$9 sm:$0xff] %v3228_v36  ;;  %4037 = vperm.xlu2 %4758, %v7358_v26   ;;  %v3252_v26 = vperm.slane %v7417_v30, 0  ;;  %v7474_v18 = vpop.xlane.xlu2 %2809  ;;  %v3253_v36 = vperm.slane %v7417_v30, 1 }
 0x4d8   : > { %3785 = vst [vmem:[#allocation1 + $0x1] ss:$9 sm:$0xff] %v3229_v9 }
 0x4d9   : > { %3786 = vst [vmem:[#allocation1 + $0x2] ss:$9 sm:$0xff] %v3230_v38  ;;  %v3254_v38 = vperm.slane %v7417_v30, 2 }
 0x4da   : > { %3787 = vst [vmem:[#allocation1 + $0x3] ss:$9 sm:$0xff] %v3231_v28  ;;  %v3255_v28 = vperm.slane %v7417_v30, 3 }
 0x4db   : > { %3788 = vst [vmem:[#allocation1 + $0x4] ss:$9 sm:$0xff] %v3232_v42  ;;  %v3257_v42 = vperm.slane %v7417_v30, 5 }
 0x4dc   : > { %3789 = vst [vmem:[#allocation1 + $0x5] ss:$9 sm:$0xff] %v3233_v40  ;;  %v3259_v40 = vperm.slane %v7417_v30, 7 }
 0x4dd   : > { %3790 = vst [vmem:[#allocation1 + $0x6] ss:$9 sm:$0xff] %v3234_v35 }
 0x4de   : > { %3791 = vst [vmem:[#allocation1 + $0x7] ss:$9 sm:$0xff] %v3235_v24  ;;  %v3260_v24 = vperm.slane %v2801_v52, 0 }
 0x4df   : > { %4046 = vperm.xlu2 %4758, %v7368_v63   ;;  %v3256_v63 = vperm.slane %v7417_v30, 4  ;;  %v7486_v35 = vpop.xlane.xlu2 %2818 }
 0x4e5   : > { %v3792_v2 = vld [vmem:[#allocation1] sm:$0xff] }
 0x4e6   : > { %3793 = vst [vmem:[#allocation1] ss:$9 sm:$0xff] %v3236_v59  ;;  %4139 = vperm.xlu1 %4757, %v3792_v2   ;;  %v3263_v59 = vperm.slane %v2801_v52, 3  ;;  %v3266_v2 = vperm.slane %v2801_v52, 6 }
 0x4e7   : > { %3794 = vst [vmem:[#allocation1 + $0x1] ss:$9 sm:$0xff] %v3237_v45  ;;  %4055 = vperm.xlu2 %4758, %v7374_v43   ;;  %v3258_v43 = vperm.slane %v7417_v30, 6  ;;  %v3264_v45 = vperm.slane %v2801_v52, 4  ;;  %v3265_v30 = vperm.slane %v2801_v52, 5 }
 0x4e8   : > { %3795 = vst [vmem:[#allocation1 + $0x2] ss:$9 sm:$0xff] %v3238_v5  ;;  %v7489_v5 = vpop.xlane.xlu2 %2827 }
 0x4e9   : > { %3796 = vst [vmem:[#allocation1 + $0x3] ss:$9 sm:$0xff] %v3239_v54 }
 0x4ea   : > { %3797 = vst [vmem:[#allocation1 + $0x4] ss:$9 sm:$0xff] %v3240_v17 }
 0x4eb   : > { %3798 = vst [vmem:[#allocation1 + $0x5] ss:$9 sm:$0xff] %v3241_v58 }
 0x4ec   : > { %3799 = vst [vmem:[#allocation1 + $0x6] ss:$9 sm:$0xff] %v3242_v62 }
 0x4ed   : > { %3800 = vst [vmem:[#allocation1 + $0x7] ss:$9 sm:$0xff] %v3243_v20 }
 0x4ef   : > { %4064 = vperm.xlu2 %4758, %v7380_v25   ;;  %v3267_v25 = vperm.slane %v2801_v52, 7  ;;  %v3278_v52 = vperm.slane %v7421_v48, 2 }
 0x4f0   : > { %v7492_v17 = vpop.xlane.xlu2 %2836 }
 0x4f4   : > { %v7469_v46 = vld [vmem:[#allocation1] sm:$0xff] }
 0x4f5   : > { %3802 = vst [vmem:[#allocation1] ss:$9 sm:$0xff] %v3244_v51 }
 0x4f6   : > { %3803 = vst [vmem:[#allocation1 + $0x1] ss:$9 sm:$0xff] %v3245_v49 }
 0x4f7   : > { %3804 = vst [vmem:[#allocation1 + $0x2] ss:$9 sm:$0xff] %v3246_v34  ;;  %4073 = vperm.xlu2 %4758, %v7390_v27   ;;  %v2804_v27 = vpop.xlane.xlu0 %2803 }
 0x4f8   : > { %3805 = vst [vmem:[#allocation1 + $0x3] ss:$9 sm:$0xff] %v3247_v55  ;;  %v3268_v54 = vperm.slane %v2804_v27, 0  ;;  %v3269_v62 = vperm.slane %v2804_v27, 1  ;;  %v3270_v20 = vperm.slane %v2804_v27, 2  ;;  %v3271_v15 = vperm.slane %v2804_v27, 3  ;;  %v7498_v55 = vpop.xlane.xlu2 %2845 }
 0x4f9   : > { %3806 = vst [vmem:[#allocation1 + $0x4] ss:$9 sm:$0xff] %v3248_v47  ;;  %v3272_v51 = vperm.slane %v2804_v27, 4  ;;  %v3273_v49 = vperm.slane %v2804_v27, 5  ;;  %v3274_v34 = vperm.slane %v2804_v27, 6  ;;  %v3276_v47 = vperm.slane %v7421_v48, 0 }
 0x4fa   : > { %3807 = vst [vmem:[#allocation1 + $0x5] ss:$9 sm:$0xff] %v3249_v39 }
 0x4fb   : > { %3808 = vst [vmem:[#allocation1 + $0x6] ss:$9 sm:$0xff] %v3250_v4  ;;  %v3279_v4 = vperm.slane %v7421_v48, 3 }
 0x4fc   : > { %3809 = vst [vmem:[#allocation1 + $0x7] ss:$9 sm:$0xff] %v3251_v3  ;;  %v3280_v3 = vperm.slane %v7421_v48, 4 }
 0x4ff   : > { %4082 = vperm.xlu2 %4758, %v7397_v1   ;;  %v3275_v1 = vperm.slane %v2804_v27, 7 }
 0x503   : > { %v7477_v9 = vld [vmem:[#allocation1] sm:$0xff] }
 0x504   : > { %3811 = vst [vmem:[#allocation1] ss:$9 sm:$0xff] %v3252_v26  ;;  %v7509_v26 = vpop.xlane.xlu2 %2854 }
 0x505   : > { %3812 = vst [vmem:[#allocation1 + $0x1] ss:$9 sm:$0xff] %v3253_v36  ;;  %v3282_v36 = vperm.slane %v7421_v48, 6 }
 0x506   : > { %3813 = vst [vmem:[#allocation1 + $0x2] ss:$9 sm:$0xff] %v3254_v38  ;;  %v3283_v38 = vperm.slane %v7421_v48, 7 }
 0x507   : > { %3814 = vst [vmem:[#allocation1 + $0x3] ss:$9 sm:$0xff] %v3255_v28  ;;  %4091 = vperm.xlu2 %4758, %v7401_v33   ;;  %v3277_v33 = vperm.slane %v7421_v48, 1 }
 0x508   : > { %3815 = vst [vmem:[#allocation1 + $0x4] ss:$9 sm:$0xff] %v3256_v63  ;;  %v3285_v63 = vperm.slane %v7474_v18, 1 }
 0x509   : > { %3816 = vst [vmem:[#allocation1 + $0x5] ss:$9 sm:$0xff] %v3257_v42 }
 0x50a   : > { %3817 = vst [vmem:[#allocation1 + $0x6] ss:$9 sm:$0xff] %v3258_v43  ;;  %v3286_v43 = vperm.slane %v7474_v18, 2 }
 0x50b   : > { %3818 = vst [vmem:[#allocation1 + $0x7] ss:$9 sm:$0xff] %v3259_v40  ;;  %v3287_v40 = vperm.slane %v7474_v18, 3 }
 0x50f   : > { %4100 = vperm.xlu2 %4758, %v7405_v10   ;;  %v3281_v10 = vperm.slane %v7421_v48, 5  ;;  %v3288_v48 = vperm.slane %v7474_v18, 4 }
 0x512   : > { %v3819_v21 = vld [vmem:[#allocation1] sm:$0xff] }
 0x513   : > { %3820 = vst [vmem:[#allocation1] ss:$9 sm:$0xff] %v3260_v24  ;;  %4148 = vperm.xlu1 %4757, %v3819_v21   ;;  %v3290_v24 = vperm.slane %v7474_v18, 6 }
 0x514   : > { %3821 = vst [vmem:[#allocation1 + $0x1] ss:$9 sm:$0xff] %v3261_v22  ;;  %v3291_v22 = vperm.slane %v7474_v18, 7 }
 0x515   : > { %3822 = vst [vmem:[#allocation1 + $0x2] ss:$9 sm:$0xff] %v3262_v13  ;;  %v4219_v13 = vlaneseq }
 0x516   : > { %3823 = vst [vmem:[#allocation1 + $0x3] ss:$9 sm:$0xff] %v3263_v59  ;;  %v2161_v59 = vpop.f32.mrf.mxu3 }
 0x517   : > { %3824 = vst [vmem:[#allocation1 + $0x4] ss:$9 sm:$0xff] %v3264_v45  ;;  %4109 = vperm.xlu2 %4758, %v7409_v12   ;;  %v3284_v12 = vperm.slane %v7474_v18, 0  ;;  %v369_v45 = vld [vmem:[%s6862_s28 + $0x1f8] sm:$0xff]  ;;  %v7528_v27 = vand.u32 127, %v4219_v13 }
 0x518   : > { %3825 = vst [vmem:[#allocation1 + $0x5] ss:$9 sm:$0xff] %v3265_v30  ;;  %v8406_v30 = vld [vmem:[#allocation187_spill] sm:$0xff] }
 0x519   : > { %3826 = vst [vmem:[#allocation1 + $0x6] ss:$9 sm:$0xff] %v3266_v2 }
 0x51a   : > { %3827 = vst [vmem:[#allocation1 + $0x7] ss:$9 sm:$0xff] %v3267_v25 }
 0x51f   : > { %4118 = vperm.xlu2 %4758, %v7419_v60   ;;  %v3289_v60 = vperm.slane %v7474_v18, 5  ;;  %v4029_v18 = vpop.permute.xlu1 %4028 }
 0x521   : > { %v7494_v58 = vld [vmem:[#allocation1] sm:$0xff] }
 0x522   : > { %3829 = vst [vmem:[#allocation1] ss:$9 sm:$0xff] %v3268_v54  ;;  %v7514_v28 = vpop.xlane.xlu2 %2863 }
 0x523   : > { %3830 = vst [vmem:[#allocation1 + $0x1] ss:$9 sm:$0xff] %v3269_v62  ;;  %v7533_v62 = vadd.s32 4294967288, %v7528_v27 }
 0x524   : > { %3831 = vst [vmem:[#allocation1 + $0x2] ss:$9 sm:$0xff] %v3270_v20 }
 0x525   : > { %3832 = vst [vmem:[#allocation1 + $0x3] ss:$9 sm:$0xff] %v3271_v15 }
 0x526   : > { %3833 = vst [vmem:[#allocation1 + $0x4] ss:$9 sm:$0xff] %v3272_v51 }
 0x527   : > { %3834 = vst [vmem:[#allocation1 + $0x5] ss:$9 sm:$0xff] %v3273_v49  ;;  %4127 = vperm.xlu2 %4758, %v7435_v14   ;;  %v2813_v14 = vpop.xlane.xlu0 %2812 }
 0x528   : > { %3835 = vst [vmem:[#allocation1 + $0x6] ss:$9 sm:$0xff] %v3274_v34  ;;  %v3292_v20 = vperm.slane %v2813_v14, 0  ;;  %v3293_v49 = vperm.slane %v2813_v14, 1  ;;  %v4221_v34 = vperm.slane %v4029_v18, %v7528_v27 }
 0x529   : > { %3836 = vst [vmem:[#allocation1 + $0x7] ss:$9 sm:$0xff] %v3275_v1 }
 0x52a   : > { %v2483_v21 = vpop.permute.xlu2 %2482 }
 0x52b   : > { %vm2547_vm9 = vcmp.eq.s32.totalorder %v2483_v21, 1  ;;  %v3312_v21 = vperm.slane %v7486_v35, 4 }
 0x52c   : > { %v2611_v2 = vsel %vm2547_vm9, %v2161_v59, %v8406_v30  ;;  %v3315_v59 = vperm.slane %v7486_v35, 7  ;;  %vm4378_vm9 = vcmask 1040384  }
 0x52d   : > { %v2675_v25 = vmul.f32 %v2611_v2, %v369_v45 }
 0x52f   : > { %4136 = vperm.xlu2 %4758, %v7457_v16   ;;  %v2865_v54 = vsel %vm438_vm0, %v2675_v25, 0.0  ;;  %v3295_v16 = vperm.slane %v2813_v14, 3  ;;  %v2822_v45 = vpop.xlane.xlu0 %2821  ;;  %vm4228_vm0 = vcmask 195712  }
 0x530   : > { %v7502_v39 = vld [vmem:[#allocation1] sm:$0xff]  ;;  %2866 = vadd.xlane.f32.xlu0 %v2865_v54  ;;  %v3316_v30 = vperm.slane %v2822_v45, 0  ;;  %v3317_v2 = vperm.slane %v2822_v45, 1  ;;  %v3320_v54 = vperm.slane %v2822_v45, 4  ;;  %v3321_v18 = vperm.slane %v2822_v45, 5 }
 0x531   : > { %3838 = vst [vmem:[#allocation1] ss:$9 sm:$0xff] %v3276_v47  ;;  %v3294_v47 = vperm.slane %v2813_v14, 2 }
 0x532   : > { %3839 = vst [vmem:[#allocation1 + $0x1] ss:$9 sm:$0xff] %v3277_v33  ;;  %v4032_v15 = vpop.permute.xlu2 %4031 }
 0x533   : > { %3840 = vst [vmem:[#allocation1 + $0x2] ss:$9 sm:$0xff] %v3278_v52  ;;  %v4223_v1 = vperm.slane %v4032_v15, %v7533_v62  ;;  %v3296_v52 = vperm.slane %v2813_v14, 4  ;;  %v3325_v15 = vperm.slane %v7425_v11, 1 }
 0x534   : > { %3841 = vst [vmem:[#allocation1 + $0x3] ss:$9 sm:$0xff] %v3279_v4  ;;  %v3297_v4 = vperm.slane %v2813_v14, 5 }
 0x535   : > { %3842 = vst [vmem:[#allocation1 + $0x4] ss:$9 sm:$0xff] %v3280_v3  ;;  %v7540_v33 = vsel %vm4224_vm10, %v4223_v1, %v4221_v34  ;;  %v3298_v3 = vperm.slane %v2813_v14, 6  ;;  %v3326_v34 = vperm.slane %v7425_v11, 2  ;;  %v3327_v1 = vperm.slane %v7425_v11, 3 }
 0x536   : > { %3843 = vst [vmem:[#allocation1 + $0x5] ss:$9 sm:$0xff] %v3281_v10  ;;  %v3299_v10 = vperm.slane %v2813_v14, 7  ;;  %v3318_v14 = vperm.slane %v2822_v45, 2 }
 0x537   : > { %3844 = vst [vmem:[#allocation1 + $0x6] ss:$9 sm:$0xff] %v3282_v36  ;;  %4145 = vperm.xlu2 %4758, %v7477_v9   ;;  %v3300_v36 = vperm.slane %v7423_v44, 0  ;;  %v3304_v9 = vperm.slane %v7423_v44, 4 }
 0x538   : > { %3845 = vst [vmem:[#allocation1 + $0x7] ss:$9 sm:$0xff] %v3283_v38  ;;  %v3301_v38 = vperm.slane %v7423_v44, 1 }
 0x53f   : > { %v3846_v42 = vld [vmem:[#allocation1] sm:$0xff]  ;;  %4154 = vperm.xlu2 %4758, %v7502_v39   ;;  %v3306_v39 = vperm.slane %v7423_v44, 6 }
 0x540   : > { %3847 = vst [vmem:[#allocation1] ss:$9 sm:$0xff] %v3284_v12  ;;  %4157 = vperm.xlu1 %4757, %v3846_v42   ;;  %v3303_v42 = vperm.slane %v7423_v44, 3 }
 0x541   : > { %3848 = vst [vmem:[#allocation1 + $0x1] ss:$9 sm:$0xff] %v3285_v63  ;;  %v3302_v63 = vperm.slane %v7423_v44, 2 }
 0x542   : > { %3849 = vst [vmem:[#allocation1 + $0x2] ss:$9 sm:$0xff] %v3286_v43  ;;  %v3305_v43 = vperm.slane %v7423_v44, 5 }
 0x543   : > { %3850 = vst [vmem:[#allocation1 + $0x3] ss:$9 sm:$0xff] %v3287_v40  ;;  %v3307_v40 = vperm.slane %v7423_v44, 7  ;;  %v3313_v44 = vperm.slane %v7486_v35, 5 }
 0x544   : > { %3851 = vst [vmem:[#allocation1 + $0x4] ss:$9 sm:$0xff] %v3288_v48  ;;  %4034 = vperm.xlu0 %4756, %v7345_v37   ;;  %v3308_v48 = vperm.slane %v7486_v35, 0  ;;  %v3309_v37 = vperm.slane %v7486_v35, 1 }
 0x545   : > { %3852 = vst [vmem:[#allocation1 + $0x5] ss:$9 sm:$0xff] %v3289_v60 }
 0x546   : > { %3853 = vst [vmem:[#allocation1 + $0x6] ss:$9 sm:$0xff] %v3290_v24  ;;  %v3310_v24 = vperm.slane %v7486_v35, 2 }
 0x547   : > { %3854 = vst [vmem:[#allocation1 + $0x7] ss:$9 sm:$0xff] %v3291_v22  ;;  %v3311_v22 = vperm.slane %v7486_v35, 3 }
 0x54c   : > { %4043 = vperm.xlu0 %4756, %v7366_v56   ;;  %v3314_v56 = vperm.slane %v7486_v35, 6  ;;  %v3322_v35 = vperm.slane %v2822_v45, 6 }
 0x54e   : > { %v7535_v51 = vld [vmem:[#allocation1] sm:$0xff] }
 0x54f   : > { %3856 = vst [vmem:[#allocation1] ss:$9 sm:$0xff] %v3292_v20  ;;  %v3323_v20 = vperm.slane %v2822_v45, 7 }
 0x550   : > { %3857 = vst [vmem:[#allocation1 + $0x1] ss:$9 sm:$0xff] %v3293_v49 }
 0x551   : > { %3858 = vst [vmem:[#allocation1 + $0x2] ss:$9 sm:$0xff] %v3294_v47  ;;  %v3329_v47 = vperm.slane %v7425_v11, 5 }
 0x552   : > { %3859 = vst [vmem:[#allocation1 + $0x3] ss:$9 sm:$0xff] %v3295_v16  ;;  %v3331_v16 = vperm.slane %v7425_v11, 7 }
 0x553   : > { %3860 = vst [vmem:[#allocation1 + $0x4] ss:$9 sm:$0xff] %v3296_v52  ;;  %v3332_v52 = vperm.slane %v7489_v5, 0 }
 0x554   : > { %3861 = vst [vmem:[#allocation1 + $0x5] ss:$9 sm:$0xff] %v3297_v4  ;;  %4052 = vperm.xlu0 %4756, %v7372_v50   ;;  %v3319_v50 = vperm.slane %v2822_v45, 3  ;;  %v3333_v4 = vperm.slane %v7489_v5, 1 }
 0x555   : > { %3862 = vst [vmem:[#allocation1 + $0x6] ss:$9 sm:$0xff] %v3298_v3 }
 0x556   : > { %3863 = vst [vmem:[#allocation1 + $0x7] ss:$9 sm:$0xff] %v3299_v10  ;;  %v3334_v10 = vperm.slane %v7489_v5, 2 }
 0x55c   : > { %4061 = vperm.xlu0 %4756, %v7378_v23   ;;  %v3324_v23 = vperm.slane %v7425_v11, 0 }
 0x55d   : > { %v3864_v12 = vld [vmem:[#allocation1] sm:$0xff] }
 0x55e   : > { %3865 = vst [vmem:[#allocation1] ss:$9 sm:$0xff] %v3300_v36  ;;  %4163 = vperm.xlu2 %4758, %v3864_v12   ;;  %v3335_v36 = vperm.slane %v7489_v5, 3  ;;  %v2831_v12 = vpop.xlane.xlu0 %2830 }
 0x55f   : > { %3866 = vst [vmem:[#allocation1 + $0x1] ss:$9 sm:$0xff] %v3301_v38  ;;  %v3339_v38 = vperm.slane %v7489_v5, 7 }
 0x560   : > { %3867 = vst [vmem:[#allocation1 + $0x2] ss:$9 sm:$0xff] %v3302_v63  ;;  %v3340_v63 = vperm.slane %v2831_v12, 0 }
 0x561   : > { %3868 = vst [vmem:[#allocation1 + $0x3] ss:$9 sm:$0xff] %v3303_v42  ;;  %v3341_v42 = vperm.slane %v2831_v12, 1 }
 0x562   : > { %3869 = vst [vmem:[#allocation1 + $0x4] ss:$9 sm:$0xff] %v3304_v9 }
 0x563   : > { %3870 = vst [vmem:[#allocation1 + $0x5] ss:$9 sm:$0xff] %v3305_v43  ;;  %v3342_v43 = vperm.slane %v2831_v12, 2 }
 0x564   : > { %3871 = vst [vmem:[#allocation1 + $0x6] ss:$9 sm:$0xff] %v3306_v39  ;;  %4070 = vperm.xlu0 %4756, %v7386_v6   ;;  %v3328_v6 = vperm.slane %v7425_v11, 4  ;;  %v3343_v39 = vperm.slane %v2831_v12, 3 }
 0x565   : > { %3872 = vst [vmem:[#allocation1 + $0x7] ss:$9 sm:$0xff] %v3307_v40  ;;  %v3344_v40 = vperm.slane %v2831_v12, 4 }
 0x56c   : > { %v3873_v60 = vld [vmem:[#allocation1] sm:$0xff]  ;;  %4079 = vperm.xlu0 %4756, %v7395_v29   ;;  %v3330_v29 = vperm.slane %v7425_v11, 6  ;;  %v3337_v11 = vperm.slane %v7489_v5, 5 }
 0x56d   : > { %3874 = vst [vmem:[#allocation1] ss:$9 sm:$0xff] %v3308_v48  ;;  %4166 = vperm.xlu1 %4757, %v3873_v60   ;;  %v3345_v48 = vperm.slane %v2831_v12, 5 }
 0x56e   : > { %3875 = vst [vmem:[#allocation1 + $0x1] ss:$9 sm:$0xff] %v3309_v37  ;;  %v3349_v37 = vperm.slane %v7429_v32, 1 }
 0x56f   : > { %3876 = vst [vmem:[#allocation1 + $0x2] ss:$9 sm:$0xff] %v3310_v24  ;;  %v3350_v24 = vperm.slane %v7429_v32, 2 }
 0x570   : > { %3877 = vst [vmem:[#allocation1 + $0x3] ss:$9 sm:$0xff] %v3311_v22  ;;  %v3351_v22 = vperm.slane %v7429_v32, 3 }
 0x571   : > { %3878 = vst [vmem:[#allocation1 + $0x4] ss:$9 sm:$0xff] %v3312_v21  ;;  %v3352_v21 = vperm.slane %v7429_v32, 4 }
 0x572   : > { %3879 = vst [vmem:[#allocation1 + $0x5] ss:$9 sm:$0xff] %v3313_v44  ;;  %v3354_v44 = vperm.slane %v7429_v32, 6 }
 0x573   : > { %3880 = vst [vmem:[#allocation1 + $0x6] ss:$9 sm:$0xff] %v3314_v56  ;;  %v3355_v56 = vperm.slane %v7429_v32, 7 }
 0x574   : > { %3881 = vst [vmem:[#allocation1 + $0x7] ss:$9 sm:$0xff] %v3315_v59  ;;  %4088 = vperm.xlu0 %4756, %v7399_v7   ;;  %v3336_v7 = vperm.slane %v7489_v5, 4  ;;  %v3357_v59 = vperm.slane %v7492_v17, 1 }
 0x57b   : > { %v7564_v25 = vld [vmem:[#allocation1] sm:$0xff] }
 0x57c   : > { %3883 = vst [vmem:[#allocation1] ss:$9 sm:$0xff] %v3316_v30  ;;  %4097 = vperm.xlu0 %4756, %v7403_v41   ;;  %v3338_v41 = vperm.slane %v7489_v5, 6  ;;  %v3346_v5 = vperm.slane %v2831_v12, 6  ;;  %v3358_v30 = vperm.slane %v7492_v17, 2 }
 0x57d   : > { %3884 = vst [vmem:[#allocation1 + $0x1] ss:$9 sm:$0xff] %v3317_v2  ;;  %v3359_v2 = vperm.slane %v7492_v17, 3 }
 0x57e   : > { %3885 = vst [vmem:[#allocation1 + $0x2] ss:$9 sm:$0xff] %v3318_v14  ;;  %v3361_v14 = vperm.slane %v7492_v17, 5 }
 0x57f   : > { %3886 = vst [vmem:[#allocation1 + $0x3] ss:$9 sm:$0xff] %v3319_v50  ;;  %v3363_v50 = vperm.slane %v7492_v17, 7 }
 0x580   : > { %3887 = vst [vmem:[#allocation1 + $0x4] ss:$9 sm:$0xff] %v3320_v54 }
 0x581   : > { %3888 = vst [vmem:[#allocation1 + $0x5] ss:$9 sm:$0xff] %v3321_v18 }
 0x582   : > { %3889 = vst [vmem:[#allocation1 + $0x6] ss:$9 sm:$0xff] %v3322_v35 }
 0x583   : > { %3890 = vst [vmem:[#allocation1 + $0x7] ss:$9 sm:$0xff] %v3323_v20 }
 0x584   : > { %4106 = vperm.xlu0 %4756, %v7407_v8   ;;  %v3347_v8 = vperm.slane %v2831_v12, 7  ;;  %v3383_v12 = vperm.slane %v7498_v55, 3 }
 0x58a   : > { %v3891_v49 = vld [vmem:[#allocation1] sm:$0xff] }
 0x58b   : > { %3892 = vst [vmem:[#allocation1] ss:$9 sm:$0xff] %v3324_v23  ;;  %4172 = vperm.xlu2 %4758, %v3891_v49  }
 0x58c   : > { %3893 = vst [vmem:[#allocation1 + $0x1] ss:$9 sm:$0xff] %v3325_v15  ;;  %4115 = vperm.xlu0 %4756, %v7415_v57   ;;  %v3348_v57 = vperm.slane %v7429_v32, 0 }
 0x58d   : > { %3894 = vst [vmem:[#allocation1 + $0x2] ss:$9 sm:$0xff] %v3326_v34 }
 0x58e   : > { %3895 = vst [vmem:[#allocation1 + $0x3] ss:$9 sm:$0xff] %v3327_v1  ;;  %v3372_v1 = vperm.slane %v7432_v0, 0 }
 0x58f   : > { %3896 = vst [vmem:[#allocation1 + $0x4] ss:$9 sm:$0xff] %v3328_v6  ;;  %v3373_v6 = vperm.slane %v7432_v0, 1 }
 0x590   : > { %3897 = vst [vmem:[#allocation1 + $0x5] ss:$9 sm:$0xff] %v3329_v47 }
 0x591   : > { %3898 = vst [vmem:[#allocation1 + $0x6] ss:$9 sm:$0xff] %v3330_v29  ;;  %v3375_v29 = vperm.slane %v7432_v0, 3 }
 0x592   : > { %3899 = vst [vmem:[#allocation1 + $0x7] ss:$9 sm:$0xff] %v3331_v16  ;;  %v3376_v16 = vperm.slane %v7432_v0, 4 }
 0x594   : > { %4124 = vperm.xlu0 %4756, %v7427_v61   ;;  %v3353_v61 = vperm.slane %v7429_v32, 5  ;;  %v3360_v32 = vperm.slane %v7492_v17, 4 }
 0x599   : > { %v3900_v3 = vld [vmem:[#allocation1] sm:$0xff] }
 0x59a   : > { %3901 = vst [vmem:[#allocation1] ss:$9 sm:$0xff] %v3332_v52  ;;  %4175 = vperm.xlu1 %4757, %v3900_v3   ;;  %v3377_v52 = vperm.slane %v7432_v0, 5 }
 0x59b   : > { %3902 = vst [vmem:[#allocation1 + $0x1] ss:$9 sm:$0xff] %v3333_v4  ;;  %v3378_v4 = vperm.slane %v7432_v0, 6 }
 0x59c   : > { %3903 = vst [vmem:[#allocation1 + $0x2] ss:$9 sm:$0xff] %v3334_v10  ;;  %4133 = vperm.xlu0 %4756, %v7452_v19   ;;  %v3356_v19 = vperm.slane %v7492_v17, 0  ;;  %v3379_v10 = vperm.slane %v7432_v0, 7 }
 0x59d   : > { %3904 = vst [vmem:[#allocation1 + $0x3] ss:$9 sm:$0xff] %v3335_v36 }
 0x59e   : > { %3905 = vst [vmem:[#allocation1 + $0x4] ss:$9 sm:$0xff] %v3336_v7  ;;  %v3380_v7 = vperm.slane %v7498_v55, 0 }
 0x59f   : > { %3906 = vst [vmem:[#allocation1 + $0x5] ss:$9 sm:$0xff] %v3337_v11  ;;  %v3381_v11 = vperm.slane %v7498_v55, 1 }
 0x5a0   : > { %3907 = vst [vmem:[#allocation1 + $0x6] ss:$9 sm:$0xff] %v3338_v41 }
 0x5a1   : > { %3908 = vst [vmem:[#allocation1 + $0x7] ss:$9 sm:$0xff] %v3339_v38  ;;  %v3382_v38 = vperm.slane %v7498_v55, 2 }
 0x5a4   : > { %4142 = vperm.xlu0 %4756, %v7469_v46   ;;  %v3362_v46 = vperm.slane %v7492_v17, 6 }
 0x5a8   : > { %v7588_v9 = vld [vmem:[#allocation1] sm:$0xff] }
 0x5a9   : > { %3910 = vst [vmem:[#allocation1] ss:$9 sm:$0xff] %v3340_v63  ;;  %v3384_v63 = vperm.slane %v7498_v55, 4 }
 0x5aa   : > { %3911 = vst [vmem:[#allocation1 + $0x1] ss:$9 sm:$0xff] %v3341_v42  ;;  %v3386_v42 = vperm.slane %v7498_v55, 6 }
 0x5ab   : > { %3912 = vst [vmem:[#allocation1 + $0x2] ss:$9 sm:$0xff] %v3342_v43  ;;  %v7635_v43 = vadd.s32 4294967280, %v7528_v27 }
 0x5ac   : > { %3913 = vst [vmem:[#allocation1 + $0x3] ss:$9 sm:$0xff] %v3343_v39  ;;  %4151 = vperm.xlu0 %4756, %v7494_v58   ;;  %v2840_v58 = vpop.xlane.xlu0 %2839  ;;  %v3387_v39 = vperm.slane %v7498_v55, 7 }
 0x5ad   : > { %3914 = vst [vmem:[#allocation1 + $0x4] ss:$9 sm:$0xff] %v3344_v40  ;;  %v3364_v54 = vperm.slane %v2840_v58, 0  ;;  %v3365_v18 = vperm.slane %v2840_v58, 1  ;;  %v3366_v20 = vperm.slane %v2840_v58, 2  ;;  %v3367_v23 = vperm.slane %v2840_v58, 3 }
 0x5ae   : > { %3915 = vst [vmem:[#allocation1 + $0x5] ss:$9 sm:$0xff] %v3345_v48  ;;  %v3368_v15 = vperm.slane %v2840_v58, 4  ;;  %v3369_v49 = vperm.slane %v2840_v58, 5  ;;  %v3370_v17 = vperm.slane %v2840_v58, 6  ;;  %v3371_v34 = vperm.slane %v2840_v58, 7 }
 0x5af   : > { %3916 = vst [vmem:[#allocation1 + $0x6] ss:$9 sm:$0xff] %v3346_v5  ;;  %v7639_v40 = vadd.s32 4294967272, %v7528_v27 }
 0x5b0   : > { %3917 = vst [vmem:[#allocation1 + $0x7] ss:$9 sm:$0xff] %v3347_v8 }
 0x5b4   : > { %4160 = vperm.xlu0 %4756, %v7535_v51   ;;  %v7612_v51 = vpop.xlane.xlu0 %2848 }
 0x5b7   : > { %v3918_v60 = vld [vmem:[#allocation1] sm:$0xff] }
 0x5b8   : > { %3919 = vst [vmem:[#allocation1] ss:$9 sm:$0xff] %v3348_v57  ;;  %4181 = vperm.xlu2 %4758, %v3918_v60   ;;  %v4041_v60 = vpop.permute.xlu1 %4040 }
 0x5b9   : > { %3920 = vst [vmem:[#allocation1 + $0x1] ss:$9 sm:$0xff] %v3349_v37 }
 0x5ba   : > { %3921 = vst [vmem:[#allocation1 + $0x2] ss:$9 sm:$0xff] %v3350_v24  ;;  %v7648_v24 = vadd.s32 4294967264, %v7528_v27 }
 0x5bb   : > { %3922 = vst [vmem:[#allocation1 + $0x3] ss:$9 sm:$0xff] %v3351_v22  ;;  %v3389_v22 = vperm.slane %v7612_v51, 1 }
 0x5bc   : > { %3923 = vst [vmem:[#allocation1 + $0x4] ss:$9 sm:$0xff] %v3352_v21  ;;  %4169 = vperm.xlu0 %4756, %v7564_v25   ;;  %v3374_v25 = vperm.slane %v7432_v0, 2  ;;  %v7622_v3 = vpop.xlane.xlu0 %2857  ;;  %v3385_v0 = vperm.slane %v7498_v55, 5  ;;  %v3388_v55 = vperm.slane %v7612_v51, 0 }
 0x5bd   : > { %3924 = vst [vmem:[#allocation1 + $0x5] ss:$9 sm:$0xff] %v3353_v61  ;;  %v3390_v61 = vperm.slane %v7612_v51, 2 }
 0x5be   : > { %3925 = vst [vmem:[#allocation1 + $0x6] ss:$9 sm:$0xff] %v3354_v44  ;;  %v3391_v44 = vperm.slane %v7612_v51, 3 }
 0x5bf   : > { %3926 = vst [vmem:[#allocation1 + $0x7] ss:$9 sm:$0xff] %v3355_v56  ;;  %v4235_v56 = vperm.slane %v4041_v60, %v7648_v24  ;;  %v7704_v60 = vadd.s32 4294967208, %v7528_v27 }
 0x5c4   : > { %4178 = vperm.xlu0 %4756, %v7588_v9   ;;  %v7625_v36 = vpop.xlane.xlu0 %2866  ;;  %v4038_v9 = vpop.permute.xlu2 %4037 }
 0x5c5   : > { %v4231_v8 = vperm.slane %v4038_v9, %v7639_v40 }
 0x5c6   : > { %v3927_v45 = vld [vmem:[#allocation1] sm:$0xff] }
 0x5c7   : > { %4184 = vperm.xlu1 %4757, %v3927_v45   ;;  %3928 = vst [vmem:[#allocation1] ss:$9 sm:$0xff] %v3356_v19  ;;  %v3394_v45 = vperm.slane %v7612_v51, 6 }
 0x5c8   : > { %3929 = vst [vmem:[#allocation1 + $0x1] ss:$9 sm:$0xff] %v3357_v59  ;;  %v3393_v59 = vperm.slane %v7612_v51, 5 }
 0x5c9   : > { %3930 = vst [vmem:[#allocation1 + $0x2] ss:$9 sm:$0xff] %v3358_v30  ;;  %v7658_v30 = vadd.s32 4294967240, %v7528_v27 }
 0x5ca   : > { %3931 = vst [vmem:[#allocation1 + $0x3] ss:$9 sm:$0xff] %v3359_v2  ;;  %v7661_v2 = vadd.s32 4294967256, %v7528_v27 }
 0x5cb   : > { %3932 = vst [vmem:[#allocation1 + $0x4] ss:$9 sm:$0xff] %v3360_v32 }
 0x5cc   : > { %3933 = vst [vmem:[#allocation1 + $0x5] ss:$9 sm:$0xff] %v3361_v14  ;;  %v4035_v48 = vpop.permute.xlu0 %4034  ;;  %v4047_v19 = vpop.permute.xlu2 %4046  ;;  %v3395_v14 = vperm.slane %v7612_v51, 7 }
 0x5cd   : > { %3934 = vst [vmem:[#allocation1 + $0x6] ss:$9 sm:$0xff] %v3362_v46  ;;  %v4227_v5 = vperm.slane %v4035_v48, %v7635_v43  ;;  %v4050_v46 = vpop.permute.xlu1 %4049  ;;  %v3407_v48 = vperm.slane %v7509_v26, 3 }
 0x5ce   : > { %3935 = vst [vmem:[#allocation1 + $0x7] ss:$9 sm:$0xff] %v3363_v50  ;;  %v7666_v50 = vadd.s32 4294967248, %v7528_v27 }
 0x5cf   : > { %v4229_v57 = vsel %vm4228_vm0, %v4227_v5, %v7540_v33  ;;  %v3392_v33 = vperm.slane %v7612_v51, 4  ;;  %v7679_v51 = vadd.s32 4294967224, %v7528_v27 }
 0x5d0   : > { %v4233_v37 = vsel %vm4232_vm11, %v4231_v8, %v4229_v57  ;;  %v3409_v8 = vperm.slane %v7509_v26, 5 }
 0x5d1   : > { %v4237_v32 = vsel %vm4236_vm12, %v4235_v56, %v4233_v37  ;;  %v3410_v37 = vperm.slane %v7509_v26, 6 }
 0x5d4   : > { %v4044_v58 = vpop.permute.xlu0 %4043 }
 0x5d5   : > { %v3936_v35 = vld [vmem:[#allocation1] sm:$0xff] }
 0x5d6   : > { %3937 = vst [vmem:[#allocation1] ss:$9 sm:$0xff] %v3364_v54  ;;  %4187 = vperm.xlu0 %4756, %v3936_v35   ;;  %v4239_v54 = vperm.slane %v4044_v58, %v7661_v2  ;;  %v4247_v35 = vperm.slane %v4050_v46, %v7658_v30  ;;  %v3414_v58 = vperm.slane %v7622_v3, 2 }
 0x5d7   : > { %3938 = vst [vmem:[#allocation1 + $0x1] ss:$9 sm:$0xff] %v3365_v18  ;;  %v4243_v18 = vperm.slane %v4047_v19, %v7666_v50 }
 0x5d8   : > { %3939 = vst [vmem:[#allocation1 + $0x2] ss:$9 sm:$0xff] %v3366_v20  ;;  %v4241_v20 = vsel %vm4240_vm13, %v4239_v54, %v4237_v32  ;;  %v3413_v32 = vperm.slane %v7622_v3, 1  ;;  %v3415_v54 = vperm.slane %v7622_v3, 3 }
 0x5d9   : > { %3940 = vst [vmem:[#allocation1 + $0x3] ss:$9 sm:$0xff] %v3367_v23  ;;  %v4245_v23 = vsel %vm4244_vm14, %v4243_v18, %v4241_v20  ;;  %v3416_v18 = vperm.slane %v7622_v3, 4  ;;  %v3417_v20 = vperm.slane %v7622_v3, 5 }
 0x5da   : > { %3941 = vst [vmem:[#allocation1 + $0x4] ss:$9 sm:$0xff] %v3368_v15  ;;  %v4249_v15 = vsel %vm4248_vm15, %v4247_v35, %v4245_v23  ;;  %v3418_v23 = vperm.slane %v7622_v3, 6 }
 0x5db   : > { %3942 = vst [vmem:[#allocation1 + $0x5] ss:$9 sm:$0xff] %v3369_v49  ;;  %v4056_v49 = vpop.permute.xlu2 %4055 }
 0x5dc   : > { %3943 = vst [vmem:[#allocation1 + $0x6] ss:$9 sm:$0xff] %v3370_v17  ;;  %v7675_v17 = vadd.s32 4294967232, %v7528_v27 }
 0x5dd   : > { %3944 = vst [vmem:[#allocation1 + $0x7] ss:$9 sm:$0xff] %v3371_v34  ;;  %v3396_v34 = vperm.slane %v7443_v53, 0 }
 0x5e3   : > { %v4065_v57 = vpop.permute.xlu2 %4064 }
 0x5e4   : > { %v3945_v47 = vld [vmem:[#allocation1] sm:$0xff] }
 0x5e5   : > { %4190 = vperm.xlu2 %4758, %v3945_v47   ;;  %3946 = vst [vmem:[#allocation1] ss:$9 sm:$0xff] %v3372_v1  ;;  %v4053_v1 = vpop.permute.xlu0 %4052 }
 0x5e6   : > { %3947 = vst [vmem:[#allocation1 + $0x1] ss:$9 sm:$0xff] %v3373_v6  ;;  %v3397_v6 = vperm.slane %v7443_v53, 1 }
 0x5e7   : > { %3948 = vst [vmem:[#allocation1 + $0x2] ss:$9 sm:$0xff] %v3374_v25  ;;  %v4251_v25 = vperm.slane %v4053_v1, %v7675_v17  ;;  %v7732_v1 = vadd.s32 4294967176, %v7528_v27 }
 0x5e8   : > { %3949 = vst [vmem:[#allocation1 + $0x3] ss:$9 sm:$0xff] %v3375_v29  ;;  %v3398_v29 = vperm.slane %v7443_v53, 2 }
 0x5e9   : > { %3950 = vst [vmem:[#allocation1 + $0x4] ss:$9 sm:$0xff] %v3376_v16  ;;  %v4255_v16 = vperm.slane %v4056_v49, %v7679_v51 }
 0x5ea   : > { %3951 = vst [vmem:[#allocation1 + $0x5] ss:$9 sm:$0xff] %v3377_v52  ;;  %v3399_v52 = vperm.slane %v7443_v53, 3 }
 0x5eb   : > { %3952 = vst [vmem:[#allocation1 + $0x6] ss:$9 sm:$0xff] %v3378_v4  ;;  %v4253_v4 = vsel %vm4252_vm1, %v4251_v25, %v4249_v15  ;;  %v7727_v15 = vadd.s32 4294967184, %v7528_v27 }
 0x5ec   : > { %3953 = vst [vmem:[#allocation1 + $0x7] ss:$9 sm:$0xff] %v3379_v10  ;;  %v3400_v10 = vperm.slane %v7443_v53, 4 }
 0x5f3   : > { %v3954_v41 = vld [vmem:[#allocation1] sm:$0xff] }
 0x5f4   : > { %4193 = vperm.xlu1 %4757, %v3954_v41   ;;  %3955 = vst [vmem:[#allocation1] ss:$9 sm:$0xff] %v3380_v7  ;;  %v4257_v7 = vsel %vm4256_vm2, %v4255_v16, %v4253_v4  ;;  %v3402_v41 = vperm.slane %v7443_v53, 6  ;;  %v3420_v4 = vperm.slane %v7445_v31, 0 }
 0x5f5   : > { %3956 = vst [vmem:[#allocation1 + $0x1] ss:$9 sm:$0xff] %v3381_v11  ;;  %v3401_v11 = vperm.slane %v7443_v53, 5 }
 0x5f6   : > { %3957 = vst [vmem:[#allocation1 + $0x2] ss:$9 sm:$0xff] %v3382_v38  ;;  %v3403_v38 = vperm.slane %v7443_v53, 7  ;;  %v3408_v53 = vperm.slane %v7509_v26, 4 }
 0x5f7   : > { %3958 = vst [vmem:[#allocation1 + $0x3] ss:$9 sm:$0xff] %v3383_v12  ;;  %v3404_v12 = vperm.slane %v7509_v26, 0 }
 0x5f8   : > { %3959 = vst [vmem:[#allocation1 + $0x4] ss:$9 sm:$0xff] %v3384_v63  ;;  %v7694_v63 = vadd.s32 4294967216, %v7528_v27 }
 0x5f9   : > { %3960 = vst [vmem:[#allocation1 + $0x5] ss:$9 sm:$0xff] %v3385_v0  ;;  %v3405_v0 = vperm.slane %v7509_v26, 1 }
 0x5fa   : > { %3961 = vst [vmem:[#allocation1 + $0x6] ss:$9 sm:$0xff] %v3386_v42  ;;  %v4059_v42 = vpop.permute.xlu1 %4058 }
 0x5fb   : > { %3962 = vst [vmem:[#allocation1 + $0x7] ss:$9 sm:$0xff] %v3387_v39  ;;  %v3406_v39 = vperm.slane %v7509_v26, 2  ;;  %v4259_v5 = vperm.slane %v4059_v42, %v7694_v63  ;;  %v3423_v42 = vperm.slane %v7445_v31, 3 }
 0x602   : > { %v3963_v21 = vld [vmem:[#allocation1] sm:$0xff] }
 0x603   : > { %3964 = vst [vmem:[#allocation1] ss:$9 sm:$0xff] %v3388_v55  ;;  %4196 = vperm.xlu0 %4756, %v3963_v21   ;;  %v4261_v55 = vsel %vm4260_vm3, %v4259_v5, %v4257_v7  ;;  %v7709_v21 = vadd.s32 4294967200, %v7528_v27  ;;  %v3421_v7 = vperm.slane %v7445_v31, 1 }
 0x604   : > { %3965 = vst [vmem:[#allocation1 + $0x1] ss:$9 sm:$0xff] %v3389_v22  ;;  %v3411_v22 = vperm.slane %v7509_v26, 7  ;;  %v7717_v26 = vadd.s32 4294967192, %v7528_v27 }
 0x605   : > { %3966 = vst [vmem:[#allocation1 + $0x2] ss:$9 sm:$0xff] %v3390_v61  ;;  %v4062_v61 = vpop.permute.xlu0 %4061 }
 0x606   : > { %3967 = vst [vmem:[#allocation1 + $0x3] ss:$9 sm:$0xff] %v3391_v44  ;;  %v4263_v44 = vperm.slane %v4062_v61, %v7704_v60 }
 0x607   : > { %3968 = vst [vmem:[#allocation1 + $0x4] ss:$9 sm:$0xff] %v3392_v33  ;;  %v4267_v33 = vperm.slane %v4065_v57, %v7709_v21 }
 0x608   : > { %3969 = vst [vmem:[#allocation1 + $0x5] ss:$9 sm:$0xff] %v3393_v59  ;;  %v4265_v56 = vsel %vm4264_vm4, %v4263_v44, %v4261_v55  ;;  %v3412_v59 = vperm.slane %v7622_v3, 0  ;;  %v3428_v44 = vperm.slane %v7514_v28, 0 }
 0x609   : > { %3970 = vst [vmem:[#allocation1 + $0x6] ss:$9 sm:$0xff] %v3394_v45  ;;  %v4269_v19 = vsel %vm4268_vm5, %v4267_v33, %v4265_v56  ;;  %v4074_v45 = vpop.permute.xlu2 %4073 }
 0x60a   : > { %3971 = vst [vmem:[#allocation1 + $0x7] ss:$9 sm:$0xff] %v3395_v14  ;;  %v4068_v14 = vpop.permute.xlu1 %4067  ;;  %v4279_v25 = vperm.slane %v4074_v45, %v7732_v1 }
 0x60b   : > { %v4271_v35 = vperm.slane %v4068_v14, %v7717_v26 }
 0x60d   : > { %v4273_v49 = vsel %vm4272_vm6, %v4271_v35, %v4269_v19  ;;  %v3429_v19 = vperm.slane %v7514_v28, 1  ;;  %v3433_v35 = vperm.slane %v7514_v28, 5 }
 0x611   : > { %v3972_v47 = vld [vmem:[#allocation1] sm:$0xff] }
 0x612   : > { %4199 = vperm.xlu2 %4758, %v3972_v47   ;;  %3973 = vst [vmem:[#allocation1] ss:$9 sm:$0xff] %v3396_v34  ;;  %v3419_v34 = vperm.slane %v7622_v3, 7  ;;  %v4077_v3 = vpop.permute.xlu1 %4076 }
 0x613   : > { %3974 = vst [vmem:[#allocation1 + $0x1] ss:$9 sm:$0xff] %v3397_v6  ;;  %v4071_v6 = vpop.permute.xlu0 %4070 }
 0x614   : > { %3975 = vst [vmem:[#allocation1 + $0x2] ss:$9 sm:$0xff] %v3398_v29  ;;  %v4275_v47 = vperm.slane %v4071_v6, %v7727_v15  ;;  %v4083_v29 = vpop.permute.xlu2 %4082 }
 0x615   : > { %3976 = vst [vmem:[#allocation1 + $0x3] ss:$9 sm:$0xff] %v3399_v52 }
 0x616   : > { %3977 = vst [vmem:[#allocation1 + $0x4] ss:$9 sm:$0xff] %v3400_v10  ;;  %v4277_v16 = vsel %vm4276_vm7, %v4275_v47, %v4273_v49  ;;  %v3435_v49 = vperm.slane %v7514_v28, 7 }
 0x617   : > { %3978 = vst [vmem:[#allocation1 + $0x5] ss:$9 sm:$0xff] %v3401_v11  ;;  %v7738_v52 = vsel %vm4280_vm8, %v4279_v25, %v4277_v16  ;;  %v4282_v11 = vperm.slane %v4077_v3, %v7528_v27 }
 0x618   : > { %3979 = vst [vmem:[#allocation1 + $0x6] ss:$9 sm:$0xff] %v3402_v41 }
 0x619   : > { %3980 = vst [vmem:[#allocation1 + $0x7] ss:$9 sm:$0xff] %v3403_v38 }
 0x61a   : > { %v4086_v57 = vpop.permute.xlu1 %4085 }
 0x61b   : > { %v4080_v10 = vpop.permute.xlu0 %4079  ;;  %v4287_v55 = vperm.slane %v4086_v57, %v7639_v40 }
 0x61c   : > { %v4283_v38 = vperm.slane %v4080_v10, %v7533_v62  ;;  %v4092_v5 = vpop.permute.xlu2 %4091 }
 0x620   : > { %v3981_v9 = vld [vmem:[#allocation1] sm:$0xff] }
 0x621   : > { %4202 = vperm.xlu1 %4757, %v3981_v9   ;;  %3982 = vst [vmem:[#allocation1] ss:$9 sm:$0xff] %v3404_v12  ;;  %v3422_v12 = vperm.slane %v7445_v31, 2  ;;  %v4284_v9 = vsel %vm4224_vm10, %v4283_v38, %v4282_v11  ;;  %v3437_v11 = vperm.slane %v7625_v36, 1 }
 0x622   : > { %3983 = vst [vmem:[#allocation1 + $0x1] ss:$9 sm:$0xff] %v3405_v0  ;;  %v4285_v0 = vperm.slane %v4083_v29, %v7635_v43 }
 0x623   : > { %3984 = vst [vmem:[#allocation1 + $0x2] ss:$9 sm:$0xff] %v3406_v39  ;;  %v3424_v39 = vperm.slane %v7445_v31, 4  ;;  %v4089_v56 = vpop.permute.xlu0 %4088 }
 0x624   : > { %3985 = vst [vmem:[#allocation1 + $0x3] ss:$9 sm:$0xff] %v3407_v48  ;;  %v4286_v48 = vsel %vm4228_vm0, %v4285_v0, %v4284_v9  ;;  %v4101_v33 = vpop.permute.xlu2 %4100  ;;  %v4289_v45 = vperm.slane %v4089_v56, %v7648_v24  ;;  %v3439_v9 = vperm.slane %v7625_v36, 3 }
 0x625   : > { %3986 = vst [vmem:[#allocation1 + $0x4] ss:$9 sm:$0xff] %v3408_v53  ;;  %v3425_v53 = vperm.slane %v7445_v31, 5  ;;  %v4288_v61 = vsel %vm4232_vm11, %v4287_v55, %v4286_v48  ;;  %v4297_v25 = vperm.slane %v4101_v33, %v7675_v17  ;;  %v3440_v48 = vperm.slane %v7625_v36, 4 }
 0x626   : > { %3987 = vst [vmem:[#allocation1 + $0x5] ss:$9 sm:$0xff] %v3409_v8  ;;  %v3426_v8 = vperm.slane %v7445_v31, 6 }
 0x627   : > { %3988 = vst [vmem:[#allocation1 + $0x6] ss:$9 sm:$0xff] %v3410_v37  ;;  %v3427_v37 = vperm.slane %v7445_v31, 7  ;;  %v4291_v31 = vperm.slane %v4092_v5, %v7661_v2 }
 0x628   : > { %3989 = vst [vmem:[#allocation1 + $0x7] ss:$9 sm:$0xff] %v3411_v22  ;;  %v4095_v22 = vpop.permute.xlu1 %4094 }
 0x629   : > { %v4293_v14 = vperm.slane %v4095_v22, %v7666_v50  ;;  %v3443_v22 = vperm.slane %v7625_v36, 7 }
 0x62b   : > { %v4098_v6 = vpop.permute.xlu0 %4097 }
 0x62c   : > { %v4295_v47 = vperm.slane %v4098_v6, %v7658_v30  ;;  %v4110_v29 = vpop.permute.xlu2 %4109 }
 0x62f   : > { %v3990_v46 = vld [vmem:[#allocation1] sm:$0xff] }
 0x630   : > { %3991 = vst [vmem:[#allocation1] ss:$9 sm:$0xff] %v3412_v59  ;;  %4205 = vperm.xlu0 %4756, %v3990_v46   ;;  %v3431_v46 = vperm.slane %v7514_v28, 3 }
 0x631   : > { %3992 = vst [vmem:[#allocation1 + $0x1] ss:$9 sm:$0xff] %v3413_v32  ;;  %v3430_v32 = vperm.slane %v7514_v28, 2 }
 0x632   : > { %3993 = vst [vmem:[#allocation1 + $0x2] ss:$9 sm:$0xff] %v3414_v58  ;;  %v4290_v58 = vsel %vm4236_vm12, %v4289_v45, %v4288_v61 }
 0x633   : > { %3994 = vst [vmem:[#allocation1 + $0x3] ss:$9 sm:$0xff] %v3415_v54  ;;  %v3432_v54 = vperm.slane %v7514_v28, 4  ;;  %v4107_v38 = vpop.permute.xlu0 %4106 }
 0x634   : > { %3995 = vst [vmem:[#allocation1 + $0x4] ss:$9 sm:$0xff] %v3416_v18  ;;  %v4292_v18 = vsel %vm4240_vm13, %v4291_v31, %v4290_v58  ;;  %v4301_v0 = vperm.slane %v4107_v38, %v7694_v63  ;;  %v4119_v5 = vpop.permute.xlu2 %4118 }
 0x635   : > { %3996 = vst [vmem:[#allocation1 + $0x5] ss:$9 sm:$0xff] %v3417_v20  ;;  %v4294_v20 = vsel %vm4244_vm14, %v4293_v14, %v4292_v18  ;;  %v4309_v56 = vperm.slane %v4119_v5, %v7727_v15 }
 0x636   : > { %3997 = vst [vmem:[#allocation1 + $0x6] ss:$9 sm:$0xff] %v3418_v23  ;;  %v3434_v23 = vperm.slane %v7514_v28, 6  ;;  %v4296_v3 = vsel %vm4248_vm15, %v4295_v47, %v4294_v20  ;;  %v3436_v28 = vperm.slane %v7625_v36, 0 }
 0x637   : > { %3998 = vst [vmem:[#allocation1 + $0x7] ss:$9 sm:$0xff] %v3419_v34  ;;  %v4104_v34 = vpop.permute.xlu1 %4103 }
 0x638   : > { %v4299_v16 = vperm.slane %v4104_v34, %v7679_v51 }
 0x63c   : > { %v4128_v31 = vpop.permute.xlu2 %4127 }
 0x63d   : > { %v4314_v58 = vperm.slane %v4128_v31, %v7533_v62 }
 0x63e   : > { %v3999_v41 = vld [vmem:[#allocation1] sm:$0xff] }
 0x63f   : > { %4208 = vperm.xlu2 %4758, %v3999_v41   ;;  %4000 = vst [vmem:[#allocation1] ss:$9 sm:$0xff] %v3420_v4  ;;  %v4298_v4 = vsel %vm4252_vm1, %v4297_v25, %v4296_v3 }
 0x640   : > { %4001 = vst [vmem:[#allocation1 + $0x1] ss:$9 sm:$0xff] %v3421_v7  ;;  %v4300_v10 = vsel %vm4256_vm2, %v4299_v16, %v4298_v4  ;;  %v4113_v7 = vpop.permute.xlu1 %4112 }
 0x641   : > { %4002 = vst [vmem:[#allocation1 + $0x2] ss:$9 sm:$0xff] %v3422_v12  ;;  %v3438_v12 = vperm.slane %v7625_v36, 2 }
 0x642   : > { %4003 = vst [vmem:[#allocation1 + $0x3] ss:$9 sm:$0xff] %v3423_v42  ;;  %v4303_v42 = vperm.slane %v4110_v29, %v7704_v60 }
 0x643   : > { %4004 = vst [vmem:[#allocation1 + $0x4] ss:$9 sm:$0xff] %v3424_v39  ;;  %v4305_v39 = vperm.slane %v4113_v7, %v7709_v21 }
 0x644   : > { %4005 = vst [vmem:[#allocation1 + $0x5] ss:$9 sm:$0xff] %v3425_v53  ;;  %v4302_v53 = vsel %vm4260_vm3, %v4301_v0, %v4300_v10 }
 0x645   : > { %4006 = vst [vmem:[#allocation1 + $0x6] ss:$9 sm:$0xff] %v3426_v8  ;;  %v3441_v8 = vperm.slane %v7625_v36, 5  ;;  %v4304_v57 = vsel %vm4264_vm4, %v4303_v42, %v4302_v53 }
 0x646   : > { %4007 = vst [vmem:[#allocation1 + $0x7] ss:$9 sm:$0xff] %v3427_v37  ;;  %v3442_v37 = vperm.slane %v7625_v36, 6  ;;  %v4306_v55 = vsel %vm4268_vm5, %v4305_v39, %v4304_v57 }
 0x648   : > { %v4122_v61 = vpop.permute.xlu1 %4121 }
 0x64d   : > { %v4008_v59 = vld [vmem:[#allocation1] sm:$0xff] }
 0x64e   : > { %4211 = vperm.xlu1 %4757, %v4008_v59   ;;  %4009 = vst [vmem:[#allocation1] ss:$9 sm:$0xff] %v3428_v44  ;;  %v4116_v44 = vpop.permute.xlu0 %4115 }
 0x64f   : > { %4010 = vst [vmem:[#allocation1 + $0x1] ss:$9 sm:$0xff] %v3429_v19  ;;  %v4307_v33 = vperm.slane %v4116_v44, %v7717_v26  ;;  %v4311_v19 = vperm.slane %v4122_v61, %v7732_v1 }
 0x650   : > { %4011 = vst [vmem:[#allocation1 + $0x2] ss:$9 sm:$0xff] %v3430_v32  ;;  %v4131_v34 = vpop.permute.xlu1 %4130 }
 0x651   : > { %4012 = vst [vmem:[#allocation1 + $0x3] ss:$9 sm:$0xff] %v3431_v46  ;;  %v4308_v59 = vsel %vm4272_vm6, %v4307_v33, %v4306_v55 }
 0x652   : > { %4013 = vst [vmem:[#allocation1 + $0x4] ss:$9 sm:$0xff] %v3432_v54  ;;  %v4310_v45 = vsel %vm4276_vm7, %v4309_v56, %v4308_v59 }
 0x653   : > { %4014 = vst [vmem:[#allocation1 + $0x5] ss:$9 sm:$0xff] %v3433_v35  ;;  %v4312_v32 = vsel %vm4280_vm8, %v4311_v19, %v4310_v45 }
 0x654   : > { %4015 = vst [vmem:[#allocation1 + $0x6] ss:$9 sm:$0xff] %v3434_v23  ;;  %v4375_v14 = vrot.slane %v4312_v32, 7 }
 0x655   : > { %4016 = vst [vmem:[#allocation1 + $0x7] ss:$9 sm:$0xff] %v3435_v49  ;;  %v4137_v49 = vpop.permute.xlu2 %4136 }
 0x656   : > { %v4125_v46 = vpop.permute.xlu0 %4124  ;;  %v7798_v18 = vsel %vm4378_vm9, %v7738_v52, %v4375_v14 }
 0x657   : > { %v4313_v54 = vperm.slane %v4125_v46, %v7528_v27 }
 0x658   : > { %v4140_v47 = vpop.permute.xlu1 %4139 }
 0x659   : > { %v4315_v35 = vsel %vm4224_vm10, %v4314_v58, %v4313_v54 }
 0x65c   : > { %v4017_v41 = vld [vmem:[#allocation1] sm:$0xff] }
 0x65d   : > { %4214 = vperm.xlu0 %4756, %v4017_v41   ;;  %4018 = vst [vmem:[#allocation1] ss:$9 sm:$0xff] %v3436_v28  ;;  %v4146_v25 = vpop.permute.xlu2 %4145 }
 0x65e   : > { %4019 = vst [vmem:[#allocation1 + $0x1] ss:$9 sm:$0xff] %v3437_v11  ;;  %v4134_v20 = vpop.permute.xlu0 %4133  ;;  %v4326_v31 = vperm.slane %v4146_v25, %v7658_v30 }
 0x65f   : > { %4020 = vst [vmem:[#allocation1 + $0x2] ss:$9 sm:$0xff] %v3438_v12  ;;  %v4318_v42 = vperm.slane %v4134_v20, %v7639_v40 }
 0x660   : > { %4021 = vst [vmem:[#allocation1 + $0x3] ss:$9 sm:$0xff] %v3439_v9  ;;  %v4149_v16 = vpop.permute.xlu1 %4148  ;;  %v4316_v9 = vperm.slane %v4131_v34, %v7635_v43 }
 0x661   : > { %4022 = vst [vmem:[#allocation1 + $0x4] ss:$9 sm:$0xff] %v3440_v48 }
 0x662   : > { %4023 = vst [vmem:[#allocation1 + $0x5] ss:$9 sm:$0xff] %v3441_v8  ;;  %v4317_v5 = vsel %vm4228_vm0, %v4316_v9, %v4315_v35 }
 0x663   : > { %4024 = vst [vmem:[#allocation1 + $0x6] ss:$9 sm:$0xff] %v3442_v37  ;;  %v4319_v57 = vsel %vm4232_vm11, %v4318_v42, %v4317_v5  ;;  %v4320_v37 = vperm.slane %v4137_v49, %v7648_v24 }
 0x664   : > { %4025 = vst [vmem:[#allocation1 + $0x7] ss:$9 sm:$0xff] %v3443_v22 }
 0x665   : > { %v4155_v3 = vpop.permute.xlu2 %4154  ;;  %v4321_v61 = vsel %vm4236_vm12, %v4320_v37, %v4319_v57 }
 0x666   : > { %v4143_v23 = vpop.permute.xlu0 %4142 }
 0x668   : > { %v4158_v4 = vpop.permute.xlu1 %4157 }
 0x66b   : > { %v4026_v36 = vld [vmem:[#allocation1] sm:$0xff] }
 0x66c   : > { %4217 = vperm.xlu2 %4758, %v4026_v36  }
 0x66d   : > { %v7805_v28 = vpop.permute.xlu2 %4163 }
 0x66e   : > { %v4152_v6 = vpop.permute.xlu0 %4151 }
 0x670   : > { %v7807_v52 = vpop.permute.xlu1 %4166 }
 0x675   : > { %v4173_v7 = vpop.permute.xlu2 %4172 }
 0x676   : > { %v7801_v29 = vpop.permute.xlu0 %4160  ;;  %v4344_v48 = vperm.slane %v4173_v7, %v7528_v27  ;;  %v4322_v27 = vperm.slane %v4140_v47, %v7661_v2 }
 0x678   : > { %v4176_v41 = vpop.permute.xlu1 %4175  ;;  %v4323_v59 = vsel %vm4240_vm13, %v4322_v27, %v4321_v61 }
 0x679   : > { %v4345_v0 = vperm.slane %v4176_v41, %v7533_v62 }
 0x67b   : > { %v4346_v8 = vsel %vm4224_vm10, %v4345_v0, %v4344_v48  ;;  %vm4380_vm10 = vcmask 1042434  }
 0x67d   : > { %v4182_v38 = vpop.permute.xlu2 %4181 }
 0x67e   : > { %v7803_v10 = vpop.permute.xlu0 %4169  ;;  %v4349_v22 = vperm.slane %v4182_v38, %v7639_v40 }
 0x680   : > { %v4185_v53 = vpop.permute.xlu1 %4184 }
 0x681   : > { %v4351_v56 = vperm.slane %v4185_v53, %v7648_v24  ;;  %v4328_v24 = vperm.slane %v4149_v16, %v7675_v17 }
 0x685   : > { %v4191_v55 = vpop.permute.xlu2 %4190 }
 0x686   : > { %v4179_v11 = vpop.permute.xlu0 %4178  ;;  %v4355_v36 = vperm.slane %v4191_v55, %v7666_v50 }
 0x687   : > { %v4347_v39 = vperm.slane %v4179_v11, %v7635_v43  ;;  %v4324_v43 = vperm.slane %v4143_v23, %v7666_v50  ;;  %v4332_v50 = vperm.slane %v4155_v3, %v7694_v63  ;;  %v4334_v11 = vperm.slane %v4158_v4, %v7704_v60 }
 0x688   : > { %v4194_v45 = vpop.permute.xlu1 %4193 }
 0x689   : > { %v4348_v62 = vsel %vm4228_vm0, %v4347_v39, %v4346_v8  ;;  %v4325_v32 = vsel %vm4244_vm14, %v4324_v43, %v4323_v59  ;;  %v4357_v20 = vperm.slane %v4194_v45, %v7658_v30  ;;  %v4336_v30 = vperm.slane %v7801_v29, %v7709_v21 }
 0x68a   : > { %v4350_v44 = vsel %vm4232_vm11, %v4349_v22, %v4348_v62  ;;  %v4327_v58 = vsel %vm4248_vm15, %v4326_v31, %v4325_v32  ;;  %v4338_v29 = vperm.slane %v7805_v28, %v7717_v26  ;;  %vm4382_vm0 = vcmask 1041408  }
 0x68b   : > { %v4352_v40 = vsel %vm4236_vm12, %v4351_v56, %v4350_v44  ;;  %v4329_v23 = vsel %vm4252_vm1, %v4328_v24, %v4327_v58  ;;  %vm4387_vm11 = vcmp.lt.s32.totalorder %v4219_v13, 512 }
 0x68d   : > { %v4200_v46 = vpop.permute.xlu2 %4199 }
 0x68e   : > { %v4188_v12 = vpop.permute.xlu0 %4187  ;;  %v4361_v16 = vperm.slane %v4200_v46, %v7679_v51 }
 0x68f   : > { %v4353_v33 = vperm.slane %v4188_v12, %v7661_v2  ;;  %v4330_v2 = vperm.slane %v4152_v6, %v7679_v51 }
 0x691   : > { %v4354_v14 = vsel %vm4240_vm13, %v4353_v33, %v4352_v40  ;;  %v4331_v49 = vsel %vm4256_vm2, %v4330_v2, %v4329_v23 }
 0x692   : > { %v4356_v54 = vsel %vm4244_vm14, %v4355_v36, %v4354_v14  ;;  %v4333_v7 = vsel %vm4260_vm3, %v4332_v50, %v4331_v49 }
 0x693   : > { %v4358_v34 = vsel %vm4248_vm15, %v4357_v20, %v4356_v54  ;;  %v4203_v47 = vpop.permute.xlu1 %4202  ;;  %v4335_v12 = vsel %vm4264_vm4, %v4334_v11, %v4333_v7 }
 0x694   : > { %v4363_v38 = vperm.slane %v4203_v47, %v7694_v63  ;;  %v4337_v51 = vsel %vm4268_vm5, %v4336_v30, %v4335_v12  ;;  %v4342_v63 = vperm.slane %v7803_v10, %v7732_v1 }
 0x695   : > { %v4339_v39 = vsel %vm4272_vm6, %v4338_v29, %v4337_v51 }
 0x696   : > { %v4197_v19 = vpop.permute.xlu0 %4196 }
 0x697   : > { %v4359_v35 = vperm.slane %v4197_v19, %v7675_v17 }
 0x699   : > { %v4360_v6 = vsel %vm4252_vm1, %v4359_v35, %v4358_v34  ;;  %v4209_v17 = vpop.permute.xlu2 %4208 }
 0x69a   : > { %v4362_v41 = vsel %vm4256_vm2, %v4361_v16, %v4360_v6  ;;  %v4367_v4 = vperm.slane %v4209_v17, %v7709_v21 }
 0x69b   : > { %v4364_v0 = vsel %vm4260_vm3, %v4363_v38, %v4362_v41 }
 0x6a2   : > { %v4206_v25 = vpop.permute.xlu0 %4205 }
 0x6a3   : > { %v4365_v3 = vperm.slane %v4206_v25, %v7704_v60  ;;  %v4340_v60 = vperm.slane %v7807_v52, %v7727_v15 }
 0x6a5   : > { %v4366_v42 = vsel %vm4264_vm4, %v4365_v3, %v4364_v0  ;;  %v4341_v21 = vsel %vm4276_vm7, %v4340_v60, %v4339_v39 }
 0x6a6   : > { %v4368_v53 = vsel %vm4268_vm5, %v4367_v4, %v4366_v42  ;;  %v4343_v10 = vsel %vm4280_vm8, %v4342_v63, %v4341_v21 }
 0x6c0   : > { %v4212_v9 = vpop.permute.xlu1 %4211 }
 0x6c1   : > { %v4369_v28 = vperm.slane %v4212_v9, %v7717_v26 }
 0x6c3   : > { %v4370_v52 = vsel %vm4272_vm6, %v4369_v28, %v4368_v53 }
 0x6c6   : > { %v4218_v48 = vpop.permute.xlu2 %4217 }
 0x6c7   : > { %v4373_v57 = vperm.slane %v4218_v48, %v7732_v1 }
 0x6cf   : > { %v4215_v5 = vpop.permute.xlu0 %4214 }
 0x6d0   : > { %v4371_v8 = vperm.slane %v4215_v5, %v7727_v15  ;;  %v4376_v15 = vrot.slane %v4343_v10, 6 }
 0x6d2   : > { %v4372_v37 = vsel %vm4276_vm7, %v4371_v8, %v4370_v52 }
 0x6d3   : > { %v4374_v26 = vsel %vm4280_vm8, %v4373_v57, %v4372_v37 }
 0x6d4   : > { %v4377_v55 = vrot.slane %v4374_v26, 5 }
 0x6d6   : > { %v4381_v62 = vsel %vm4380_vm10, %v4376_v15, %v4377_v55 }
 0x6d7   : > { %v4383_v1 = vsel %vm4382_vm0, %v7798_v18, %v4381_v62 }
 0x6d8   : > { %4389 = vst.msk [vmem:[%s223_s19] sm:$0xf] %vm4387_vm11, %v4383_v1 }
 0x6d9   : > { %4866 = shalt.err (!%p4863_p3)
}
 0x6da   : > { %4716 = dma.vmem_to_hbm [thread:$0]  (%p4967_p5), %s4404_s7, 64, %s4406_s9, %s4391_s10  }
 0x6db PF: > { %p4722_p4 = scmp.ge.s32.totalorder %s4901_s18, 2  ;;  %s4417_s28 = sand.u32 1, %s4889_s15  }
 0x6dc   : > { %s4418_s27 = scalar_lea.sflag [#allocation3], %s4417_s28 }
 0x6dd   : > { %p4719_p7 = pnand %p4722_p4, %p4971_p6 }
 0x6df   : > { %p4720_p8 = pneg %p4719_p7 }
 0x6e1   : > { %4884 = dma.done.wait (%p4720_p8), %s4418_s27, 64  }
 0x6e2   : > { %4886 = vsyncadd (%p4720_p8), %s4418_s27, 4294967232  ;;  %p14_p9 = scmp.ge.s32.totalorder %s4954_s21, 4   ;;  %s8407_s15 = smov %s4893_s16 }
 0x6e3   : > { %s8408_s16 = smov %s4897_s17  ;;  %s8409_s17 = smov %s4965_s24 }
 0x6e4   : > { %s8410_s18 = smov %s4954_s21  ;;  %16 = sbr.rel (!%p14_p9) target bundleno = 3 (0x3), region = 86 }
 0x6e9   :  { %4424 = vsyncpa [#allocation3], 1 }
 0x6ea   :  { %4426 = vsyncpa [#allocation3 + $0x1], 1 }

</bundles_post_ra>
